<compile_context>
chip_gen: v7x
topology: tpu7x:2x2x1
jax: 0.10.0
libtpu: 0.0.40
codegen_flags: <defaults>
</compile_context>

<pallas_src>
import functools

import numpy as np
import jax
import jax.numpy as jnp
from jax.experimental import pallas as pl
from jax.experimental.pallas import tpu as pltpu

SAMPLE_RATE = 22050


# ----------------------------------------------------------------------------
# Constant builders (numpy, executed once at trace time)
# ----------------------------------------------------------------------------
def _hann_window(n):
    k = np.arange(n)
    return 0.5 - 0.5 * np.cos(2.0 * np.pi * k / n)  # periodic hann (torch default)


def _dft_matrices(n_fft, n_bins):
    """Window-folded real-DFT matrices: (n_fft, n_bins) cos and sin."""
    n = np.arange(n_fft)[:, None]
    k = np.arange(n_bins)[None, :]
    ang = 2.0 * np.pi * n * k / n_fft
    w = _hann_window(n_fft)[:, None]
    return (np.cos(ang) * w).astype(np.float32), (np.sin(ang) * w).astype(np.float32)


def _mel_filterbank(n_freqs, n_mels, sr):
    """torchaudio melscale_fbanks (HTK mel, norm=None): (n_freqs, n_mels)."""
    f_min, f_max = 0.0, sr / 2.0
    all_freqs = np.linspace(0, sr // 2, n_freqs)
    hz2mel = lambda f: 2595.0 * np.log10(1.0 + f / 700.0)
    mel2hz = lambda m: 700.0 * (10.0 ** (m / 2595.0) - 1.0)
    m_pts = np.linspace(hz2mel(f_min), hz2mel(f_max), n_mels + 2)
    f_pts = mel2hz(m_pts)
    f_diff = f_pts[1:] - f_pts[:-1]
    slopes = f_pts[None, :] - all_freqs[:, None]
    down = -slopes[:, :-2] / f_diff[:-1]
    up = slopes[:, 2:] / f_diff[1:]
    return np.maximum(0.0, np.minimum(down, up)).astype(np.float32)


def _dct_matrix(n_mfcc, n_mels):
    """torchaudio create_dct(norm='ortho'): (n_mels, n_mfcc)."""
    n = np.arange(n_mels)
    k = np.arange(n_mfcc)[:, None]
    dct = np.cos(np.pi / n_mels * (n + 0.5) * k)
    dct[0] *= 1.0 / np.sqrt(2.0)
    dct *= np.sqrt(2.0 / n_mels)
    return np.ascontiguousarray(dct.T).astype(np.float32)


def _half_overlap_chunks(x, n_fft, hop):
    """torch.stft center=True reflect padding, split into non-overlapping
    half-frame chunks: (B, n_frames+1, hop).  Frame f == [chunk f, chunk f+1]
    (hop == n_fft/2), so no duplicated frame tensor is ever materialized."""
    assert n_fft == 2 * hop
    b, t = x.shape
    pad = n_fft // 2
    xp = jnp.pad(x, ((0, 0), (pad, pad)), mode="reflect")
    n_frames = 1 + t // hop
    used = (n_frames + 1) * hop                     # always <= t + n_fft
    return xp[:, :used].reshape(b, n_frames + 1, hop), n_frames


# ----------------------------------------------------------------------------
# Fused Pallas kernel: one grid step == bt batch elements
# ----------------------------------------------------------------------------
def _features_kernel(xa_ref, xm_ref, wa_ref, wm_ref, mel_ref, dct_ref, out_ref, *,
                     bt, fa, fm, ka_pad, km, n_mfcc, bin_hz, rolloff_pct,
                     top_db, amin):
    f32 = jnp.float32
    ca = fa + 1                         # chunks per element (centroid path)
    cm = fm + 1                         # chunks per element (MFCC path)

    # -------- spectral centroid + rolloff (n_fft=400, hop=200) ---------------
    ha = xa_ref[...]                                              # (bt*ca, 200) bf16
    ya = jnp.dot(ha, wa_ref[...], preferred_element_type=f32)     # (bt*ca, 4*ka_pad)
    # frame f (of element b) = [chunk f | chunk f+1]; combine on flattened rows.
    # Rows that straddle an element boundary are garbage and are never read below.
    top = ya[:-1, :]
    bot = ya[1:, :]
    re = top[:, 0 * ka_pad:1 * ka_pad] + bot[:, 2 * ka_pad:3 * ka_pad]
    im = top[:, 1 * ka_pad:2 * ka_pad] + bot[:, 3 * ka_pad:4 * ka_pad]
    mag = jnp.sqrt(re * re + im * im)                             # (bt*ca-1, 256)

    rows = mag.shape[0]
    lane = jax.lax.broadcasted_iota(jnp.int32, (rows, ka_pad), 1)
    den = jnp.sum(mag, axis=-1, keepdims=True)                    # (rows, 1)
    num = jnp.sum(mag * (lane.astype(f32) * bin_hz), axis=-1, keepdims=True)
    centroid = num / den      # NaN only for silent frames (torchaudio parity)

    # inclusive lane prefix-sum: log2(256) XLU rolls + masked adds (no concats)
    cum = mag
    shift = 1
    while shift < ka_pad:
        rolled = pltpu.roll(cum, shift, 1)
        cum = cum + jnp.where(lane >= shift, rolled, 0.0)
        shift *= 2
    below = (cum < rolloff_pct * den).astype(f32)
    rolloff = jnp.sum(below, axis=-1, keepdims=True) * bin_hz     # (rows, 1)

    # -------- MFCC (n_fft=1024, hop=512, 128 mels, 13 coeffs) ----------------
    hm = xm_ref[...]                                              # (bt*cm, 512) f32
    ym = jnp.dot(hm, wm_ref[...], preferred_element_type=f32)     # (bt*cm, 4*512)
    re_m = ym[:-1, 0 * km:1 * km] + ym[1:, 2 * km:3 * km]
    im_m = ym[:-1, 1 * km:2 * km] + ym[1:, 3 * km:4 * km]
    power = re_m * re_m + im_m * im_m                             # (bt*cm-1, 512)

    melspec = jnp.dot(power, mel_ref[...], preferred_element_type=f32)  # (., 128)
    db = 10.0 * jnp.log10(jnp.maximum(melspec, amin))

    # AmplitudeToDB('power', top_db=80); db_multiplier = log10(1.0) = 0.
    # Clamp threshold is the per-element max, applied via a row-iota mask so
    # the DCT matmul stays one fat dot over the whole batch block.
    # TODO(synk): torchaudio clamps against the max over the WHOLE batch for
    # 3-D inputs; identical whenever the 80 dB clamp is inactive or B == 1.
    m_rows = db.shape[0]
    row_id = jax.lax.broadcasted_iota(jnp.int32, (m_rows, 1), 0)
    thr = jnp.full((m_rows, 1), -1e30, f32)
    for b in range(bt):
        db_b = db[b * cm:b * cm + fm, :]                          # (fm, 128)
        mx = jnp.max(jnp.max(db_b, axis=1, keepdims=True), axis=0, keepdims=True)
        in_b = (row_id >= b * cm) & (row_id < b * cm + fm)
        thr = jnp.where(in_b, mx - top_db, thr)
    db = jnp.maximum(db, thr)
    mfcc = jnp.dot(db, dct_ref[...], preferred_element_type=f32)  # (m_rows, 13)

    # -------- per-element mean / unbiased std -> static slice writes ---------
    def _stats(v, n):                            # v: (n, c) -> ((1, c), (1, c))
        m = jnp.sum(v, axis=0, keepdims=True) / n
        var = jnp.sum((v - m) ** 2, axis=0, keepdims=True) / (n - 1)
        return m, jnp.sqrt(var)

    for b in range(bt):
        c_m, c_s = _stats(centroid[b * ca:b * ca + fa, :], fa)
        r_m, r_s = _stats(rolloff[b * ca:b * ca + fa, :], fa)
        m_m, m_s = _stats(mfcc[b * cm:b * cm + fm, :], fm)
        out_ref[b:b + 1, 0:1] = c_m
        out_ref[b:b + 1, 1:2] = c_s
        out_ref[b:b + 1, 2:3] = r_m
        out_ref[b:b + 1, 3:4] = r_s
        out_ref[b:b + 1, 4:4 + n_mfcc] = m_m
        out_ref[b:b + 1, 4 + n_mfcc:4 + 2 * n_mfcc] = m_s


# ----------------------------------------------------------------------------
# Wrapper (equivalent of PerceptualFeatureExtractor.forward)
# ----------------------------------------------------------------------------
def perceptual_features(waveform):
    waveform = waveform.astype(jnp.float32)
    b = waveform.shape[0]

    n_fft_a, hop_a = 400, 200            # SpectralCentroid / rolloff spectrogram
    n_fft_m, hop_m = 1024, 512           # MFCC mel spectrogram
    n_mels, n_mfcc = 128, 13
    ka = n_fft_a // 2 + 1                # 201 real bins
    ka_pad = 256                         # lane-tile aligned (extra bins zero)
    km = n_fft_m // 2                    # 512: Nyquist bin dropped (zero mel weight)
    bin_hz = float(SAMPLE_RATE // 2) / (ka - 1)

    xa, fa = _half_overlap_chunks(waveform, n_fft_a, hop_a)   # (B, fa+1, 200)
    xm, fm = _half_overlap_chunks(waveform, n_fft_m, hop_m)   # (B, fm+1, 512)
    xa = xa.astype(jnp.bfloat16)         # native bf16 MXU path; halves chunk DMA
    # MFCC chunks stay f32 (log10 amplifies bf16 spectrogram error)

    # ---- batch-block the grid: bt elements per step ------------------------
    bt = min(4, b)
    if b >= 2:
        bt = min(bt, -(-b // 2))         # keep >= 2 steps so v7x's 2 TCs both work
    n_steps = -(-b // bt)
    b_pad = n_steps * bt
    if b_pad != b:
        xa = jnp.pad(xa, ((0, b_pad - b), (0, 0), (0, 0)))
        xm = jnp.pad(xm, ((0, b_pad - b), (0, 0), (0, 0)))
    # Flatten each step's (bt, chunks, hop) slab to a 2-D matmul operand in the
    # wrapper so the kernel needs no in-kernel reshapes.
    xa = xa.reshape(n_steps, bt * (fa + 1), hop_a)
    xm = xm.reshape(n_steps, bt * (fm + 1), hop_m)
    # TODO(synk): for very long clips (thousands of frames) add a second
    # 'arbitrary' grid axis over frame blocks with Welford accumulators.

    # ---- fused, lane-aligned DFT weights: [cos_top | sin_top | cos_bot | sin_bot]
    def pad_cols(m, n):
        return np.pad(m, ((0, 0), (0, n - m.shape[1])))

    cos_a, sin_a = _dft_matrices(n_fft_a, ka)
    wa = np.concatenate(
        [pad_cols(cos_a[:hop_a], ka_pad), pad_cols(sin_a[:hop_a], ka_pad),
         pad_cols(cos_a[hop_a:], ka_pad), pad_cols(sin_a[hop_a:], ka_pad)], axis=1)
    wa = jnp.asarray(wa, dtype=jnp.bfloat16)                        # (200, 1024)

    cos_m, sin_m = _dft_matrices(n_fft_m, km)                       # 512 bins
    wm = jnp.asarray(np.concatenate([cos_m[:hop_m], sin_m[:hop_m],
                                     cos_m[hop_m:], sin_m[hop_m:]],
                                    axis=1))                        # (512, 2048) f32
    fb = jnp.asarray(
        _mel_filterbank(n_fft_m // 2 + 1, n_mels, SAMPLE_RATE)[:km])  # (512, 128)
    dct = jnp.asarray(_dct_matrix(n_mfcc, n_mels))                  # (128, 13)

    kernel = functools.partial(
        _features_kernel, bt=bt, fa=fa, fm=fm, ka_pad=ka_pad, km=km,
        n_mfcc=n_mfcc, bin_hz=bin_hz, rolloff_pct=0.85, top_db=80.0, amin=1e-10)

    n_out = 4 + 2 * n_mfcc               # 30
    const = lambda shp: pl.BlockSpec(shp, lambda i: (0,) * len(shp))
    raw = pl.pallas_call(
        kernel,
        grid=(n_steps,),
        in_specs=[
            pl.BlockSpec((None, bt * (fa + 1), hop_a), lambda i: (i, 0, 0)),
            pl.BlockSpec((None, bt * (fm + 1), hop_m), lambda i: (i, 0, 0)),
            const((hop_a, 4 * ka_pad)),
            const((hop_m, 4 * km)),
            const((km, n_mels)),
            const((n_mels, n_mfcc)),
        ],
        out_specs=pl.BlockSpec((None, bt, n_out), lambda i: (i, 0, 0)),
        out_shape=jax.ShapeDtypeStruct((n_steps, bt, n_out), jnp.float32),
        compiler_params=pltpu.CompilerParams(
            dimension_semantics=("parallel",),        # shard batch blocks over TCs
            vmem_limit_bytes=32 * 1024 * 1024),       # well below v7x physical VMEM
    )(xa, xm, wa, wm, fb, dct)

    raw = raw.reshape(b_pad, n_out)[:b]                             # (B, 30)
    # reorder MFCC stats to torch's interleaved [m0, s0, m1, s1, ...] layout
    head = raw[:, :4]
    mfcc_stats = jnp.stack([raw[:, 4:4 + n_mfcc], raw[:, 4 + n_mfcc:]], axis=-1)
    return jnp.concatenate([head, mfcc_stats.reshape(b, 2 * n_mfcc)], axis=1)


if __name__ == "__main__":
    key = jax.random.PRNGKey(0)
    # small deterministic "waveform": batch=2, 4096 samples
    waveform = 0.1 * jax.random.normal(key, (2, 4096), dtype=jnp.float32)

    feats = jax.jit(perceptual_features)(waveform)
    feats = jax.block_until_ready(feats)

    assert feats.shape == (2, 30), feats.shape
    assert bool(jnp.all(jnp.isfinite(feats)))
    print("KERNEL_OK")
</pallas_src>

<mosaic_0001>
module attributes {stable_mosaic.version = 11 : i64} {
  func.func @_features_kernel(%arg0: i32, %arg1: memref<1x22x200xbf16, #tpu.memory_space<vmem>>, %arg2: memref<1x10x512xf32, #tpu.memory_space<vmem>>, %arg3: memref<200x1024xbf16, #tpu.memory_space<vmem>>, %arg4: memref<512x2048xf32, #tpu.memory_space<vmem>>, %arg5: memref<512x128xf32, #tpu.memory_space<vmem>>, %arg6: memref<128x13xf32, #tpu.memory_space<vmem>>, %arg7: memref<1x1x30xf32, #tpu.memory_space<vmem>>) attributes {dimension_semantics = [#tpu.dimension_semantics<parallel>], iteration_bounds = array<i64: 2>, scalar_prefetch = 0 : i64, scratch_operands = 0 : i64, tpu.core_type = #tpu.core_type<tc>, window_params = [{transform_indices = @transform_0, window_bounds = array<i64: 1, 22, 200>}, {transform_indices = @transform_1, window_bounds = array<i64: 1, 10, 512>}, {pipeline_mode = #tpu.pipeline_mode<synchronous>, transform_indices = @transform_2, window_bounds = array<i64: 200, 1024>}, {pipeline_mode = #tpu.pipeline_mode<synchronous>, transform_indices = @transform_3, window_bounds = array<i64: 512, 2048>}, {pipeline_mode = #tpu.pipeline_mode<synchronous>, transform_indices = @transform_4, window_bounds = array<i64: 512, 128>}, {pipeline_mode = #tpu.pipeline_mode<synchronous>, transform_indices = @transform_5, window_bounds = array<i64: 128, 13>}, {transform_indices = @transform_6, window_bounds = array<i64: 1, 1, 30>}]} {
    %c0 = arith.constant 0 : index
    %c0_0 = arith.constant 0 : index
    %c0_1 = arith.constant 0 : index
    %0 = vector.load %arg1[%c0, %c0_0, %c0_1] : memref<1x22x200xbf16, #tpu.memory_space<vmem>>, vector<1x22x200xbf16>
    %1 = vector.shape_cast %0 : vector<1x22x200xbf16> to vector<22x200xbf16>
    %c0_2 = arith.constant 0 : index
    %c0_3 = arith.constant 0 : index
    %2 = vector.load %arg3[%c0_2, %c0_3] : memref<200x1024xbf16, #tpu.memory_space<vmem>>, vector<200x1024xbf16>
    %cst = arith.constant dense<0.000000e+00> : vector<22x1024xf32>
    %3 = tpu.matmul %1, %2, %cst {dimension_numbers = #tpu.dot_dimension_numbers<[1], [0], [0], [1], [0, 0, 1, 1], [], []>} : vector<22x200xbf16>, vector<200x1024xbf16>, vector<22x1024xf32> -> vector<22x1024xf32>
    %4 = vector.extract_strided_slice %3 {offsets = [0, 0], sizes = [21, 1024], strides = [1, 1]} : vector<22x1024xf32> to vector<21x1024xf32>
    %5 = vector.extract_strided_slice %3 {offsets = [1, 0], sizes = [21, 1024], strides = [1, 1]} : vector<22x1024xf32> to vector<21x1024xf32>
    %6 = vector.extract_strided_slice %4 {offsets = [0, 0], sizes = [21, 256], strides = [1, 1]} : vector<21x1024xf32> to vector<21x256xf32>
    %7 = vector.extract_strided_slice %5 {offsets = [0, 512], sizes = [21, 256], strides = [1, 1]} : vector<21x1024xf32> to vector<21x256xf32>
    %8 = arith.addf %6, %7 : vector<21x256xf32>
    %9 = vector.extract_strided_slice %4 {offsets = [0, 256], sizes = [21, 256], strides = [1, 1]} : vector<21x1024xf32> to vector<21x256xf32>
    %10 = vector.extract_strided_slice %5 {offsets = [0, 768], sizes = [21, 256], strides = [1, 1]} : vector<21x1024xf32> to vector<21x256xf32>
    %11 = arith.addf %9, %10 : vector<21x256xf32>
    %12 = arith.mulf %8, %8 : vector<21x256xf32>
    %13 = arith.mulf %11, %11 : vector<21x256xf32>
    %14 = arith.addf %12, %13 : vector<21x256xf32>
    %15 = math.sqrt %14 : vector<21x256xf32>
    %16 = tpu.iota {dimensions = array<i32: 1>} : vector<21x256xi32>
    %cst_4 = arith.constant dense<0.000000e+00> : vector<21xf32>
    %17 = vector.multi_reduction <add>, %15, %cst_4 [1] : vector<21x256xf32> to vector<21xf32>
    %18 = vector.shape_cast %17 : vector<21xf32> to vector<21x1xf32>
    %19 = arith.sitofp %16 : vector<21x256xi32> to vector<21x256xf32>
    %cst_5 = arith.constant 5.512500e+01 : f32
    %20 = vector.broadcast %cst_5 : f32 to vector<21x256xf32>
    %21 = arith.mulf %19, %20 : vector<21x256xf32>
    %22 = arith.mulf %15, %21 : vector<21x256xf32>
    %cst_6 = arith.constant dense<0.000000e+00> : vector<21xf32>
    %23 = vector.multi_reduction <add>, %22, %cst_6 [1] : vector<21x256xf32> to vector<21xf32>
    %24 = vector.shape_cast %23 : vector<21xf32> to vector<21x1xf32>
    %25 = arith.divf %24, %18 : vector<21x1xf32>
    %c1_i32 = arith.constant 1 : i32
    %26 = tpu.dynamic_rotate %15 by %c1_i32 dim 1 : vector<21x256xf32>, i32 -> vector<21x256xf32>
    %c1_i32_7 = arith.constant 1 : i32
    %27 = vector.broadcast %c1_i32_7 : i32 to vector<21x256xi32>
    %28 = arith.cmpi sge, %16, %27 : vector<21x256xi32>
    %cst_8 = arith.constant 0.000000e+00 : f32
    %29 = vector.broadcast %cst_8 : f32 to vector<21x256xf32>
    %30 = arith.select %28, %26, %29 : vector<21x256xi1>, vector<21x256xf32>
    %31 = arith.addf %15, %30 : vector<21x256xf32>
    %c2_i32 = arith.constant 2 : i32
    %32 = tpu.dynamic_rotate %31 by %c2_i32 dim 1 : vector<21x256xf32>, i32 -> vector<21x256xf32>
    %c2_i32_9 = arith.constant 2 : i32
    %33 = vector.broadcast %c2_i32_9 : i32 to vector<21x256xi32>
    %34 = arith.cmpi sge, %16, %33 : vector<21x256xi32>
    %cst_10 = arith.constant 0.000000e+00 : f32
    %35 = vector.broadcast %cst_10 : f32 to vector<21x256xf32>
    %36 = arith.select %34, %32, %35 : vector<21x256xi1>, vector<21x256xf32>
    %37 = arith.addf %31, %36 : vector<21x256xf32>
    %c4_i32 = arith.constant 4 : i32
    %38 = tpu.dynamic_rotate %37 by %c4_i32 dim 1 : vector<21x256xf32>, i32 -> vector<21x256xf32>
    %c4_i32_11 = arith.constant 4 : i32
    %39 = vector.broadcast %c4_i32_11 : i32 to vector<21x256xi32>
    %40 = arith.cmpi sge, %16, %39 : vector<21x256xi32>
    %cst_12 = arith.constant 0.000000e+00 : f32
    %41 = vector.broadcast %cst_12 : f32 to vector<21x256xf32>
    %42 = arith.select %40, %38, %41 : vector<21x256xi1>, vector<21x256xf32>
    %43 = arith.addf %37, %42 : vector<21x256xf32>
    %c8_i32 = arith.constant 8 : i32
    %44 = tpu.dynamic_rotate %43 by %c8_i32 dim 1 : vector<21x256xf32>, i32 -> vector<21x256xf32>
    %c8_i32_13 = arith.constant 8 : i32
    %45 = vector.broadcast %c8_i32_13 : i32 to vector<21x256xi32>
    %46 = arith.cmpi sge, %16, %45 : vector<21x256xi32>
    %cst_14 = arith.constant 0.000000e+00 : f32
    %47 = vector.broadcast %cst_14 : f32 to vector<21x256xf32>
    %48 = arith.select %46, %44, %47 : vector<21x256xi1>, vector<21x256xf32>
    %49 = arith.addf %43, %48 : vector<21x256xf32>
    %c16_i32 = arith.constant 16 : i32
    %50 = tpu.dynamic_rotate %49 by %c16_i32 dim 1 : vector<21x256xf32>, i32 -> vector<21x256xf32>
    %c16_i32_15 = arith.constant 16 : i32
    %51 = vector.broadcast %c16_i32_15 : i32 to vector<21x256xi32>
    %52 = arith.cmpi sge, %16, %51 : vector<21x256xi32>
    %cst_16 = arith.constant 0.000000e+00 : f32
    %53 = vector.broadcast %cst_16 : f32 to vector<21x256xf32>
    %54 = arith.select %52, %50, %53 : vector<21x256xi1>, vector<21x256xf32>
    %55 = arith.addf %49, %54 : vector<21x256xf32>
    %c32_i32 = arith.constant 32 : i32
    %56 = tpu.dynamic_rotate %55 by %c32_i32 dim 1 : vector<21x256xf32>, i32 -> vector<21x256xf32>
    %c32_i32_17 = arith.constant 32 : i32
    %57 = vector.broadcast %c32_i32_17 : i32 to vector<21x256xi32>
    %58 = arith.cmpi sge, %16, %57 : vector<21x256xi32>
    %cst_18 = arith.constant 0.000000e+00 : f32
    %59 = vector.broadcast %cst_18 : f32 to vector<21x256xf32>
    %60 = arith.select %58, %56, %59 : vector<21x256xi1>, vector<21x256xf32>
    %61 = arith.addf %55, %60 : vector<21x256xf32>
    %c64_i32 = arith.constant 64 : i32
    %62 = tpu.dynamic_rotate %61 by %c64_i32 dim 1 : vector<21x256xf32>, i32 -> vector<21x256xf32>
    %c64_i32_19 = arith.constant 64 : i32
    %63 = vector.broadcast %c64_i32_19 : i32 to vector<21x256xi32>
    %64 = arith.cmpi sge, %16, %63 : vector<21x256xi32>
    %cst_20 = arith.constant 0.000000e+00 : f32
    %65 = vector.broadcast %cst_20 : f32 to vector<21x256xf32>
    %66 = arith.select %64, %62, %65 : vector<21x256xi1>, vector<21x256xf32>
    %67 = arith.addf %61, %66 : vector<21x256xf32>
    %c128_i32 = arith.constant 128 : i32
    %68 = tpu.dynamic_rotate %67 by %c128_i32 dim 1 : vector<21x256xf32>, i32 -> vector<21x256xf32>
    %c128_i32_21 = arith.constant 128 : i32
    %69 = vector.broadcast %c128_i32_21 : i32 to vector<21x256xi32>
    %70 = arith.cmpi sge, %16, %69 : vector<21x256xi32>
    %cst_22 = arith.constant 0.000000e+00 : f32
    %71 = vector.broadcast %cst_22 : f32 to vector<21x256xf32>
    %72 = arith.select %70, %68, %71 : vector<21x256xi1>, vector<21x256xf32>
    %73 = arith.addf %67, %72 : vector<21x256xf32>
    %cst_23 = arith.constant 8.500000e-01 : f32
    %74 = vector.broadcast %cst_23 : f32 to vector<21x1xf32>
    %75 = arith.mulf %74, %18 : vector<21x1xf32>
    %76 = vector.broadcast %75 : vector<21x1xf32> to vector<21x256xf32>
    %77 = arith.cmpf olt, %73, %76 : vector<21x256xf32>
    %78 = arith.extui %77 : vector<21x256xi1> to vector<21x256xi32>
    %79 = arith.sitofp %78 : vector<21x256xi32> to vector<21x256xf32>
    %cst_24 = arith.constant dense<0.000000e+00> : vector<21xf32>
    %80 = vector.multi_reduction <add>, %79, %cst_24 [1] : vector<21x256xf32> to vector<21xf32>
    %81 = vector.shape_cast %80 : vector<21xf32> to vector<21x1xf32>
    %cst_25 = arith.constant 5.512500e+01 : f32
    %82 = vector.broadcast %cst_25 : f32 to vector<21x1xf32>
    %83 = arith.mulf %81, %82 : vector<21x1xf32>
    %c0_26 = arith.constant 0 : index
    %c0_27 = arith.constant 0 : index
    %c0_28 = arith.constant 0 : index
    %84 = vector.load %arg2[%c0_26, %c0_27, %c0_28] : memref<1x10x512xf32, #tpu.memory_space<vmem>>, vector<1x10x512xf32>
    %85 = vector.shape_cast %84 : vector<1x10x512xf32> to vector<10x512xf32>
    %c0_29 = arith.constant 0 : index
    %c0_30 = arith.constant 0 : index
    %86 = vector.load %arg4[%c0_29, %c0_30] : memref<512x2048xf32, #tpu.memory_space<vmem>>, vector<512x2048xf32>
    %cst_31 = arith.constant dense<0.000000e+00> : vector<10x2048xf32>
    %87 = tpu.matmul %85, %86, %cst_31 {dimension_numbers = #tpu.dot_dimension_numbers<[1], [0], [0], [1], [0, 0, 1, 1], [], []>} : vector<10x512xf32>, vector<512x2048xf32>, vector<10x2048xf32> -> vector<10x2048xf32>
    %88 = vector.extract_strided_slice %87 {offsets = [0, 0], sizes = [9, 512], strides = [1, 1]} : vector<10x2048xf32> to vector<9x512xf32>
    %89 = vector.extract_strided_slice %87 {offsets = [1, 1024], sizes = [9, 512], strides = [1, 1]} : vector<10x2048xf32> to vector<9x512xf32>
    %90 = arith.addf %88, %89 : vector<9x512xf32>
    %91 = vector.extract_strided_slice %87 {offsets = [0, 512], sizes = [9, 512], strides = [1, 1]} : vector<10x2048xf32> to vector<9x512xf32>
    %92 = vector.extract_strided_slice %87 {offsets = [1, 1536], sizes = [9, 512], strides = [1, 1]} : vector<10x2048xf32> to vector<9x512xf32>
    %93 = arith.addf %91, %92 : vector<9x512xf32>
    %94 = arith.mulf %90, %90 : vector<9x512xf32>
    %95 = arith.mulf %93, %93 : vector<9x512xf32>
    %96 = arith.addf %94, %95 : vector<9x512xf32>
    %c0_32 = arith.constant 0 : index
    %c0_33 = arith.constant 0 : index
    %97 = vector.load %arg5[%c0_32, %c0_33] : memref<512x128xf32, #tpu.memory_space<vmem>>, vector<512x128xf32>
    %cst_34 = arith.constant dense<0.000000e+00> : vector<9x128xf32>
    %98 = tpu.matmul %96, %97, %cst_34 {dimension_numbers = #tpu.dot_dimension_numbers<[1], [0], [0], [1], [0, 0, 1, 1], [], []>} : vector<9x512xf32>, vector<512x128xf32>, vector<9x128xf32> -> vector<9x128xf32>
    %cst_35 = arith.constant 1.000000e-10 : f32
    %99 = vector.broadcast %cst_35 : f32 to vector<9x128xf32>
    %100 = arith.maximumf %98, %99 : vector<9x128xf32>
    %101 = math.log %100 : vector<9x128xf32>
    %cst_36 = arith.constant 0.434294492 : f32
    %102 = vector.broadcast %cst_36 : f32 to vector<9x128xf32>
    %103 = arith.mulf %101, %102 : vector<9x128xf32>
    %cst_37 = arith.constant 1.000000e+01 : f32
    %104 = vector.broadcast %cst_37 : f32 to vector<9x128xf32>
    %105 = arith.mulf %104, %103 : vector<9x128xf32>
    %106 = tpu.iota {dimensions = array<i32: 0>} : vector<9x1xi32>
    %cst_38 = arith.constant -1.000000e+30 : f32
    %107 = vector.broadcast %cst_38 : f32 to vector<9x1xf32>
    %cst_39 = arith.constant dense<0xFF800000> : vector<9xf32>
    %108 = vector.multi_reduction <maximumf>, %105, %cst_39 [1] : vector<9x128xf32> to vector<9xf32>
    %109 = vector.shape_cast %108 : vector<9xf32> to vector<9x1xf32>
    %cst_40 = arith.constant dense<0xFF800000> : vector<1xf32>
    %110 = vector.multi_reduction <maximumf>, %109, %cst_40 [0] : vector<9x1xf32> to vector<1xf32>
    %111 = vector.shape_cast %110 : vector<1xf32> to vector<1x1xf32>
    %c0_i32 = arith.constant 0 : i32
    %112 = vector.broadcast %c0_i32 : i32 to vector<9x1xi32>
    %113 = arith.cmpi sge, %106, %112 : vector<9x1xi32>
    %c9_i32 = arith.constant 9 : i32
    %114 = vector.broadcast %c9_i32 : i32 to vector<9x1xi32>
    %115 = arith.cmpi slt, %106, %114 : vector<9x1xi32>
    %116 = arith.andi %113, %115 : vector<9x1xi1>
    %cst_41 = arith.constant 8.000000e+01 : f32
    %117 = vector.broadcast %cst_41 : f32 to vector<1x1xf32>
    %118 = arith.subf %111, %117 : vector<1x1xf32>
    %119 = vector.shape_cast %118 : vector<1x1xf32> to vector<1x1xf32>
    %120 = vector.broadcast %119 : vector<1x1xf32> to vector<9x1xf32>
    %121 = arith.select %116, %120, %107 : vector<9x1xi1>, vector<9x1xf32>
    %122 = vector.broadcast %121 : vector<9x1xf32> to vector<9x128xf32>
    %123 = arith.maximumf %105, %122 : vector<9x128xf32>
    %c0_42 = arith.constant 0 : index
    %c0_43 = arith.constant 0 : index
    %124 = vector.load %arg6[%c0_42, %c0_43] : memref<128x13xf32, #tpu.memory_space<vmem>>, vector<128x13xf32>
    %cst_44 = arith.constant dense<0.000000e+00> : vector<9x13xf32>
    %125 = tpu.matmul %123, %124, %cst_44 {dimension_numbers = #tpu.dot_dimension_numbers<[1], [0], [0], [1], [0, 0, 1, 1], [], []>} : vector<9x128xf32>, vector<128x13xf32>, vector<9x13xf32> -> vector<9x13xf32>
    %cst_45 = arith.constant dense<0.000000e+00> : vector<1xf32>
    %126 = vector.multi_reduction <add>, %25, %cst_45 [0] : vector<21x1xf32> to vector<1xf32>
    %127 = vector.shape_cast %126 : vector<1xf32> to vector<1x1xf32>
    %cst_46 = arith.constant 2.100000e+01 : f32
    %128 = vector.broadcast %cst_46 : f32 to vector<1x1xf32>
    %129 = arith.divf %127, %128 : vector<1x1xf32>
    %130 = vector.broadcast %129 : vector<1x1xf32> to vector<21x1xf32>
    %131 = arith.subf %25, %130 : vector<21x1xf32>
    %132 = arith.mulf %131, %131 : vector<21x1xf32>
    %cst_47 = arith.constant dense<0.000000e+00> : vector<1xf32>
    %133 = vector.multi_reduction <add>, %132, %cst_47 [0] : vector<21x1xf32> to vector<1xf32>
    %134 = vector.shape_cast %133 : vector<1xf32> to vector<1x1xf32>
    %cst_48 = arith.constant 2.000000e+01 : f32
    %135 = vector.broadcast %cst_48 : f32 to vector<1x1xf32>
    %136 = arith.divf %134, %135 : vector<1x1xf32>
    %137 = math.sqrt %136 : vector<1x1xf32>
    %cst_49 = arith.constant dense<0.000000e+00> : vector<1xf32>
    %138 = vector.multi_reduction <add>, %83, %cst_49 [0] : vector<21x1xf32> to vector<1xf32>
    %139 = vector.shape_cast %138 : vector<1xf32> to vector<1x1xf32>
    %cst_50 = arith.constant 2.100000e+01 : f32
    %140 = vector.broadcast %cst_50 : f32 to vector<1x1xf32>
    %141 = arith.divf %139, %140 : vector<1x1xf32>
    %142 = vector.broadcast %141 : vector<1x1xf32> to vector<21x1xf32>
    %143 = arith.subf %83, %142 : vector<21x1xf32>
    %144 = arith.mulf %143, %143 : vector<21x1xf32>
    %cst_51 = arith.constant dense<0.000000e+00> : vector<1xf32>
    %145 = vector.multi_reduction <add>, %144, %cst_51 [0] : vector<21x1xf32> to vector<1xf32>
    %146 = vector.shape_cast %145 : vector<1xf32> to vector<1x1xf32>
    %cst_52 = arith.constant 2.000000e+01 : f32
    %147 = vector.broadcast %cst_52 : f32 to vector<1x1xf32>
    %148 = arith.divf %146, %147 : vector<1x1xf32>
    %149 = math.sqrt %148 : vector<1x1xf32>
    %cst_53 = arith.constant dense<0.000000e+00> : vector<13xf32>
    %150 = vector.multi_reduction <add>, %125, %cst_53 [0] : vector<9x13xf32> to vector<13xf32>
    %151 = vector.shape_cast %150 : vector<13xf32> to vector<1x13xf32>
    %cst_54 = arith.constant 9.000000e+00 : f32
    %152 = vector.broadcast %cst_54 : f32 to vector<1x13xf32>
    %153 = arith.divf %151, %152 : vector<1x13xf32>
    %154 = vector.broadcast %153 : vector<1x13xf32> to vector<9x13xf32>
    %155 = arith.subf %125, %154 : vector<9x13xf32>
    %156 = arith.mulf %155, %155 : vector<9x13xf32>
    %cst_55 = arith.constant dense<0.000000e+00> : vector<13xf32>
    %157 = vector.multi_reduction <add>, %156, %cst_55 [0] : vector<9x13xf32> to vector<13xf32>
    %158 = vector.shape_cast %157 : vector<13xf32> to vector<1x13xf32>
    %cst_56 = arith.constant 8.000000e+00 : f32
    %159 = vector.broadcast %cst_56 : f32 to vector<1x13xf32>
    %160 = arith.divf %158, %159 : vector<1x13xf32>
    %161 = math.sqrt %160 : vector<1x13xf32>
    %c0_57 = arith.constant 0 : index
    %c0_58 = arith.constant 0 : index
    %c0_59 = arith.constant 0 : index
    %162 = vector.load %arg7[%c0_57, %c0_58, %c0_59] : memref<1x1x30xf32, #tpu.memory_space<vmem>>, vector<1x1x1xf32>
    %163 = vector.shape_cast %162 : vector<1x1x1xf32> to vector<1x1xf32>
    %164 = vector.shape_cast %129 : vector<1x1xf32> to vector<1x1x1xf32>
    tpu.vector_store %arg7[%c0_57, %c0_58, %c0_59], %164 {strides = array<i32>} : memref<1x1x30xf32, #tpu.memory_space<vmem>>, vector<1x1x1xf32>,
    %c0_60 = arith.constant 0 : index
    %c0_61 = arith.constant 0 : index
    %c1 = arith.constant 1 : index
    %165 = vector.load %arg7[%c0_60, %c0_61, %c1] : memref<1x1x30xf32, #tpu.memory_space<vmem>>, vector<1x1x1xf32>
    %166 = vector.shape_cast %165 : vector<1x1x1xf32> to vector<1x1xf32>
    %167 = vector.shape_cast %137 : vector<1x1xf32> to vector<1x1x1xf32>
    tpu.vector_store %arg7[%c0_60, %c0_61, %c1], %167 {strides = array<i32>} : memref<1x1x30xf32, #tpu.memory_space<vmem>>, vector<1x1x1xf32>,
    %c0_62 = arith.constant 0 : index
    %c0_63 = arith.constant 0 : index
    %c2 = arith.constant 2 : index
    %168 = vector.load %arg7[%c0_62, %c0_63, %c2] : memref<1x1x30xf32, #tpu.memory_space<vmem>>, vector<1x1x1xf32>
    %169 = vector.shape_cast %168 : vector<1x1x1xf32> to vector<1x1xf32>
    %170 = vector.shape_cast %141 : vector<1x1xf32> to vector<1x1x1xf32>
    tpu.vector_store %arg7[%c0_62, %c0_63, %c2], %170 {strides = array<i32>} : memref<1x1x30xf32, #tpu.memory_space<vmem>>, vector<1x1x1xf32>,
    %c0_64 = arith.constant 0 : index
    %c0_65 = arith.constant 0 : index
    %c3 = arith.constant 3 : index
    %171 = vector.load %arg7[%c0_64, %c0_65, %c3] : memref<1x1x30xf32, #tpu.memory_space<vmem>>, vector<1x1x1xf32>
    %172 = vector.shape_cast %171 : vector<1x1x1xf32> to vector<1x1xf32>
    %173 = vector.shape_cast %149 : vector<1x1xf32> to vector<1x1x1xf32>
    tpu.vector_store %arg7[%c0_64, %c0_65, %c3], %173 {strides = array<i32>} : memref<1x1x30xf32, #tpu.memory_space<vmem>>, vector<1x1x1xf32>,
    %c0_66 = arith.constant 0 : index
    %c0_67 = arith.constant 0 : index
    %c4 = arith.constant 4 : index
    %174 = vector.load %arg7[%c0_66, %c0_67, %c4] : memref<1x1x30xf32, #tpu.memory_space<vmem>>, vector<1x1x13xf32>
    %175 = vector.shape_cast %174 : vector<1x1x13xf32> to vector<1x13xf32>
    %176 = vector.shape_cast %153 : vector<1x13xf32> to vector<1x1x13xf32>
    tpu.vector_store %arg7[%c0_66, %c0_67, %c4], %176 {strides = array<i32>} : memref<1x1x30xf32, #tpu.memory_space<vmem>>, vector<1x1x13xf32>,
    %c0_68 = arith.constant 0 : index
    %c0_69 = arith.constant 0 : index
    %c17 = arith.constant 17 : index
    %177 = vector.load %arg7[%c0_68, %c0_69, %c17] : memref<1x1x30xf32, #tpu.memory_space<vmem>>, vector<1x1x13xf32>
    %178 = vector.shape_cast %177 : vector<1x1x13xf32> to vector<1x13xf32>
    %179 = vector.shape_cast %161 : vector<1x13xf32> to vector<1x1x13xf32>
    tpu.vector_store %arg7[%c0_68, %c0_69, %c17], %179 {strides = array<i32>} : memref<1x1x30xf32, #tpu.memory_space<vmem>>, vector<1x1x13xf32>,
    return
  }
  func.func @transform_0(%arg0: i32) -> (i32, i32, i32) {
    %c0_i32 = arith.constant 0 : i32
    %c0_i32_0 = arith.constant 0 : i32
    %c0_i32_1 = arith.constant 0 : i32
    return %arg0, %c0_i32, %c0_i32_0 : i32, i32, i32
  }
  func.func @transform_1(%arg0: i32) -> (i32, i32, i32) {
    %c0_i32 = arith.constant 0 : i32
    %c0_i32_0 = arith.constant 0 : i32
    %c0_i32_1 = arith.constant 0 : i32
    return %arg0, %c0_i32, %c0_i32_0 : i32, i32, i32
  }
  func.func @transform_2(%arg0: i32) -> (i32, i32) {
    %c0_i32 = arith.constant 0 : i32
    %c0_i32_0 = arith.constant 0 : i32
    %c0_i32_1 = arith.constant 0 : i32
    return %c0_i32, %c0_i32_0 : i32, i32
  }
  func.func @transform_3(%arg0: i32) -> (i32, i32) {
    %c0_i32 = arith.constant 0 : i32
    %c0_i32_0 = arith.constant 0 : i32
    %c0_i32_1 = arith.constant 0 : i32
    return %c0_i32, %c0_i32_0 : i32, i32
  }
  func.func @transform_4(%arg0: i32) -> (i32, i32) {
    %c0_i32 = arith.constant 0 : i32
    %c0_i32_0 = arith.constant 0 : i32
    %c0_i32_1 = arith.constant 0 : i32
    return %c0_i32, %c0_i32_0 : i32, i32
  }
  func.func @transform_5(%arg0: i32) -> (i32, i32) {
    %c0_i32 = arith.constant 0 : i32
    %c0_i32_0 = arith.constant 0 : i32
    %c0_i32_1 = arith.constant 0 : i32
    return %c0_i32, %c0_i32_0 : i32, i32
  }
  func.func @transform_6(%arg0: i32) -> (i32, i32, i32) {
    %c0_i32 = arith.constant 0 : i32
    %c0_i32_0 = arith.constant 0 : i32
    %c0_i32_1 = arith.constant 0 : i32
    return %arg0, %c0_i32, %c0_i32_0 : i32, i32, i32
  }
}

</mosaic_0001>

<bundles_post_ra>
// kernel: reverse
= control target key start
LH: loop header
LB: loop body
LE: loop exit
PB: predicated region body
PF: predicated region fallthrough
CT: control target
= control target key end

     0   :  { %v2_v0 = vlaneseq  ;;  %s305_s0 = inlined_call_operand.vmem [shape: bf16[2,256], index: 0, kind: input, shape index: {}]   ;;  %s306_s1 = inlined_call_operand.vmem [shape: bf16[2,256], index: 1, kind: output, shape index: {}]  }
   0x2   :  { %v3_v1 = vsub.s32 127, %v2_v0 }
   0x4   :  { %4 = vset.pattern.permute.xlu0 %v3_v1 }
   0x5   :  { %s265_s6 = smov 0   ;;  %s267_s7 = smov 0  }
   0x6   :  { %s269_s8 = smov 0  }
   0x7 LB: > { %s199_s9 = sadd.s32 4294967295, %s252_s8   ;;  %s19_s10 = sadd.s32 1, %s248_s7  ;;  %s252_s8 = sphi %s269_s8, %s10_s8   ;;  %s248_s7 = sphi %s267_s7, %s308_s7   ;;  %s244_s6 = sphi %s265_s6, %s307_s6  }
   0x8   : > { %p20_p0 = scmp.ge.s32.totalorder %s19_s10, 2  ;;  %p201_p1 = scmp.ge.s32.totalorder %s252_s8, 2 }
   0x9   : > { %s38_s11 = sand.u32 (!%p201_p1), 1, %s252_s8   ;;  %s40_s12 = ssub.s32 (!%p201_p1), 1, %s248_s7 }
   0xa   : > { %s310_s10 = smov (%p20_p0, %s19_s10), 0  ;;  %36 = sbr.rel (%p201_p1) target bundleno = 17 (0x11), region = 16 }
   0xb   : > { %s43_s15 = scalar_lea.vmem (!%p201_p1), %s305_s0, %s40_s12  ;;  %s39_s16 = scalar_lea.vmem (!%p201_p1), [#allocation1], %s38_s11 }
   0xc   : > { %v59_v2 = vld [vmem:[%s43_s15] sm:$0x1] (!%p201_p1) }
   0xd   : > { %60 = vst [vmem:[%s39_s16] sm:$0x1] (!%p201_p1), %v59_v2 }
  0x11 PF: > { %p202_p2 = scmp.ge.s32.totalorder %s252_s8, 1  ;;  %p76_p3 = scmp.lt.s32.totalorder %s252_s8, 3 }
  0x13   : > { %p77_p4 = pnand %p202_p2, %p76_p3 }
  0x14   : > { %s86_s17 = sand.u32 (!%p77_p4), 1, %s199_s9   ;;  %v254_v8 = vmov (!%p77_p4), 0.0   ;;  %s125_s22 = scalar_lea.vmem (!%p77_p4), %s306_s1, %s244_s6 }
  0x15   : > { %80 = sbr.rel (%p77_p4) target bundleno = 180 (0xb4), region = 50  ;;  %s87_s18 = scalar_lea.vmem (!%p77_p4), [#allocation1], %s86_s17 }
  0x16   : > { %v103_v3 = vld [vmem:[%s87_s18] sm:$0x1] (!%p77_p4)  ;;  %s90_s19 = scalar_lea.vmem (!%p77_p4), [#allocation3], %s86_s17 }
  0x17   : > { %v104_v4 = vunpack.c.l.bf16 (!%p77_p4), %v103_v3 }
  0x19   : > { %106 = vst [vmem:[#allocation0] sm:$0x3] (!%p77_p4), %v104_v4 }
  0x20   : > { %v108_v5 = vld [vmem:[#allocation0] sm:$0xff] }
  0x21   : > { %109 = vperm.xlu0 %4, %v108_v5  }
  0xa0   : > { %v110_v6 = vpop.permute.xlu0 %109 }
  0xa1   : > { %111 = vst [vmem:[#allocation2] sm:$0xff] %v110_v6 }
  0xa8   : > { %v116_v7 = vld [vmem:[#allocation2] sm:$0x3] }
  0xa9   : > { %v117_v9 = vpack.c.bf16 %v254_v8, %v116_v7 }
  0xab   : > { %119 = vst [vmem:[%s90_s19] sm:$0x1] %v117_v9 }
  0xb2   : > { %v141_v10 = vld [vmem:[%s90_s19] sm:$0x1] }
  0xb3   : > { %142 = vst [vmem:[%s125_s22] sm:$0x1] %v141_v10 }
  0xb4 PF: > { %s10_s8 = sadd.s32 1, %s252_s8   ;;  %s307_s6 = smov %s248_s7 }
  0xb5   : > { %p7_p5 = scmp.ge.s32.totalorder %s10_s8, 4   ;;  %s308_s7 = smov %s310_s10 }
  0xb7   :  { %9 = sbr.rel (!%p7_p5) target bundleno = 7 (0x7), region = 110 }

// kernel: perceptual_features.1
= control target key start
LH: loop header
LB: loop body
LE: loop exit
PB: predicated region body
PF: predicated region fallthrough
CT: control target
= control target key end

     0   :  { %11 = vsyncpa [#allocation3], 0  ;;  %s7217_s0 = inlined_call_operand.vmem [shape: bf16[2,22,200], index: 0, kind: input, shape index: {}]   ;;  %s7218_s1 = inlined_call_operand.vmem [shape: f32[2,10,512], index: 1, kind: input, shape index: {}]   ;;  %s7219_s2 = inlined_call_operand.hbm [shape: bf16[200,1024], index: 2, kind: input, shape index: {}]   ;;  %s7220_s3 = inlined_call_operand.hbm [shape: f32[512,2048], index: 3, kind: input, shape index: {}]   ;;  %s7221_s4 = inlined_call_operand.hbm [shape: f32[512,128], index: 4, kind: input, shape index: {}]   ;;  %s7222_s5 = inlined_call_operand.hbm [shape: f32[128,13], index: 5, kind: input, shape index: {}]   ;;  %s7223_s6 = inlined_call_operand.vmem [shape: f32[2,1,30], index: 6, kind: output, shape index: {}]  }
   0x1   :  { %12 = vsyncpa [#allocation5], 0 }
   0x2   :  { %13 = vsyncpa [#allocation8], 0  ;;  %s6288_s21 = smov 0  }
   0x3 LB: > { %s6235_s22 = smov [#allocation4]   ;;  %s6294_s24 = sadd.s32 4294967295, %s6233_s21   ;;  %s6233_s21 = sphi %s6288_s21, %s19_s21  }
   0x4   : > { %s211_s23 = sshll.u32 %s6235_s22, 4  ;;  %p4549_p0 = scmp.ge.s32.totalorder %s6233_s21, 1  ;;  %s6299_s23 = int_to_ptr.vmem [resolvable:$true] %s211_s23 }
   0x5   : > { %p186_p1 = scmp.lt.s32.totalorder %s6233_s21, 3  ;;  %p7224_p2 = scmp.eq.s32.totalorder %s6294_s24, 0 }
   0x6   : > { %s6236_s26 = smov [#allocation2]   ;;  %s6237_s29 = smov [#allocation6]  }
   0x7   : > { %p6301_p3 = pnand %p4549_p0, %p186_p1  ;;  %s198_s27 = sshll.u32 %s6236_s26, 4  ;;  %s6307_s27 = int_to_ptr.vmem [resolvable:$true] %s198_s27 }
   0x8   : > { %s6315_s30 = sshll.u32 %s6237_s29, 4  ;;  %s6103_s9 = scalar_lea.hbm %s7220_s3, 131072  ;;  %s225_s30 = int_to_ptr.vmem [resolvable:$true] %s6315_s30 }
   0x9   : > { %s7226_s25 = scalar_select %p6301_p3, 1, 0 }
   0xa   : > { %p5991_p4 = pneg %p6301_p3  ;;  %p6104_p6 = scmp.ne.s32.totalorder %s7220_s3, %s6103_s9 }
   0xb   : > { %p6110_p10 = scmp.lt.u32.totalorder %s6103_s9, %s7220_s3 }
   0xc   : > { %p6311_p5 = pnand %p7224_p2, %p5991_p4 }
   0xe   : > { %p6325_p7 = pneg %p6311_p5 }
  0x10   : > { %p6106_p8 = pnand %p6325_p7, %p6104_p6 }
  0x12   : > { %p6107_p9 = pneg %p6106_p8 }
  0x14   : > { %p6112_p11 = pnand %p6110_p10, %p6107_p9 }
  0x16   : > { %6115 = shalt.err (!%p6112_p11)
}
  0x17   : > { %s6116_s15 = scalar_lea.vmem %s6299_s23, 131072  ;;  %p6124_p1 = scmp.lt.s32.totalorder %s6299_s23, %s6299_s23 }
  0x18   : > { %p6117_p12 = scmp.ne.s32.totalorder %s6299_s23, %s6116_s15  ;;  %p6125_p4 = scmp.lt.s32.totalorder %s6116_s15, %s6116_s15 }
  0x1a   : > { %p6119_p13 = pnand %p6117_p12, %p6325_p7  ;;  %p6126_p6 = por %p6125_p4, %p6124_p1 }
  0x1c   : > { %p6120_p0 = pneg %p6119_p13 }
  0x1e   : > { %p6127_p8 = pnand %p6126_p6, %p6120_p0 }
  0x20   : > { %6130 = shalt.err (!%p6127_p8)
}
  0x21   : > { %s6238_s16 = smov 2048   ;;  %s6239_s17 = smov 128  }
  0x22   : > { %5997 = dma.hbm_to_vmem [thread:$0]  (!%p6311_p5), %s7220_s3, 131072, %s6299_s23, [#allocation5], %s6238_s16, %s6238_s16, %s6239_s17  }
  0x23   : > { %s6131_s26 = scalar_lea.hbm %s7219_s2, 12800 }
  0x24   : > { %p6132_p9 = scmp.ne.s32.totalorder %s7219_s2, %s6131_s26  ;;  %p6138_p12 = scmp.lt.u32.totalorder %s6131_s26, %s7219_s2 }
  0x26   : > { %p6134_p10 = pnand %p6132_p9, %p6325_p7 }
  0x28   : > { %p6135_p11 = pneg %p6134_p10 }
  0x2a   : > { %p6140_p13 = pnand %p6138_p12, %p6135_p11 }
  0x2c   : > { %6143 = shalt.err (!%p6140_p13)
}
  0x2d   : > { %s6144_s23 = scalar_lea.vmem %s6307_s27, 12800  ;;  %p6152_p6 = scmp.lt.s32.totalorder %s6307_s27, %s6307_s27 }
  0x2e   : > { %p6145_p0 = scmp.ne.s32.totalorder %s6307_s27, %s6144_s23  ;;  %p6153_p8 = scmp.lt.s32.totalorder %s6144_s23, %s6144_s23 }
  0x30   : > { %p6147_p1 = pnand %p6145_p0, %p6325_p7  ;;  %p6154_p9 = por %p6153_p8, %p6152_p6 }
  0x32   : > { %p6148_p4 = pneg %p6147_p1 }
  0x34   : > { %p6155_p10 = pnand %p6154_p9, %p6148_p4 }
  0x36   : > { %6158 = shalt.err (!%p6155_p10)
}
  0x37   : > { %s6240_s10 = smov 512   ;;  %s6241_s11 = smov 32  }
  0x38   : > { %5994 = dma.hbm_to_vmem [thread:$0]  (!%p6311_p5), %s7219_s2, 12800, %s6307_s27, [#allocation3], %s6240_s10, %s6240_s10, %s6241_s11  }
  0x39   : > { %s6159_s18 = scalar_lea.hbm %s7221_s4, 8192 }
  0x3a   : > { %p6160_p11 = scmp.ne.s32.totalorder %s7221_s4, %s6159_s18  ;;  %p6166_p0 = scmp.lt.u32.totalorder %s6159_s18, %s7221_s4 }
  0x3c   : > { %p6162_p12 = pnand %p6160_p11, %p6325_p7 }
  0x3e   : > { %p6163_p13 = pneg %p6162_p12 }
  0x40   : > { %p6168_p1 = pnand %p6166_p0, %p6163_p13 }
  0x42   : > { %6171 = shalt.err (!%p6168_p1)
}
  0x43   : > { %s6172_s29 = scalar_lea.vmem %s225_s30, 8192  ;;  %p6180_p9 = scmp.lt.s32.totalorder %s225_s30, %s225_s30 }
  0x44   : > { %p6173_p4 = scmp.ne.s32.totalorder %s225_s30, %s6172_s29  ;;  %p6181_p10 = scmp.lt.s32.totalorder %s6172_s29, %s6172_s29 }
  0x46   : > { %p6175_p6 = pnand %p6173_p4, %p6325_p7  ;;  %p6182_p2 = por %p6181_p10, %p6180_p9 }
  0x48   : > { %p6176_p8 = pneg %p6175_p6 }
  0x4a   : > { %p6183_p3 = pnand %p6182_p2, %p6176_p8 }
  0x4c   : > { %6186 = shalt.err (!%p6183_p3)
}
  0x4d   : > { %s6242_s27 = smov 8   ;;  %s6243_s9 = smov [#allocation7]  }
  0x4e   : > { %6000 = dma.hbm_to_vmem [thread:$0]  (!%p6311_p5), %s7221_s4, 8192, %s225_s30, [#allocation5], %s6239_s17, %s6239_s17, %s6242_s27  }
  0x4f   : > { %s237_s23 = sshll.u32 %s6243_s9, 4  ;;  %s6187_s13 = scalar_lea.hbm %s7222_s5, 2048  ;;  %s238_s23 = int_to_ptr.vmem [resolvable:$true] %s237_s23 }
  0x50   : > { %p6188_p2 = scmp.ne.s32.totalorder %s7222_s5, %s6187_s13  ;;  %p6194_p12 = scmp.lt.u32.totalorder %s6187_s13, %s7222_s5 }
  0x52   : > { %p6190_p3 = pnand %p6188_p2, %p6325_p7 }
  0x54   : > { %p6191_p11 = pneg %p6190_p3 }
  0x56   : > { %p6196_p13 = pnand %p6194_p12, %p6191_p11 }
  0x58   : > { %6199 = shalt.err (!%p6196_p13)
}
  0x59   : > { %s6200_s30 = scalar_lea.vmem %s238_s23, 2048  ;;  %p6208_p6 = scmp.lt.s32.totalorder %s238_s23, %s238_s23 }
  0x5a   : > { %p6201_p0 = scmp.ne.s32.totalorder %s238_s23, %s6200_s30  ;;  %p6209_p8 = scmp.lt.s32.totalorder %s6200_s30, %s6200_s30 }
  0x5c   : > { %p6203_p1 = pnand %p6201_p0, %p6325_p7  ;;  %p6210_p9 = por %p6209_p8, %p6208_p6 }
  0x5e   : > { %p6204_p4 = pneg %p6203_p1 }
  0x60   : > { %p6211_p10 = pnand %p6210_p9, %p6204_p4 }
  0x62   : > { %6214 = shalt.err (!%p6211_p10)
}
  0x63   : > { %6003 = dma.hbm_to_vmem [thread:$0]  (!%p6311_p5), %s7222_s5, 2048, %s238_s23, [#allocation8], %s6239_s17, %s6239_s17, %s6242_s27  }
  0x64   : > { %p7229_p2 = scmp.ne.s32.totalorder %s7226_s25, 0 }
  0x65   : > { %p7230_p3 = scmp.eq.s32.totalorder (!%p7229_p2), %s6294_s24, 0 }
  0x66   : > { %269 = sbr.rel (%p7229_p2) target bundleno = 1941 (0x795), region = 44 }
  0x6d   : > { %6220 = dma.done.wait (%p7230_p3), [#allocation3], 12800   ;;  %p7231_p7 = pmov %p7230_p3 }
  0x6e   : > { %p7232_p11 = pmov %p7230_p3 }
  0x6f   : > { %6222 = vsyncadd (%p7231_p7), [#allocation3], 4294954496 }
  0x70   : > { %6224 = dma.done.wait (%p7232_p11), [#allocation5], 139264   ;;  %p7233_p12 = pmov %p7230_p3 }
  0x71   : > { %p7234_p13 = pmov %p7230_p3 }
  0x72   : > { %6226 = vsyncadd (%p7233_p12), [#allocation5], 4294828032 }
  0x73   : > { %6228 = dma.done.wait (%p7234_p13), [#allocation8], 2048   ;;  %p7235_p5 = pmov %p7230_p3 }
  0x74   : > { %v331_v0 = vld [vmem:[#allocation2] sm:$0xff]  ;;  %v332_v2 = vld [vmem:[#allocation2 + $0x8] sm:$0xff]  ;;  %p314_p0 = scmp.lt.s32.totalorder %s6294_s24, 1  ;;  %vm946_vm0 = vcmask 588800   ;;  %vm953_vm1 = vcmask 1043456   ;;  %vm1188_vm2 = vcmask 1046528  }
  0x75   : > { %6230 = vsyncadd (%p7235_p5), [#allocation8], 4294965248  ;;  %v335_v1 = vld [vmem:[#allocation2 + $0x20] sm:$0xff]  ;;  %v336_v4 = vld [vmem:[#allocation2 + $0x28] sm:$0xff]  ;;  %s6244_s7 = smov 1   ;;  %s6245_s8 = smov 2  }
  0x76   : > { %v4568_v3 = vcombine.high %v331_v0, %v335_v1  ;;  %v4567_v5 = vcombine.low %v331_v0, %v335_v1  ;;  %v339_v6 = vld [vmem:[#allocation2 + $0x40] sm:$0xff]  ;;  %v4570_v8 = vcombine.high %v332_v2, %v336_v4  ;;  %v4569_v9 = vcombine.low %v332_v2, %v336_v4  ;;  %v340_v11 = vld [vmem:[#allocation2 + $0x48] sm:$0xff]  ;;  %s7237_s24 = smov (!%p314_p0, %s6294_s24), 1  ;;  %s6246_s9 = smov 4  }
  0x77   : > { %v343_v7 = vld [vmem:[#allocation2 + $0x60] sm:$0xff]  ;;  %v344_v12 = vld [vmem:[#allocation2 + $0x68] sm:$0xff]  ;;  %s5974_s25 = smul.u32 24, %s7237_s24  ;;  %s4692_s22 = sshll.u32 %s7237_s24, 6 }
  0x78   : > { %v4576_v10 = vcombine.high %v339_v6, %v343_v7  ;;  %v347_v13 = vld [vmem:[#allocation2 + $0x80] sm:$0xff]  ;;  %978 = vmatprep.subr.bf16.mxu0 %v4568_v3  ;;  %v4578_v14 = vcombine.high %v340_v11, %v344_v12  ;;  %v348_v16 = vld [vmem:[#allocation2 + $0x88] sm:$0xff]  ;;  %1029 = vmatprep.subr.bf16.mxu1 %v4570_v8  ;;  %v4575_v18 = vcombine.low %v339_v6, %v343_v7  ;;  %s6482_s27 = scalar_lea.vmem %s7218_s1, %s4692_s22  ;;  %s6247_s23 = smov 8  }
  0x79   : > { %v351_v15 = vld [vmem:[#allocation2 + $0xa0] sm:$0xff]  ;;  %v352_v17 = vld [vmem:[#allocation2 + $0xa8] sm:$0xff]  ;;  %979 = vmatpush1.bf16.msra.mxu0 %v4567_v5  ;;  %1030 = vmatpush1.bf16.msra.mxu1 %v4569_v9  ;;  %v4577_v19 = vcombine.low %v340_v11, %v344_v12  ;;  %s6435_s17 = scalar_lea.vmem %s7217_s0, %s5974_s25  ;;  %s6248_s10 = smov 16  }
  0x7a   : > { %980 = vmatprep.subr.bf16.mxu0 %v4576_v10  ;;  %v4584_v20 = vcombine.high %v347_v13, %v351_v15  ;;  %1031 = vmatprep.subr.bf16.mxu1 %v4578_v14  ;;  %v4586_v21 = vcombine.high %v348_v16, %v352_v17  ;;  %v355_v22 = vld [vmem:[#allocation2 + $0xc0] sm:$0xff]  ;;  %v356_v24 = vld [vmem:[#allocation2 + $0xc8] sm:$0xff]  ;;  %v4583_v26 = vcombine.low %v347_v13, %v351_v15  ;;  %s6249_s11 = smov 32   ;;  %s6250_s13 = smov 64  }
  0x7b   : > { %v359_v23 = vld [vmem:[#allocation2 + $0xe0] sm:$0xff]  ;;  %v360_v25 = vld [vmem:[#allocation2 + $0xe8] sm:$0xff]  ;;  %v4585_v27 = vcombine.low %v348_v16, %v352_v17  ;;  %s6252_s14 = smov 17   ;;  %s7203_s18 = scalar_lea.vmem %s7223_s6, %s7237_s24 }
  0x7c   : > { %v4592_v28 = vcombine.high %v355_v22, %v359_v23  ;;  %v4594_v29 = vcombine.high %v356_v24, %v360_v25  ;;  %v363_v30 = vld [vmem:[#allocation2 + $0x100] sm:$0xff]  ;;  %v364_v32 = vld [vmem:[#allocation2 + $0x108] sm:$0xff]  ;;  %v4591_v34 = vcombine.low %v355_v22, %v359_v23  ;;  %v4593_v35 = vcombine.low %v356_v24, %v360_v25 }
  0x7d   : > { %981 = vmatpush1.bf16.msra.mxu0 %v4575_v18  ;;  %1032 = vmatpush1.bf16.msra.mxu1 %v4577_v19  ;;  %v367_v31 = vld [vmem:[#allocation2 + $0x120] sm:$0xff]  ;;  %v368_v33 = vld [vmem:[#allocation2 + $0x128] sm:$0xff] }
  0x7e   : > { %982 = vmatprep.subr.bf16.mxu0 %v4584_v20  ;;  %1033 = vmatprep.subr.bf16.mxu1 %v4586_v21  ;;  %v4600_v36 = vcombine.high %v363_v30, %v367_v31  ;;  %v4602_v37 = vcombine.high %v364_v32, %v368_v33  ;;  %v371_v38 = vld [vmem:[#allocation2 + $0x140] sm:$0xff]  ;;  %v372_v40 = vld [vmem:[#allocation2 + $0x148] sm:$0xff]  ;;  %v4599_v42 = vcombine.low %v363_v30, %v367_v31 }
  0x7f   : > { %v375_v39 = vld [vmem:[#allocation2 + $0x160] sm:$0xff]  ;;  %v376_v41 = vld [vmem:[#allocation2 + $0x168] sm:$0xff]  ;;  %v4601_v43 = vcombine.low %v364_v32, %v368_v33 }
  0x80   : > { %v4608_v44 = vcombine.high %v371_v38, %v375_v39  ;;  %v6438_v45 = vld [vmem:[%s6435_s17 + $0x4] ss:$8 sps:$4 sm:$0xff]   ;;  %v4610_v46 = vcombine.high %v372_v40, %v376_v41  ;;  %v4607_v51 = vcombine.low %v371_v38, %v375_v39  ;;  %v4609_v52 = vcombine.low %v372_v40, %v376_v41  ;;  %v333_v39 = vld [vmem:[#allocation2 + $0x10] sm:$0xff]  ;;  %v334_v41 = vld [vmem:[#allocation2 + $0x18] sm:$0xff] }
  0x81   : > { %983 = vmatpush1.bf16.msra.mxu0 %v4583_v26  ;;  %1034 = vmatpush1.bf16.msra.mxu1 %v4585_v27  ;;  %v379_v47 = vld [vmem:[#allocation2 + $0x180] sm:$0xff]  ;;  %v380_v49 = vld [vmem:[#allocation2 + $0x188] sm:$0xff]  ;;  %v337_v40 = vld [vmem:[#allocation2 + $0x30] sm:$0xff] }
  0x82   : > { %984 = vmatprep.subr.bf16.mxu0 %v4592_v28  ;;  %1035 = vmatprep.subr.bf16.mxu1 %v4594_v29  ;;  %v383_v48 = vld [vmem:[#allocation2 + $0x1a0] sm:$0xff]  ;;  %v384_v50 = vld [vmem:[#allocation2 + $0x1a8] sm:$0xff] }
  0x83   : > { %4672 = vmatprep.mubr.msk.bf16.mxu0 %vm946_vm0, %v6438_v45  ;;  %4675 = vmatprep.mubr.msk.bf16.mxu1 %vm946_vm0, %v6438_v45  ;;  %v4616_v53 = vcombine.high %v379_v47, %v383_v48  ;;  %v4618_v54 = vcombine.high %v380_v49, %v384_v50  ;;  %v387_v55 = vld [vmem:[#allocation2 + $0x1c0] sm:$0xff]  ;;  %v388_v57 = vld [vmem:[#allocation2 + $0x1c8] sm:$0xff]  ;;  %v4615_v59 = vcombine.low %v379_v47, %v383_v48 }
  0x84   : > { %v391_v56 = vld [vmem:[#allocation2 + $0x1e0] sm:$0xff]  ;;  %v392_v58 = vld [vmem:[#allocation2 + $0x1e8] sm:$0xff]  ;;  %v4617_v60 = vcombine.low %v380_v49, %v384_v50  ;;  %v341_v49 = vld [vmem:[#allocation2 + $0x50] sm:$0xff] }
  0x85   : > { %985 = vmatpush1.bf16.msra.mxu0 %v4591_v34  ;;  %1036 = vmatpush1.bf16.msra.mxu1 %v4593_v35  ;;  %v4624_v61 = vcombine.high %v387_v55, %v391_v56  ;;  %v4626_v62 = vcombine.high %v388_v57, %v392_v58  ;;  %v395_v63 = vld [vmem:[#allocation2 + $0x200] sm:$0xff]  ;;  %v396_v1 = vld [vmem:[#allocation2 + $0x208] sm:$0xff]  ;;  %v4623_v3 = vcombine.low %v387_v55, %v391_v56  ;;  %v345_v50 = vld [vmem:[#allocation2 + $0x70] sm:$0xff] }
  0x86   : > { %986 = vmatprep.subr.bf16.mxu0 %v4600_v36  ;;  %1037 = vmatprep.subr.bf16.mxu1 %v4602_v37  ;;  %v399_v0 = vld [vmem:[#allocation2 + $0x220] sm:$0xff]  ;;  %v400_v2 = vld [vmem:[#allocation2 + $0x228] sm:$0xff]  ;;  %v4625_v4 = vcombine.low %v388_v57, %v392_v58  ;;  %v4580_v56 = vcombine.high %v341_v49, %v345_v50  ;;  %v349_v58 = vld [vmem:[#allocation2 + $0x90] sm:$0xff] }
  0x87   : > { %v4632_v5 = vcombine.high %v395_v63, %v399_v0  ;;  %v4634_v6 = vcombine.high %v396_v1, %v400_v2  ;;  %v403_v7 = vld [vmem:[#allocation2 + $0x240] sm:$0xff]  ;;  %v404_v9 = vld [vmem:[#allocation2 + $0x248] sm:$0xff]  ;;  %v4631_v11 = vcombine.low %v395_v63, %v399_v0  ;;  %v4633_v12 = vcombine.low %v396_v1, %v400_v2 }
  0x88   : > { %v407_v8 = vld [vmem:[#allocation2 + $0x260] sm:$0xff]  ;;  %v408_v10 = vld [vmem:[#allocation2 + $0x268] sm:$0xff]  ;;  %v4579_v63 = vcombine.low %v341_v49, %v345_v50 }
  0x89   : > { %987 = vmatpush1.bf16.msra.mxu0 %v4599_v42  ;;  %1038 = vmatpush1.bf16.msra.mxu1 %v4601_v43  ;;  %v4640_v13 = vcombine.high %v403_v7, %v407_v8  ;;  %v4642_v14 = vcombine.high %v404_v9, %v408_v10  ;;  %v411_v15 = vld [vmem:[#allocation2 + $0x280] sm:$0xff]  ;;  %v412_v17 = vld [vmem:[#allocation2 + $0x288] sm:$0xff]  ;;  %v4639_v19 = vcombine.low %v403_v7, %v407_v8  ;;  %v338_v42 = vld [vmem:[#allocation2 + $0x38] sm:$0xff] }
  0x8a   : > { %988 = vmatprep.subr.bf16.mxu0 %v4608_v44  ;;  %1039 = vmatprep.subr.bf16.mxu1 %v4610_v46  ;;  %v415_v16 = vld [vmem:[#allocation2 + $0x2a0] sm:$0xff]  ;;  %v416_v18 = vld [vmem:[#allocation2 + $0x2a8] sm:$0xff]  ;;  %v4641_v20 = vcombine.low %v404_v9, %v408_v10  ;;  %v4572_v44 = vcombine.high %v333_v39, %v337_v40  ;;  %v4574_v48 = vcombine.high %v334_v41, %v338_v42 }
  0x8b   : > { %v4648_v21 = vcombine.high %v411_v15, %v415_v16  ;;  %v4650_v22 = vcombine.high %v412_v17, %v416_v18  ;;  %v419_v23 = vld [vmem:[#allocation2 + $0x2c0] sm:$0xff]  ;;  %v420_v25 = vld [vmem:[#allocation2 + $0x2c8] sm:$0xff]  ;;  %v4647_v27 = vcombine.low %v411_v15, %v415_v16  ;;  %v4649_v28 = vcombine.low %v412_v17, %v416_v18  ;;  %v370_v15 = vld [vmem:[#allocation2 + $0x138] sm:$0xff] }
  0x8c   : > { %v423_v24 = vld [vmem:[#allocation2 + $0x2e0] sm:$0xff]  ;;  %v424_v26 = vld [vmem:[#allocation2 + $0x2e8] sm:$0xff]  ;;  %v4573_v55 = vcombine.low %v334_v41, %v338_v42 }
  0x8d   : > { %989 = vmatpush1.bf16.msra.mxu0 %v4607_v51  ;;  %1040 = vmatpush1.bf16.msra.mxu1 %v4609_v52  ;;  %v4656_v29 = vcombine.high %v419_v23, %v423_v24  ;;  %v4658_v30 = vcombine.high %v420_v25, %v424_v26  ;;  %v427_v31 = vld [vmem:[#allocation2 + $0x300] sm:$0xff]  ;;  %v428_v32 = vld [vmem:[#allocation2 + $0x308] sm:$0xff]  ;;  %v4655_v33 = vcombine.low %v419_v23, %v423_v24  ;;  %v342_v51 = vld [vmem:[#allocation2 + $0x58] sm:$0xff] }
  0x8e   : > { %990 = vmatprep.subr.bf16.mxu0 %v4616_v53  ;;  %1041 = vmatprep.subr.bf16.mxu1 %v4618_v54  ;;  %v4657_v34 = vcombine.low %v420_v25, %v424_v26  ;;  %v4664_v35 = vcombine.high %v427_v31, %v427_v31  ;;  %v4663_v36 = vcombine.low %v427_v31, %v427_v31  ;;  %v6449_v47 = vld [vmem:[%s6435_s17] ss:$8 sps:$4 sm:$0xff]   ;;  %v346_v52 = vld [vmem:[#allocation2 + $0x78] sm:$0xff]  ;;  %v330_v53 = vld [vmem:[%s6435_s17 + $0x10] sm:$0x77] }
  0x8f   : > { %v4666_v37 = vcombine.high %v428_v32, %v428_v32  ;;  %v4665_v38 = vcombine.low %v428_v32, %v428_v32  ;;  %v4571_v54 = vcombine.low %v333_v39, %v337_v40  ;;  %v4582_v57 = vcombine.high %v342_v51, %v346_v52  ;;  %v378_v23 = vld [vmem:[#allocation2 + $0x178] sm:$0xff] }
  0x90   : > { %v955_v43 = vsel %vm953_vm1, %v4663_v36, 0  ;;  %v4581_v0 = vcombine.low %v342_v51, %v346_v52  ;;  %v6460_v7 = vcombine.low %v330_v53, %v330_v53  ;;  %v386_v31 = vld [vmem:[#allocation2 + $0x1b8] sm:$0xff]  ;;  %v393_v36 = vld [vmem:[#allocation2 + $0x1f0] sm:$0xff] }
  0x91   : > { %991 = vmatpush1.bf16.msra.mxu0 %v4615_v59  ;;  %1042 = vmatpush1.bf16.msra.mxu1 %v4617_v60  ;;  %v961_v46 = vsel %vm953_vm1, %v4665_v38, 0  ;;  %v353_v59 = vld [vmem:[#allocation2 + $0xb0] sm:$0xff]  ;;  %v6452_v60 = vcombine.high %v330_v53, %v330_v53  ;;  %v394_v38 = vld [vmem:[#allocation2 + $0x1f8] sm:$0xff] }
  0x92   : > { %992 = vmatprep.subr.bf16.mxu0 %v4624_v61  ;;  %1043 = vmatprep.subr.bf16.mxu1 %v4626_v62  ;;  %v350_v61 = vld [vmem:[#allocation2 + $0x98] sm:$0xff]  ;;  %v4588_v1 = vcombine.high %v349_v58, %v353_v59  ;;  %v4587_v8 = vcombine.low %v349_v58, %v353_v59  ;;  %v405_v53 = vld [vmem:[#allocation2 + $0x250] sm:$0xff] }
  0x93   : > { %v354_v62 = vld [vmem:[#allocation2 + $0xb8] sm:$0xff] }
  0x94   : > { %v4590_v2 = vcombine.high %v350_v61, %v354_v62  ;;  %v4589_v9 = vcombine.low %v350_v61, %v354_v62  ;;  %v413_v62 = vld [vmem:[#allocation2 + $0x290] sm:$0xff] }
  0x95   : > { %993 = vmatpush1.bf16.msra.mxu0 %v4623_v3  ;;  %1044 = vmatpush1.bf16.msra.mxu1 %v4625_v4  ;;  %v357_v3 = vld [vmem:[#allocation2 + $0xd0] sm:$0xff] }
  0x96   : > { %994 = vmatprep.subr.bf16.mxu0 %v4632_v5  ;;  %1045 = vmatprep.subr.bf16.mxu1 %v4634_v6  ;;  %v361_v4 = vld [vmem:[#allocation2 + $0xf0] sm:$0xff]  ;;  %v358_v5 = vld [vmem:[#allocation2 + $0xd8] sm:$0xff] }
  0x97   : > { %v362_v6 = vld [vmem:[#allocation2 + $0xf8] sm:$0xff]  ;;  %v4596_v10 = vcombine.high %v357_v3, %v361_v4  ;;  %v4595_v16 = vcombine.low %v357_v3, %v361_v4 }
  0x98   : > { %v4597_v17 = vcombine.low %v358_v5, %v362_v6 }
  0x99   : > { %995 = vmatpush1.bf16.msra.mxu0 %v4631_v11  ;;  %1046 = vmatpush1.bf16.msra.mxu1 %v4633_v12  ;;  %v4598_v11 = vcombine.high %v358_v5, %v362_v6  ;;  %v365_v12 = vld [vmem:[#allocation2 + $0x110] sm:$0xff] }
  0x9a   : > { %996 = vmatprep.subr.bf16.mxu0 %v4640_v13  ;;  %1047 = vmatprep.subr.bf16.mxu1 %v4642_v14  ;;  %v369_v13 = vld [vmem:[#allocation2 + $0x130] sm:$0xff]  ;;  %v366_v14 = vld [vmem:[#allocation2 + $0x118] sm:$0xff] }
  0x9b   : > { %v4604_v18 = vcombine.high %v365_v12, %v369_v13  ;;  %v4603_v24 = vcombine.low %v365_v12, %v369_v13  ;;  %v4605_v25 = vcombine.low %v366_v14, %v370_v15  ;;  %v421_v6 = vld [vmem:[#allocation2 + $0x2d0] sm:$0xff] }
  0x9d   : > { %997 = vmatpush1.bf16.msra.mxu0 %v4639_v19  ;;  %1048 = vmatpush1.bf16.msra.mxu1 %v4641_v20  ;;  %v4606_v19 = vcombine.high %v366_v14, %v370_v15  ;;  %v373_v20 = vld [vmem:[#allocation2 + $0x150] sm:$0xff] }
  0x9e   : > { %998 = vmatprep.subr.bf16.mxu0 %v4648_v21  ;;  %1049 = vmatprep.subr.bf16.mxu1 %v4650_v22  ;;  %v377_v21 = vld [vmem:[#allocation2 + $0x170] sm:$0xff]  ;;  %v374_v22 = vld [vmem:[#allocation2 + $0x158] sm:$0xff] }
  0x9f   : > { %v4612_v26 = vcombine.high %v373_v20, %v377_v21  ;;  %v4611_v32 = vcombine.low %v373_v20, %v377_v21  ;;  %v429_v15 = vld [vmem:[#allocation2 + $0x310] sm:$0xff] }
  0xa0   : > { %v4667_v20 = vcombine.low %v429_v15, %v429_v15 }
  0xa1   : > { %999 = vmatpush1.bf16.msra.mxu0 %v4647_v27  ;;  %1050 = vmatpush1.bf16.msra.mxu1 %v4649_v28  ;;  %v4614_v27 = vcombine.high %v374_v22, %v378_v23  ;;  %v381_v28 = vld [vmem:[#allocation2 + $0x190] sm:$0xff] }
  0xa2   : > { %1000 = vmatprep.subr.bf16.mxu0 %v4656_v29  ;;  %1051 = vmatprep.subr.bf16.mxu1 %v4658_v30  ;;  %v385_v29 = vld [vmem:[#allocation2 + $0x1b0] sm:$0xff]  ;;  %v382_v30 = vld [vmem:[#allocation2 + $0x198] sm:$0xff] }
  0xa3   : > { %v4619_v39 = vcombine.low %v381_v28, %v385_v29  ;;  %v4621_v40 = vcombine.low %v382_v30, %v386_v31 }
  0xa5   : > { %1001 = vmatpush1.bf16.msra.mxu0 %v4655_v33  ;;  %1052 = vmatpush1.bf16.msra.mxu1 %v4657_v34  ;;  %v4613_v33 = vcombine.low %v374_v22, %v378_v23  ;;  %v4620_v34 = vcombine.high %v381_v28, %v385_v29  ;;  %v1630_v23 = vld [vmem:[#allocation4 + $0x8] sm:$0xff]  ;;  %v1629_v29 = vld [vmem:[#allocation4] sm:$0xff] }
  0xa6   : > { %4671 = vmatprep.subr.msk.bf16.mxu0 %vm953_vm1, %v4664_v35  ;;  %4674 = vmatprep.subr.msk.bf16.mxu1 %vm953_vm1, %v4666_v37  ;;  %v389_v35 = vld [vmem:[#allocation2 + $0x1d0] sm:$0xff]  ;;  %v390_v37 = vld [vmem:[#allocation2 + $0x1d8] sm:$0xff] }
  0xa7   : > { %v4628_v41 = vcombine.high %v389_v35, %v393_v36  ;;  %v4630_v42 = vcombine.high %v390_v37, %v394_v38  ;;  %v4627_v49 = vcombine.low %v389_v35, %v393_v36  ;;  %v4629_v50 = vcombine.low %v390_v37, %v394_v38  ;;  %v1678_v35 = vld [vmem:[#allocation4 + $0x188] sm:$0xff]  ;;  %v1664_v36 = vld [vmem:[#allocation4 + $0x118] sm:$0xff] }
  0xa8   : > { %v1680_v37 = vld [vmem:[#allocation4 + $0x198] sm:$0xff] }
  0xa9   : > { %1003 = vmatpush1.bf16.msra.mxu0 %v955_v43  ;;  %1054 = vmatpush1.bf16.msra.mxu1 %v961_v46  ;;  %v397_v43 = vld [vmem:[#allocation2 + $0x210] sm:$0xff]  ;;  %v398_v46 = vld [vmem:[#allocation2 + $0x218] sm:$0xff] }
  0xaa   : > { %1080 = vmatprep.subr.bf16.mxu0 %v4572_v44  ;;  %1131 = vmatprep.subr.bf16.mxu1 %v4574_v48  ;;  %v401_v44 = vld [vmem:[#allocation2 + $0x230] sm:$0xff]  ;;  %v402_v48 = vld [vmem:[#allocation2 + $0x238] sm:$0xff] }
  0xab   : > { %v4636_v51 = vcombine.high %v397_v43, %v401_v44  ;;  %v4638_v52 = vcombine.high %v398_v46, %v402_v48  ;;  %v4637_v58 = vcombine.low %v398_v46, %v402_v48  ;;  %v1679_v46 = vld [vmem:[#allocation4 + $0x190] sm:$0xff]  ;;  %v1694_v48 = vld [vmem:[#allocation4 + $0x208] sm:$0xff] }
  0xac   : > { %1011 = vmatmul.mubr.bf16.vlgmr.msra.gmra.mrb[0].mxu0 %v6449_v47  ;;  %1062 = vmatmul.mubr.bf16.vlgmr.msra.gmra.mrb[0].mxu1 %v6449_v47 }
  0xad   : > { %1081 = vmatpush1.bf16.msra.mxu0 %v4571_v54  ;;  %1132 = vmatpush1.bf16.msra.mxu1 %v4573_v55  ;;  %v409_v54 = vld [vmem:[#allocation2 + $0x270] sm:$0xff]  ;;  %v406_v55 = vld [vmem:[#allocation2 + $0x258] sm:$0xff] }
  0xae   : > { %1082 = vmatprep.subr.bf16.mxu0 %v4580_v56  ;;  %1133 = vmatprep.subr.bf16.mxu1 %v4582_v57  ;;  %v410_v56 = vld [vmem:[#allocation2 + $0x278] sm:$0xff]  ;;  %v4635_v57 = vcombine.low %v397_v43, %v401_v44  ;;  %v4644_v59 = vcombine.high %v405_v53, %v409_v54  ;;  %v1663_v43 = vld [vmem:[#allocation4 + $0x110] sm:$0xff]  ;;  %v4954_v44 = vpack.c.bf16 %v1680_v37, %v1664_v36 }
  0xaf   : > { %4673 = vmatprep.mubr.msk.bf16.mxu0 %vm946_vm0, %v6452_v60  ;;  %4676 = vmatprep.mubr.msk.bf16.mxu1 %vm946_vm0, %v6452_v60  ;;  %v4646_v61 = vcombine.high %v406_v55, %v410_v56  ;;  %v4645_v3 = vcombine.low %v406_v55, %v410_v56  ;;  %v1693_v55 = vld [vmem:[#allocation4 + $0x200] sm:$0xff] }
  0xb0   : > { %v1709_v56 = vld [vmem:[#allocation4 + $0x280] sm:$0xff] }
  0xb1   : > { %1083 = vmatpush1.bf16.msra.mxu0 %v4579_v63  ;;  %1134 = vmatpush1.bf16.msra.mxu1 %v4581_v0  ;;  %v417_v63 = vld [vmem:[#allocation2 + $0x2b0] sm:$0xff]  ;;  %v414_v0 = vld [vmem:[#allocation2 + $0x298] sm:$0xff] }
  0xb2   : > { %1084 = vmatprep.subr.bf16.mxu0 %v4588_v1  ;;  %1135 = vmatprep.subr.bf16.mxu1 %v4590_v2  ;;  %v418_v1 = vld [vmem:[#allocation2 + $0x2b8] sm:$0xff]  ;;  %v4643_v2 = vcombine.low %v405_v53, %v409_v54  ;;  %v4652_v4 = vcombine.high %v413_v62, %v417_v63  ;;  %v4956_v53 = vpack.c.bf16 %v1679_v46, %v1663_v43  ;;  %v1854_v43 = vld [vmem:[#allocation4 + $0x708] sm:$0xff] }
  0xb3   : > { %v4654_v5 = vcombine.high %v414_v0, %v418_v1  ;;  %v4653_v12 = vcombine.low %v414_v0, %v418_v1  ;;  %v4832_v0 = vpack.c.bf16 %v1709_v56, %v1693_v55  ;;  %v1856_v46 = vld [vmem:[#allocation4 + $0x718] sm:$0xff]  ;;  %v1871_v56 = vld [vmem:[#allocation4 + $0x790] sm:$0xff] }
  0xb4   : > { %1021 = vmatmul.mubr.bf16.gmra.mrb[4].mxu0 %v6460_v7  ;;  %1072 = vmatmul.mubr.bf16.gmra.mrb[4].mxu1 %v6460_v7 }
  0xb5   : > { %1085 = vmatpush1.bf16.msra.mxu0 %v4587_v8  ;;  %1136 = vmatpush1.bf16.msra.mxu1 %v4589_v9  ;;  %v425_v8 = vld [vmem:[#allocation2 + $0x2f0] sm:$0xff]  ;;  %v422_v9 = vld [vmem:[#allocation2 + $0x2d8] sm:$0xff] }
  0xb6   : > { %1086 = vmatprep.subr.bf16.mxu0 %v4596_v10  ;;  %1137 = vmatprep.subr.bf16.mxu1 %v4598_v11  ;;  %v426_v10 = vld [vmem:[#allocation2 + $0x2f8] sm:$0xff]  ;;  %v4651_v11 = vcombine.low %v413_v62, %v417_v63  ;;  %v4660_v13 = vcombine.high %v421_v6, %v425_v8  ;;  %v1742_v62 = vld [vmem:[#allocation4 + $0x388] sm:$0xff] }
  0xb7   : > { %4678 = vmatprep.mubr.msk.bf16.mxu0 %vm946_vm0, %v6438_v45  ;;  %4681 = vmatprep.mubr.msk.bf16.mxu1 %vm946_vm0, %v6438_v45  ;;  %v4622_v45 = vcombine.high %v382_v30, %v386_v31  ;;  %v4662_v14 = vcombine.high %v422_v9, %v426_v10  ;;  %v1645_v30 = vld [vmem:[#allocation4 + $0x80] sm:$0xff]  ;;  %v1631_v31 = vld [vmem:[#allocation4 + $0x10] sm:$0xff]  ;;  %v1744_v63 = vld [vmem:[#allocation4 + $0x398] sm:$0xff] }
  0xb8   : > { %v4824_v38 = vpack.c.bf16 %v1645_v30, %v1629_v29  ;;  %v1791_v29 = vld [vmem:[#allocation4 + $0x510] sm:$0xff] }
  0xb9   : > { %1087 = vmatpush1.bf16.msra.mxu0 %v4595_v16  ;;  %1138 = vmatpush1.bf16.msra.mxu1 %v4597_v17  ;;  %v430_v16 = vld [vmem:[#allocation2 + $0x318] sm:$0xff]  ;;  %v4659_v17 = vcombine.low %v421_v6, %v425_v8  ;;  %v1758_v8 = vld [vmem:[#allocation4 + $0x408] sm:$0xff] }
  0xba   : > { %1088 = vmatprep.subr.bf16.mxu0 %v4604_v18  ;;  %1139 = vmatprep.subr.bf16.mxu1 %v4606_v19  ;;  %v4661_v18 = vcombine.low %v422_v9, %v426_v10  ;;  %v4668_v19 = vcombine.high %v429_v15, %v429_v15  ;;  %v4670_v21 = vcombine.high %v430_v16, %v430_v16  ;;  %v1774_v9 = vld [vmem:[#allocation4 + $0x488] sm:$0xff]  ;;  %v1760_v10 = vld [vmem:[#allocation4 + $0x418] sm:$0xff] }
  0xbb   : > { %v4669_v22 = vcombine.low %v430_v16, %v430_v16  ;;  %v4838_v15 = vpack.c.bf16 %v1774_v9, %v1758_v8  ;;  %v1757_v16 = vld [vmem:[#allocation4 + $0x400] sm:$0xff]  ;;  %v1936_v8 = vld [vmem:[#allocation4 + $0x998] sm:$0xff] }
  0xbd   : > { %1089 = vmatpush1.bf16.msra.mxu0 %v4603_v24  ;;  %1140 = vmatpush1.bf16.msra.mxu1 %v4605_v25  ;;  %v1646_v24 = vld [vmem:[#allocation4 + $0x88] sm:$0xff]  ;;  %v1632_v25 = vld [vmem:[#allocation4 + $0x18] sm:$0xff] }
  0xbe   : > { %1090 = vmatprep.subr.bf16.mxu0 %v4612_v26  ;;  %1141 = vmatprep.subr.bf16.mxu1 %v4614_v27  ;;  %v1648_v26 = vld [vmem:[#allocation4 + $0x98] sm:$0xff]  ;;  %v967_v27 = vsel %vm953_vm1, %v4667_v20, 0  ;;  %v4822_v28 = vpack.c.bf16 %v1646_v24, %v1630_v23  ;;  %v1775_v20 = vld [vmem:[#allocation4 + $0x490] sm:$0xff] }
  0xbf   : > { %v1792_v23 = vld [vmem:[#allocation4 + $0x518] sm:$0xff] }
  0xc0   : > { %v1808_v24 = vld [vmem:[#allocation4 + $0x598] sm:$0xff] }
  0xc1   : > { %1091 = vmatpush1.bf16.msra.mxu0 %v4611_v32  ;;  %1142 = vmatpush1.bf16.msra.mxu1 %v4613_v33  ;;  %v973_v32 = vsel %vm953_vm1, %v4669_v22, 0  ;;  %v4950_v33 = vpack.c.bf16 %v1648_v26, %v1632_v25  ;;  %v1806_v22 = vld [vmem:[#allocation4 + $0x588] sm:$0xff]  ;;  %v4970_v30 = vpack.c.bf16 %v1808_v24, %v1792_v23  ;;  %v1949_v24 = vld [vmem:[#allocation4 + $0xa00] sm:$0xff] }
  0xc2   : > { %1092 = vmatprep.subr.bf16.mxu0 %v4620_v34  ;;  %1143 = vmatprep.subr.bf16.mxu1 %v4622_v45  ;;  %v1647_v34 = vld [vmem:[#allocation4 + $0x90] sm:$0xff]  ;;  %v1662_v45 = vld [vmem:[#allocation4 + $0x108] sm:$0xff] }
  0xc5   : > { %1093 = vmatpush1.bf16.msra.mxu0 %v4619_v39  ;;  %1144 = vmatpush1.bf16.msra.mxu1 %v4621_v40  ;;  %v4952_v39 = vpack.c.bf16 %v1647_v34, %v1631_v31  ;;  %v4826_v40 = vpack.c.bf16 %v1678_v35, %v1662_v45  ;;  %v1807_v31 = vld [vmem:[#allocation4 + $0x590] sm:$0xff]  ;;  %v1824_v34 = vld [vmem:[#allocation4 + $0x618] sm:$0xff] }
  0xc6   : > { %1094 = vmatprep.subr.bf16.mxu0 %v4628_v41  ;;  %1145 = vmatprep.subr.bf16.mxu1 %v4630_v42  ;;  %v1661_v41 = vld [vmem:[#allocation4 + $0x100] sm:$0xff]  ;;  %v1840_v45 = vld [vmem:[#allocation4 + $0x698] sm:$0xff]  ;;  %v4972_v36 = vpack.c.bf16 %v1807_v31, %v1791_v29  ;;  %v1998_v29 = vld [vmem:[#allocation4 + $0xb88] sm:$0xff] }
  0xc7   : > { %v1677_v42 = vld [vmem:[#allocation4 + $0x180] sm:$0xff]  ;;  %v2000_v31 = vld [vmem:[#allocation4 + $0xb98] sm:$0xff] }
  0xc9   : > { %1095 = vmatpush1.bf16.msra.mxu0 %v4627_v49  ;;  %1146 = vmatpush1.bf16.msra.mxu1 %v4629_v50  ;;  %v1710_v49 = vld [vmem:[#allocation4 + $0x288] sm:$0xff]  ;;  %v1696_v50 = vld [vmem:[#allocation4 + $0x218] sm:$0xff] }
  0xca   : > { %1096 = vmatprep.subr.bf16.mxu0 %v4636_v51  ;;  %1147 = vmatprep.subr.bf16.mxu1 %v4638_v52  ;;  %v1712_v51 = vld [vmem:[#allocation4 + $0x298] sm:$0xff]  ;;  %v4828_v52 = vpack.c.bf16 %v1677_v42, %v1661_v41  ;;  %v4830_v54 = vpack.c.bf16 %v1710_v49, %v1694_v48  ;;  %v4974_v41 = vpack.c.bf16 %v1840_v45, %v1824_v34  ;;  %v1839_v42 = vld [vmem:[#allocation4 + $0x690] sm:$0xff]  ;;  %v1981_v45 = vld [vmem:[#allocation4 + $0xb00] sm:$0xff] }
  0xcb   : > { %v1872_v48 = vld [vmem:[#allocation4 + $0x798] sm:$0xff] }
  0xcc   : > { %v4978_v55 = vpack.c.bf16 %v1872_v48, %v1856_v46  ;;  %v2013_v48 = vld [vmem:[#allocation4 + $0xc00] sm:$0xff] }
  0xcd   : > { %1097 = vmatpush1.bf16.msra.mxu0 %v4635_v57  ;;  %1148 = vmatpush1.bf16.msra.mxu1 %v4637_v58  ;;  %v1695_v57 = vld [vmem:[#allocation4 + $0x210] sm:$0xff]  ;;  %v4958_v58 = vpack.c.bf16 %v1712_v51, %v1696_v50 }
  0xce   : > { %1098 = vmatprep.subr.bf16.mxu0 %v4644_v59  ;;  %1149 = vmatprep.subr.bf16.mxu1 %v4646_v61  ;;  %v1711_v59 = vld [vmem:[#allocation4 + $0x290] sm:$0xff]  ;;  %v1726_v61 = vld [vmem:[#allocation4 + $0x308] sm:$0xff] }
  0xcf   : > { %v4960_v1 = vpack.c.bf16 %v1711_v59, %v1695_v57  ;;  %v1886_v57 = vld [vmem:[#allocation4 + $0x808] sm:$0xff]  ;;  %v1888_v59 = vld [vmem:[#allocation4 + $0x818] sm:$0xff] }
  0xd1   : > { %1099 = vmatpush1.bf16.msra.mxu0 %v4643_v2  ;;  %1150 = vmatpush1.bf16.msra.mxu1 %v4645_v3  ;;  %v4834_v2 = vpack.c.bf16 %v1742_v62, %v1726_v61  ;;  %v1725_v3 = vld [vmem:[#allocation4 + $0x300] sm:$0xff]  ;;  %v1904_v61 = vld [vmem:[#allocation4 + $0x898] sm:$0xff] }
  0xd2   : > { %1100 = vmatprep.subr.bf16.mxu0 %v4652_v4  ;;  %1151 = vmatprep.subr.bf16.mxu1 %v4654_v5  ;;  %v1741_v4 = vld [vmem:[#allocation4 + $0x380] sm:$0xff]  ;;  %v1727_v5 = vld [vmem:[#allocation4 + $0x310] sm:$0xff] }
  0xd5   : > { %1101 = vmatpush1.bf16.msra.mxu0 %v4651_v11  ;;  %1152 = vmatpush1.bf16.msra.mxu1 %v4653_v12  ;;  %v1776_v11 = vld [vmem:[#allocation4 + $0x498] sm:$0xff]  ;;  %v1622_v12 = vld [vmem:[%s6482_s27 + $0x8] sm:$0xff] }
  0xd6   : > { %1102 = vmatprep.subr.bf16.mxu0 %v4660_v13  ;;  %1153 = vmatprep.subr.bf16.mxu1 %v4662_v14  ;;  %v4836_v13 = vpack.c.bf16 %v1741_v4, %v1725_v3  ;;  %v4982_v3 = vpack.c.bf16 %v1904_v61, %v1888_v59  ;;  %v1903_v4 = vld [vmem:[#allocation4 + $0x890] sm:$0xff]  ;;  %v2045_v61 = vld [vmem:[#allocation4 + $0xd00] sm:$0xff] }
  0xd9   : > { %1103 = vmatpush1.bf16.msra.mxu0 %v4659_v17  ;;  %1154 = vmatpush1.bf16.msra.mxu1 %v4661_v18  ;;  %v1773_v17 = vld [vmem:[#allocation4 + $0x480] sm:$0xff]  ;;  %v1759_v18 = vld [vmem:[#allocation4 + $0x410] sm:$0xff] }
  0xda   : > { %4677 = vmatprep.subr.msk.bf16.mxu0 %vm953_vm1, %v4668_v19  ;;  %4680 = vmatprep.subr.msk.bf16.mxu1 %vm953_vm1, %v4670_v21  ;;  %v4966_v19 = vpack.c.bf16 %v1776_v11, %v1760_v10  ;;  %v1790_v21 = vld [vmem:[#allocation4 + $0x508] sm:$0xff]  ;;  %v4968_v25 = vpack.c.bf16 %v1775_v20, %v1759_v18  ;;  %v1968_v20 = vld [vmem:[#allocation4 + $0xa98] sm:$0xff] }
  0xdb   : > { %v4842_v26 = vpack.c.bf16 %v1806_v22, %v1790_v21  ;;  %v1966_v18 = vld [vmem:[#allocation4 + $0xa88] sm:$0xff] }
  0xdd   : > { %1105 = vmatpush1.bf16.msra.mxu0 %v967_v27  ;;  %1156 = vmatpush1.bf16.msra.mxu1 %v973_v32  ;;  %v1789_v27 = vld [vmem:[#allocation4 + $0x500] sm:$0xff]  ;;  %v1822_v32 = vld [vmem:[#allocation4 + $0x608] sm:$0xff] }
  0xde   : > { %4823 = vmatprep.subr.bf16.mxu0 %v4822_v28  ;;  %4951 = vmatprep.subr.bf16.mxu1 %v4950_v33  ;;  %v1805_v28 = vld [vmem:[#allocation4 + $0x580] sm:$0xff]  ;;  %v1838_v33 = vld [vmem:[#allocation4 + $0x688] sm:$0xff] }
  0xdf   : > { %v4844_v35 = vpack.c.bf16 %v1805_v28, %v1789_v27  ;;  %v4846_v37 = vpack.c.bf16 %v1838_v33, %v1822_v32  ;;  %v1967_v27 = vld [vmem:[#allocation4 + $0xa90] sm:$0xff]  ;;  %v1982_v28 = vld [vmem:[#allocation4 + $0xb08] sm:$0xff] }
  0xe0   : > { %1113 = vmatmul.mubr.bf16.vlgmr.msra.gmra.mrb[8].mxu0 %v6449_v47  ;;  %1164 = vmatmul.mubr.bf16.vlgmr.msra.gmra.mrb[8].mxu1 %v6449_v47  ;;  %v1728_v47 = vld [vmem:[#allocation4 + $0x318] sm:$0xff]  ;;  %v4866_v34 = vpack.c.bf16 %v1998_v29, %v1982_v28 }
  0xe1   : > { %4825 = vmatpush1.bf16.msra.mxu0 %v4824_v38  ;;  %4953 = vmatpush1.bf16.msra.mxu1 %v4952_v39  ;;  %v4962_v6 = vpack.c.bf16 %v1744_v63, %v1728_v47  ;;  %v1821_v38 = vld [vmem:[#allocation4 + $0x600] sm:$0xff] }
  0xe2   : > { %4827 = vmatprep.subr.bf16.mxu0 %v4826_v40  ;;  %4955 = vmatprep.subr.bf16.mxu1 %v4954_v44  ;;  %v1837_v39 = vld [vmem:[#allocation4 + $0x680] sm:$0xff]  ;;  %v1823_v40 = vld [vmem:[#allocation4 + $0x610] sm:$0xff]  ;;  %v1870_v44 = vld [vmem:[#allocation4 + $0x788] sm:$0xff] }
  0xe3   : > { %4679 = vmatprep.mubr.msk.bf16.mxu0 %vm946_vm0, %v6452_v60  ;;  %4682 = vmatprep.mubr.msk.bf16.mxu1 %vm946_vm0, %v6452_v60  ;;  %v1743_v60 = vld [vmem:[#allocation4 + $0x390] sm:$0xff]  ;;  %v4848_v49 = vpack.c.bf16 %v1837_v39, %v1821_v38  ;;  %v4976_v50 = vpack.c.bf16 %v1839_v42, %v1823_v40  ;;  %v4850_v51 = vpack.c.bf16 %v1870_v44, %v1854_v43  ;;  %v2014_v39 = vld [vmem:[#allocation4 + $0xc08] sm:$0xff]  ;;  %v2032_v42 = vld [vmem:[#allocation4 + $0xc98] sm:$0xff] }
  0xe4   : > { %v4964_v14 = vpack.c.bf16 %v1743_v60, %v1727_v5  ;;  %v1918_v5 = vld [vmem:[#allocation4 + $0x908] sm:$0xff]  ;;  %v1920_v60 = vld [vmem:[#allocation4 + $0x918] sm:$0xff]  ;;  %v1999_v38 = vld [vmem:[#allocation4 + $0xb90] sm:$0xff] }
  0xe5   : > { %4829 = vmatpush1.bf16.msra.mxu0 %v4828_v52  ;;  %4957 = vmatpush1.bf16.msra.mxu1 %v4956_v53  ;;  %v1853_v52 = vld [vmem:[#allocation4 + $0x700] sm:$0xff]  ;;  %v2030_v40 = vld [vmem:[#allocation4 + $0xc88] sm:$0xff] }
  0xe6   : > { %4831 = vmatprep.subr.bf16.mxu0 %v4830_v54  ;;  %4959 = vmatprep.subr.bf16.mxu1 %v4958_v58  ;;  %v1869_v53 = vld [vmem:[#allocation4 + $0x780] sm:$0xff]  ;;  %v1855_v54 = vld [vmem:[#allocation4 + $0x710] sm:$0xff]  ;;  %v1902_v58 = vld [vmem:[#allocation4 + $0x888] sm:$0xff]  ;;  %v4870_v46 = vpack.c.bf16 %v2030_v40, %v2014_v39 }
  0xe7   : > { %v4852_v62 = vpack.c.bf16 %v1869_v53, %v1853_v52  ;;  %v4980_v47 = vpack.c.bf16 %v1871_v56, %v1855_v54  ;;  %v4854_v63 = vpack.c.bf16 %v1902_v58, %v1886_v57  ;;  %v2031_v52 = vld [vmem:[#allocation4 + $0xc90] sm:$0xff]  ;;  %v2046_v53 = vld [vmem:[#allocation4 + $0xd08] sm:$0xff]  ;;  %v2064_v56 = vld [vmem:[#allocation4 + $0xd98] sm:$0xff] }
  0xe8   : > { %1123 = vmatmul.mubr.bf16.gmra.mrb[12].mxu0 %v6460_v7  ;;  %1174 = vmatmul.mubr.bf16.gmra.mrb[12].mxu1 %v6460_v7  ;;  %v4840_v7 = vpack.c.bf16 %v1773_v17, %v1757_v16  ;;  %v1935_v16 = vld [vmem:[#allocation4 + $0x990] sm:$0xff]  ;;  %v1950_v17 = vld [vmem:[#allocation4 + $0xa08] sm:$0xff]  ;;  %v1621_v39 = vld [vmem:[%s6482_s27] sm:$0xff] }
  0xe9   : > { %4833 = vmatpush1.bf16.msra.mxu0 %v4832_v0  ;;  %4961 = vmatpush1.bf16.msra.mxu1 %v4960_v1  ;;  %v1885_v0 = vld [vmem:[#allocation4 + $0x800] sm:$0xff]  ;;  %v4862_v23 = vpack.c.bf16 %v1966_v18, %v1950_v17  ;;  %v2062_v54 = vld [vmem:[#allocation4 + $0xd88] sm:$0xff] }
  0xea   : > { %4835 = vmatprep.subr.bf16.mxu0 %v4834_v2  ;;  %4963 = vmatprep.subr.bf16.mxu1 %v4962_v6  ;;  %v1901_v1 = vld [vmem:[#allocation4 + $0x880] sm:$0xff]  ;;  %v1887_v2 = vld [vmem:[#allocation4 + $0x810] sm:$0xff]  ;;  %v1934_v6 = vld [vmem:[#allocation4 + $0x988] sm:$0xff]  ;;  %v4874_v59 = vpack.c.bf16 %v2062_v54, %v2046_v53 }
  0xeb   : > { %2717 = vmatprep.mubr.f32.mxu0 %v1622_v12  ;;  %2871 = vmatprep.mubr.f32.mxu1 %v1622_v12  ;;  %v4856_v9 = vpack.c.bf16 %v1901_v1, %v1885_v0  ;;  %v4984_v10 = vpack.c.bf16 %v1903_v4, %v1887_v2  ;;  %v4858_v11 = vpack.c.bf16 %v1934_v6, %v1918_v5  ;;  %v1917_v12 = vld [vmem:[#allocation4 + $0x900] sm:$0xff]  ;;  %v2063_v0 = vld [vmem:[#allocation4 + $0xd90] sm:$0xff]  ;;  %v2078_v1 = vld [vmem:[#allocation4 + $0xe08] sm:$0xff] }
  0xec   : > { %v2094_v2 = vld [vmem:[#allocation4 + $0xe88] sm:$0xff]  ;;  %v2096_v4 = vld [vmem:[#allocation4 + $0xe98] sm:$0xff] }
  0xed   : > { %4837 = vmatpush1.bf16.msra.mxu0 %v4836_v13  ;;  %4965 = vmatpush1.bf16.msra.mxu1 %v4964_v14  ;;  %v1933_v13 = vld [vmem:[#allocation4 + $0x980] sm:$0xff]  ;;  %v1919_v14 = vld [vmem:[#allocation4 + $0x910] sm:$0xff]  ;;  %v2224_v53 = vld [vmem:[#allocation4 + $0x1298] sm:$0xff] }
  0xee   : > { %4839 = vmatprep.subr.bf16.mxu0 %v4838_v15  ;;  %4967 = vmatprep.subr.bf16.mxu1 %v4966_v19  ;;  %v4986_v15 = vpack.c.bf16 %v1936_v8, %v1920_v60  ;;  %v1952_v19 = vld [vmem:[#allocation4 + $0xa18] sm:$0xff]  ;;  %v4860_v21 = vpack.c.bf16 %v1933_v13, %v1917_v12  ;;  %v4988_v22 = vpack.c.bf16 %v1935_v16, %v1919_v14  ;;  %v2077_v8 = vld [vmem:[#allocation4 + $0xe00] sm:$0xff]  ;;  %v2095_v12 = vld [vmem:[#allocation4 + $0xe90] sm:$0xff] }
  0xef   : > { %v4878_v60 = vpack.c.bf16 %v2094_v2, %v2078_v1  ;;  %v2110_v13 = vld [vmem:[#allocation4 + $0xf08] sm:$0xff]  ;;  %v2128_v16 = vld [vmem:[#allocation4 + $0xf98] sm:$0xff] }
  0xf0   : > { %v2126_v14 = vld [vmem:[#allocation4 + $0xf88] sm:$0xff]  ;;  %v2240_v2 = vld [vmem:[#allocation4 + $0x1318] sm:$0xff] }
  0xf1   : > { %4841 = vmatpush1.bf16.msra.mxu0 %v4840_v7  ;;  %4969 = vmatpush1.bf16.msra.mxu1 %v4968_v25  ;;  %v1965_v7 = vld [vmem:[#allocation4 + $0xa80] sm:$0xff]  ;;  %v1951_v25 = vld [vmem:[#allocation4 + $0xa10] sm:$0xff]  ;;  %v1626_v54 = vld [vmem:[%s6482_s27 + $0x28] sm:$0x3] }
  0xf2   : > { %4843 = vmatprep.subr.bf16.mxu0 %v4842_v26  ;;  %4971 = vmatprep.subr.bf16.mxu1 %v4970_v30  ;;  %v4990_v26 = vpack.c.bf16 %v1968_v20, %v1952_v19  ;;  %v1984_v30 = vld [vmem:[#allocation4 + $0xb18] sm:$0xff]  ;;  %v4864_v32 = vpack.c.bf16 %v1965_v7, %v1949_v24  ;;  %v4992_v33 = vpack.c.bf16 %v1967_v27, %v1951_v25  ;;  %v2109_v20 = vld [vmem:[#allocation4 + $0xf00] sm:$0xff]  ;;  %v2127_v24 = vld [vmem:[#allocation4 + $0xf90] sm:$0xff] }
  0xf3   : > { %v4882_v19 = vpack.c.bf16 %v2126_v14, %v2110_v13  ;;  %v2142_v7 = vld [vmem:[#allocation4 + $0x1008] sm:$0xff]  ;;  %v2160_v27 = vld [vmem:[#allocation4 + $0x1098] sm:$0xff] }
  0xf4   : > { %v2158_v25 = vld [vmem:[#allocation4 + $0x1088] sm:$0xff] }
  0xf5   : > { %4845 = vmatpush1.bf16.msra.mxu0 %v4844_v35  ;;  %4973 = vmatpush1.bf16.msra.mxu1 %v4972_v36  ;;  %v1997_v35 = vld [vmem:[#allocation4 + $0xb80] sm:$0xff]  ;;  %v1983_v36 = vld [vmem:[#allocation4 + $0xb10] sm:$0xff]  ;;  %v2254_v1 = vld [vmem:[#allocation4 + $0x1388] sm:$0xff] }
  0xf6   : > { %4847 = vmatprep.subr.bf16.mxu0 %v4846_v37  ;;  %4975 = vmatprep.subr.bf16.mxu1 %v4974_v41  ;;  %v4994_v37 = vpack.c.bf16 %v2000_v31, %v1984_v30  ;;  %v2016_v41 = vld [vmem:[#allocation4 + $0xc18] sm:$0xff]  ;;  %v4868_v43 = vpack.c.bf16 %v1997_v35, %v1981_v45  ;;  %v4996_v44 = vpack.c.bf16 %v1999_v38, %v1983_v36  ;;  %v2141_v31 = vld [vmem:[#allocation4 + $0x1000] sm:$0xff]  ;;  %v2159_v45 = vld [vmem:[#allocation4 + $0x1090] sm:$0xff] }
  0xf7   : > { %v4886_v30 = vpack.c.bf16 %v2158_v25, %v2142_v7  ;;  %v2174_v35 = vld [vmem:[#allocation4 + $0x1108] sm:$0xff]  ;;  %v2192_v38 = vld [vmem:[#allocation4 + $0x1198] sm:$0xff] }
  0xf8   : > { %v2190_v36 = vld [vmem:[#allocation4 + $0x1188] sm:$0xff] }
  0xf9   : > { %4849 = vmatpush1.bf16.msra.mxu0 %v4848_v49  ;;  %4977 = vmatpush1.bf16.msra.mxu1 %v4976_v50  ;;  %v2029_v49 = vld [vmem:[#allocation4 + $0xc80] sm:$0xff]  ;;  %v2015_v50 = vld [vmem:[#allocation4 + $0xc10] sm:$0xff]  ;;  %v2270_v13 = vld [vmem:[#allocation4 + $0x1408] sm:$0xff] }
  0xfa   : > { %4851 = vmatprep.subr.bf16.mxu0 %v4850_v51  ;;  %4979 = vmatprep.subr.bf16.mxu1 %v4978_v55  ;;  %v4998_v51 = vpack.c.bf16 %v2032_v42, %v2016_v41  ;;  %v2048_v55 = vld [vmem:[#allocation4 + $0xd18] sm:$0xff]  ;;  %v4872_v57 = vpack.c.bf16 %v2029_v49, %v2013_v48  ;;  %v5000_v58 = vpack.c.bf16 %v2031_v52, %v2015_v50  ;;  %v2191_v49 = vld [vmem:[#allocation4 + $0x1190] sm:$0xff]  ;;  %v2206_v50 = vld [vmem:[#allocation4 + $0x1208] sm:$0xff] }
  0xfb   : > { %v4890_v42 = vpack.c.bf16 %v2190_v36, %v2174_v35  ;;  %v2208_v52 = vld [vmem:[#allocation4 + $0x1218] sm:$0xff]  ;;  %v2286_v14 = vld [vmem:[#allocation4 + $0x1488] sm:$0xff] }
  0xfc   : > { %v2302_v7 = vld [vmem:[#allocation4 + $0x1508] sm:$0xff] }
  0xfd   : > { %4853 = vmatpush1.bf16.msra.mxu0 %v4852_v62  ;;  %4981 = vmatpush1.bf16.msra.mxu1 %v4980_v47  ;;  %v2061_v62 = vld [vmem:[#allocation4 + $0xd80] sm:$0xff]  ;;  %v2047_v47 = vld [vmem:[#allocation4 + $0xd10] sm:$0xff]  ;;  %v2318_v25 = vld [vmem:[#allocation4 + $0x1588] sm:$0xff] }
  0xfe   : > { %4855 = vmatprep.subr.bf16.mxu0 %v4854_v63  ;;  %4983 = vmatprep.subr.bf16.mxu1 %v4982_v3  ;;  %v5002_v63 = vpack.c.bf16 %v2064_v56, %v2048_v55  ;;  %v2080_v3 = vld [vmem:[#allocation4 + $0xe18] sm:$0xff]  ;;  %v4876_v5 = vpack.c.bf16 %v2061_v62, %v2045_v61  ;;  %v5004_v6 = vpack.c.bf16 %v2063_v0, %v2047_v47  ;;  %v1625_v56 = vld [vmem:[%s6482_s27 + $0x20] sm:$0x3]  ;;  %v2207_v62 = vld [vmem:[#allocation4 + $0x1210] sm:$0xff] }
  0xff   : > { %v2221_v61 = vld [vmem:[#allocation4 + $0x1280] sm:$0xff]  ;;  %v5022_v47 = vpack.c.bf16 %v2224_v53, %v2208_v52  ;;  %v2238_v0 = vld [vmem:[#allocation4 + $0x1308] sm:$0xff]  ;;  %v2384_v52 = vld [vmem:[#allocation4 + $0x1798] sm:$0xff] }
 0x100   : > { %v2334_v35 = vld [vmem:[#allocation4 + $0x1608] sm:$0xff] }
 0x101   : > { %4857 = vmatpush1.bf16.msra.mxu0 %v4856_v9  ;;  %4985 = vmatpush1.bf16.msra.mxu1 %v4984_v10  ;;  %v2093_v9 = vld [vmem:[#allocation4 + $0xe80] sm:$0xff]  ;;  %v2079_v10 = vld [vmem:[#allocation4 + $0xe10] sm:$0xff]  ;;  %v2350_v36 = vld [vmem:[#allocation4 + $0x1688] sm:$0xff] }
 0x102   : > { %4859 = vmatprep.subr.bf16.mxu0 %v4858_v11  ;;  %4987 = vmatprep.subr.bf16.mxu1 %v4986_v15  ;;  %v5006_v11 = vpack.c.bf16 %v2096_v4, %v2080_v3  ;;  %v2112_v15 = vld [vmem:[#allocation4 + $0xf18] sm:$0xff]  ;;  %v4880_v17 = vpack.c.bf16 %v2093_v9, %v2077_v8  ;;  %v5008_v18 = vpack.c.bf16 %v2095_v12, %v2079_v10  ;;  %v2237_v8 = vld [vmem:[#allocation4 + $0x1300] sm:$0xff]  ;;  %v2239_v10 = vld [vmem:[#allocation4 + $0x1310] sm:$0xff] }
 0x103   : > { %v2256_v3 = vld [vmem:[#allocation4 + $0x1398] sm:$0xff]  ;;  %v2253_v9 = vld [vmem:[#allocation4 + $0x1380] sm:$0xff]  ;;  %v2255_v12 = vld [vmem:[#allocation4 + $0x1390] sm:$0xff] }
 0x104   : > { %v1624_v4 = vld [vmem:[%s6482_s27 + $0x18] sm:$0xff] }
 0x105   : > { %4861 = vmatpush1.bf16.msra.mxu0 %v4860_v21  ;;  %4989 = vmatpush1.bf16.msra.mxu1 %v4988_v22  ;;  %v2125_v21 = vld [vmem:[#allocation4 + $0xf80] sm:$0xff]  ;;  %v2111_v22 = vld [vmem:[#allocation4 + $0xf10] sm:$0xff] }
 0x106   : > { %4863 = vmatprep.subr.bf16.mxu0 %v4862_v23  ;;  %4991 = vmatprep.subr.bf16.mxu1 %v4990_v26  ;;  %v5010_v23 = vpack.c.bf16 %v2128_v16, %v2112_v15  ;;  %v2144_v26 = vld [vmem:[#allocation4 + $0x1018] sm:$0xff]  ;;  %v4884_v28 = vpack.c.bf16 %v2125_v21, %v2109_v20  ;;  %v5012_v29 = vpack.c.bf16 %v2127_v24, %v2111_v22  ;;  %v2269_v20 = vld [vmem:[#allocation4 + $0x1400] sm:$0xff]  ;;  %v2271_v22 = vld [vmem:[#allocation4 + $0x1410] sm:$0xff] }
 0x107   : > { %v2272_v15 = vld [vmem:[#allocation4 + $0x1418] sm:$0xff]  ;;  %v2285_v21 = vld [vmem:[#allocation4 + $0x1480] sm:$0xff]  ;;  %v2287_v24 = vld [vmem:[#allocation4 + $0x1490] sm:$0xff] }
 0x108   : > { %v2288_v16 = vld [vmem:[#allocation4 + $0x1498] sm:$0xff] }
 0x109   : > { %4865 = vmatpush1.bf16.msra.mxu0 %v4864_v32  ;;  %4993 = vmatpush1.bf16.msra.mxu1 %v4992_v33  ;;  %v2157_v32 = vld [vmem:[#allocation4 + $0x1080] sm:$0xff]  ;;  %v2143_v33 = vld [vmem:[#allocation4 + $0x1010] sm:$0xff] }
 0x10a   : > { %4867 = vmatprep.subr.bf16.mxu0 %v4866_v34  ;;  %4995 = vmatprep.subr.bf16.mxu1 %v4994_v37  ;;  %v5014_v34 = vpack.c.bf16 %v2160_v27, %v2144_v26  ;;  %v2176_v37 = vld [vmem:[#allocation4 + $0x1118] sm:$0xff]  ;;  %v4888_v40 = vpack.c.bf16 %v2157_v32, %v2141_v31  ;;  %v5016_v41 = vpack.c.bf16 %v2159_v45, %v2143_v33  ;;  %v2301_v31 = vld [vmem:[#allocation4 + $0x1500] sm:$0xff]  ;;  %v2303_v33 = vld [vmem:[#allocation4 + $0x1510] sm:$0xff] }
 0x10b   : > { %v5018_v48 = vpack.c.bf16 %v2192_v38, %v2176_v37  ;;  %v2304_v26 = vld [vmem:[#allocation4 + $0x1518] sm:$0xff]  ;;  %v2317_v32 = vld [vmem:[#allocation4 + $0x1580] sm:$0xff]  ;;  %v2319_v45 = vld [vmem:[#allocation4 + $0x1590] sm:$0xff] }
 0x10c   : > { %v2320_v27 = vld [vmem:[#allocation4 + $0x1598] sm:$0xff] }
 0x10d   : > { %4869 = vmatpush1.bf16.msra.mxu0 %v4868_v43  ;;  %4997 = vmatpush1.bf16.msra.mxu1 %v4996_v44  ;;  %v2173_v43 = vld [vmem:[#allocation4 + $0x1100] sm:$0xff]  ;;  %v2336_v37 = vld [vmem:[#allocation4 + $0x1618] sm:$0xff] }
 0x10e   : > { %4871 = vmatprep.subr.bf16.mxu0 %v4870_v46  ;;  %4999 = vmatprep.subr.bf16.mxu1 %v4998_v51  ;;  %v2189_v44 = vld [vmem:[#allocation4 + $0x1180] sm:$0xff]  ;;  %v2175_v46 = vld [vmem:[#allocation4 + $0x1110] sm:$0xff]  ;;  %v2222_v51 = vld [vmem:[#allocation4 + $0x1288] sm:$0xff] }
 0x10f   : > { %v4892_v55 = vpack.c.bf16 %v2189_v44, %v2173_v43  ;;  %v2352_v38 = vld [vmem:[#allocation4 + $0x1698] sm:$0xff]  ;;  %v2349_v43 = vld [vmem:[#allocation4 + $0x1680] sm:$0xff]  ;;  %v2335_v44 = vld [vmem:[#allocation4 + $0x1610] sm:$0xff] }
 0x111   : > { %4873 = vmatpush1.bf16.msra.mxu0 %v4872_v57  ;;  %5001 = vmatpush1.bf16.msra.mxu1 %v5000_v58  ;;  %v5020_v57 = vpack.c.bf16 %v2191_v49, %v2175_v46  ;;  %v4894_v58 = vpack.c.bf16 %v2222_v51, %v2206_v50  ;;  %v5038_v46 = vpack.c.bf16 %v2352_v38, %v2336_v37  ;;  %v2366_v49 = vld [vmem:[#allocation4 + $0x1708] sm:$0xff]  ;;  %v2368_v51 = vld [vmem:[#allocation4 + $0x1718] sm:$0xff]  ;;  %v2493_v38 = vld [vmem:[#allocation4 + $0x1b00] sm:$0xff] }
 0x112   : > { %4875 = vmatprep.subr.bf16.mxu0 %v4874_v59  ;;  %5003 = vmatprep.subr.bf16.mxu1 %v5002_v63  ;;  %v2205_v59 = vld [vmem:[#allocation4 + $0x1200] sm:$0xff]  ;;  %v2223_v63 = vld [vmem:[#allocation4 + $0x1290] sm:$0xff]  ;;  %v2382_v50 = vld [vmem:[#allocation4 + $0x1788] sm:$0xff] }
 0x115   : > { %4877 = vmatpush1.bf16.msra.mxu0 %v4876_v5  ;;  %5005 = vmatpush1.bf16.msra.mxu1 %v5004_v6  ;;  %v4896_v5 = vpack.c.bf16 %v2221_v61, %v2205_v59  ;;  %v5024_v6 = vpack.c.bf16 %v2223_v63, %v2207_v62  ;;  %v5042_v59 = vpack.c.bf16 %v2384_v52, %v2368_v51  ;;  %v2383_v61 = vld [vmem:[#allocation4 + $0x1790] sm:$0xff]  ;;  %v2398_v62 = vld [vmem:[#allocation4 + $0x1808] sm:$0xff]  ;;  %v2400_v63 = vld [vmem:[#allocation4 + $0x1818] sm:$0xff] }
 0x116   : > { %4879 = vmatprep.subr.bf16.mxu0 %v4878_v60  ;;  %5007 = vmatprep.subr.bf16.mxu1 %v5006_v11  ;;  %v4898_v60 = vpack.c.bf16 %v2254_v1, %v2238_v0  ;;  %v5026_v11 = vpack.c.bf16 %v2256_v3, %v2240_v2  ;;  %v2416_v0 = vld [vmem:[#allocation4 + $0x1898] sm:$0xff]  ;;  %v2525_v52 = vld [vmem:[#allocation4 + $0x1c00] sm:$0xff] }
 0x119   : > { %4881 = vmatpush1.bf16.msra.mxu0 %v4880_v17  ;;  %5009 = vmatpush1.bf16.msra.mxu1 %v5008_v18  ;;  %v4900_v17 = vpack.c.bf16 %v2253_v9, %v2237_v8  ;;  %v5028_v18 = vpack.c.bf16 %v2255_v12, %v2239_v10  ;;  %v2415_v8 = vld [vmem:[#allocation4 + $0x1890] sm:$0xff]  ;;  %v2430_v9 = vld [vmem:[#allocation4 + $0x1908] sm:$0xff]  ;;  %v2448_v12 = vld [vmem:[#allocation4 + $0x1998] sm:$0xff] }
 0x11a   : > { %4883 = vmatprep.subr.bf16.mxu0 %v4882_v19  ;;  %5011 = vmatprep.subr.bf16.mxu1 %v5010_v23  ;;  %v4902_v19 = vpack.c.bf16 %v2286_v14, %v2270_v13  ;;  %v5030_v23 = vpack.c.bf16 %v2288_v16, %v2272_v15  ;;  %v2446_v10 = vld [vmem:[#allocation4 + $0x1988] sm:$0xff]  ;;  %v2429_v16 = vld [vmem:[#allocation4 + $0x1900] sm:$0xff] }
 0x11b   : > { %v4922_v15 = vpack.c.bf16 %v2446_v10, %v2430_v9 }
 0x11d   : > { %4885 = vmatpush1.bf16.msra.mxu0 %v4884_v28  ;;  %5013 = vmatpush1.bf16.msra.mxu1 %v5012_v29  ;;  %v4904_v28 = vpack.c.bf16 %v2285_v21, %v2269_v20  ;;  %v5032_v29 = vpack.c.bf16 %v2287_v24, %v2271_v22  ;;  %v2447_v20 = vld [vmem:[#allocation4 + $0x1990] sm:$0xff]  ;;  %v2462_v21 = vld [vmem:[#allocation4 + $0x1a08] sm:$0xff]  ;;  %v2480_v24 = vld [vmem:[#allocation4 + $0x1a98] sm:$0xff] }
 0x11e   : > { %4887 = vmatprep.subr.bf16.mxu0 %v4886_v30  ;;  %5015 = vmatprep.subr.bf16.mxu1 %v5014_v34  ;;  %v4906_v30 = vpack.c.bf16 %v2318_v25, %v2302_v7  ;;  %v5034_v34 = vpack.c.bf16 %v2320_v27, %v2304_v26  ;;  %v2478_v22 = vld [vmem:[#allocation4 + $0x1a88] sm:$0xff]  ;;  %v2461_v27 = vld [vmem:[#allocation4 + $0x1a00] sm:$0xff] }
 0x11f   : > { %v4926_v26 = vpack.c.bf16 %v2478_v22, %v2462_v21 }
 0x120   : > { %2718 = vmatmul.mubr.f32.vlgmr.msra.gmra.mrb[16].mxu0 %v1621_v39  ;;  %2872 = vmatmul.mubr.f32.vlgmr.msra.gmra.mrb[16].mxu1 %v1621_v39  ;;  %v4908_v39 = vpack.c.bf16 %v2317_v32, %v2301_v31  ;;  %v2479_v31 = vld [vmem:[#allocation4 + $0x1a90] sm:$0xff]  ;;  %v2494_v32 = vld [vmem:[#allocation4 + $0x1b08] sm:$0xff] }
 0x121   : > { %4889 = vmatpush1.bf16.msra.mxu0 %v4888_v40  ;;  %5017 = vmatpush1.bf16.msra.mxu1 %v5016_v41  ;;  %v5036_v40 = vpack.c.bf16 %v2319_v45, %v2303_v33  ;;  %v4910_v41 = vpack.c.bf16 %v2350_v36, %v2334_v35  ;;  %v2510_v33 = vld [vmem:[#allocation4 + $0x1b88] sm:$0xff]  ;;  %v2512_v45 = vld [vmem:[#allocation4 + $0x1b98] sm:$0xff] }
 0x122   : > { %4891 = vmatprep.subr.bf16.mxu0 %v4890_v42  ;;  %5019 = vmatprep.subr.bf16.mxu1 %v5018_v48  ;;  %v2333_v42 = vld [vmem:[#allocation4 + $0x1600] sm:$0xff]  ;;  %v2351_v48 = vld [vmem:[#allocation4 + $0x1690] sm:$0xff]  ;;  %v4930_v37 = vpack.c.bf16 %v2510_v33, %v2494_v32 }
 0x123   : > { %2723 = vmatprep.mubr.f32.mxu0 %v1626_v54  ;;  %2877 = vmatprep.mubr.f32.mxu1 %v1626_v54  ;;  %v4912_v53 = vpack.c.bf16 %v2349_v43, %v2333_v42  ;;  %v5040_v54 = vpack.c.bf16 %v2351_v48, %v2335_v44  ;;  %v2511_v42 = vld [vmem:[#allocation4 + $0x1b90] sm:$0xff]  ;;  %v2526_v43 = vld [vmem:[#allocation4 + $0x1c08] sm:$0xff]  ;;  %v2544_v48 = vld [vmem:[#allocation4 + $0x1c98] sm:$0xff] }
 0x124   : > { %2724 = vmatmul.mubr.f32.gmra.mrb[18].mxu0 %v1625_v56  ;;  %2878 = vmatmul.mubr.f32.gmra.mrb[18].mxu1 %v1625_v56  ;;  %v2365_v56 = vld [vmem:[#allocation4 + $0x1700] sm:$0xff]  ;;  %v2542_v44 = vld [vmem:[#allocation4 + $0x1c88] sm:$0xff] }
 0x125   : > { %4893 = vmatpush1.bf16.msra.mxu0 %v4892_v55  ;;  %5021 = vmatpush1.bf16.msra.mxu1 %v5020_v57  ;;  %v4914_v55 = vpack.c.bf16 %v2382_v50, %v2366_v49  ;;  %v2381_v57 = vld [vmem:[#allocation4 + $0x1780] sm:$0xff]  ;;  %v4934_v51 = vpack.c.bf16 %v2542_v44, %v2526_v43  ;;  %v1628_v43 = vld [vmem:[%s6482_s27 + $0x38] sm:$0x3] }
 0x126   : > { %4895 = vmatprep.subr.bf16.mxu0 %v4894_v58  ;;  %5023 = vmatprep.subr.bf16.mxu1 %v5022_v47  ;;  %v2367_v58 = vld [vmem:[#allocation4 + $0x1710] sm:$0xff]  ;;  %v2414_v47 = vld [vmem:[#allocation4 + $0x1888] sm:$0xff]  ;;  %v4916_v1 = vpack.c.bf16 %v2381_v57, %v2365_v56  ;;  %v1668_v44 = vld [vmem:[#allocation4 + $0x138] sm:$0xff] }
 0x127   : > { %2794 = vmatprep.mubr.f32.mxu0 %v1624_v4  ;;  %2948 = vmatprep.mubr.f32.mxu1 %v1624_v4  ;;  %v5044_v2 = vpack.c.bf16 %v2383_v61, %v2367_v58  ;;  %v4918_v3 = vpack.c.bf16 %v2414_v47, %v2398_v62  ;;  %v2397_v4 = vld [vmem:[#allocation4 + $0x1800] sm:$0xff]  ;;  %v2543_v56 = vld [vmem:[#allocation4 + $0x1c90] sm:$0xff]  ;;  %v2558_v57 = vld [vmem:[#allocation4 + $0x1d08] sm:$0xff] }
 0x128   : > { %v2574_v58 = vld [vmem:[#allocation4 + $0x1d88] sm:$0xff]  ;;  %v2576_v61 = vld [vmem:[#allocation4 + $0x1d98] sm:$0xff] }
 0x129   : > { %4897 = vmatpush1.bf16.msra.mxu0 %v4896_v5  ;;  %5025 = vmatpush1.bf16.msra.mxu1 %v5024_v6  ;;  %v2413_v5 = vld [vmem:[#allocation4 + $0x1880] sm:$0xff]  ;;  %v2399_v6 = vld [vmem:[#allocation4 + $0x1810] sm:$0xff] }
 0x12a   : > { %4899 = vmatprep.subr.bf16.mxu0 %v4898_v60  ;;  %5027 = vmatprep.subr.bf16.mxu1 %v5026_v11  ;;  %v5046_v60 = vpack.c.bf16 %v2416_v0, %v2400_v63  ;;  %v2432_v11 = vld [vmem:[#allocation4 + $0x1918] sm:$0xff]  ;;  %v4920_v13 = vpack.c.bf16 %v2413_v5, %v2397_v4  ;;  %v5048_v14 = vpack.c.bf16 %v2415_v8, %v2399_v6  ;;  %v2557_v0 = vld [vmem:[#allocation4 + $0x1d00] sm:$0xff]  ;;  %v2575_v4 = vld [vmem:[#allocation4 + $0x1d90] sm:$0xff] }
 0x12b   : > { %v4938_v63 = vpack.c.bf16 %v2574_v58, %v2558_v57  ;;  %v2590_v5 = vld [vmem:[#allocation4 + $0x1e08] sm:$0xff]  ;;  %v2608_v8 = vld [vmem:[#allocation4 + $0x1e98] sm:$0xff] }
 0x12c   : > { %v2606_v6 = vld [vmem:[#allocation4 + $0x1e88] sm:$0xff]  ;;  %v1700_v57 = vld [vmem:[#allocation4 + $0x238] sm:$0xff] }
 0x12d   : > { %4901 = vmatpush1.bf16.msra.mxu0 %v4900_v17  ;;  %5029 = vmatpush1.bf16.msra.mxu1 %v5028_v18  ;;  %v2445_v17 = vld [vmem:[#allocation4 + $0x1980] sm:$0xff]  ;;  %v2431_v18 = vld [vmem:[#allocation4 + $0x1910] sm:$0xff]  ;;  %v1716_v58 = vld [vmem:[#allocation4 + $0x2b8] sm:$0xff] }
 0x12e   : > { %4903 = vmatprep.subr.bf16.mxu0 %v4902_v19  ;;  %5031 = vmatprep.subr.bf16.mxu1 %v5030_v23  ;;  %v5050_v19 = vpack.c.bf16 %v2448_v12, %v2432_v11  ;;  %v2464_v23 = vld [vmem:[#allocation4 + $0x1a18] sm:$0xff]  ;;  %v4924_v7 = vpack.c.bf16 %v2445_v17, %v2429_v16  ;;  %v5052_v25 = vpack.c.bf16 %v2447_v20, %v2431_v18  ;;  %v2589_v12 = vld [vmem:[#allocation4 + $0x1e00] sm:$0xff]  ;;  %v2607_v16 = vld [vmem:[#allocation4 + $0x1e90] sm:$0xff] }
 0x12f   : > { %v4942_v11 = vpack.c.bf16 %v2606_v6, %v2590_v5  ;;  %v2622_v17 = vld [vmem:[#allocation4 + $0x1f08] sm:$0xff]  ;;  %v2640_v20 = vld [vmem:[#allocation4 + $0x1f98] sm:$0xff] }
 0x130   : > { %v2638_v18 = vld [vmem:[#allocation4 + $0x1f88] sm:$0xff]  ;;  %v1732_v6 = vld [vmem:[#allocation4 + $0x338] sm:$0xff] }
 0x131   : > { %4905 = vmatpush1.bf16.msra.mxu0 %v4904_v28  ;;  %5033 = vmatpush1.bf16.msra.mxu1 %v5032_v29  ;;  %v2477_v28 = vld [vmem:[#allocation4 + $0x1a80] sm:$0xff]  ;;  %v2463_v29 = vld [vmem:[#allocation4 + $0x1a10] sm:$0xff]  ;;  %v1746_v5 = vld [vmem:[#allocation4 + $0x3a8] sm:$0xff] }
 0x132   : > { %4907 = vmatprep.subr.bf16.mxu0 %v4906_v30  ;;  %5035 = vmatprep.subr.bf16.mxu1 %v5034_v34  ;;  %v5054_v30 = vpack.c.bf16 %v2480_v24, %v2464_v23  ;;  %v2496_v34 = vld [vmem:[#allocation4 + $0x1b18] sm:$0xff]  ;;  %v4928_v35 = vpack.c.bf16 %v2477_v28, %v2461_v27  ;;  %v5056_v36 = vpack.c.bf16 %v2479_v31, %v2463_v29  ;;  %v2621_v24 = vld [vmem:[#allocation4 + $0x1f00] sm:$0xff]  ;;  %v2639_v27 = vld [vmem:[#allocation4 + $0x1f90] sm:$0xff] }
 0x133   : > { %v4946_v23 = vpack.c.bf16 %v2638_v18, %v2622_v17  ;;  %v1634_v28 = vld [vmem:[#allocation4 + $0x28] sm:$0xff]  ;;  %v1652_v31 = vld [vmem:[#allocation4 + $0xb8] sm:$0xff] }
 0x134   : > { %v1650_v29 = vld [vmem:[#allocation4 + $0xa8] sm:$0xff] }
 0x135   : > { %4909 = vmatpush1.bf16.msra.mxu0 %v4908_v39  ;;  %5037 = vmatpush1.bf16.msra.mxu1 %v5036_v40  ;;  %v2509_v39 = vld [vmem:[#allocation4 + $0x1b80] sm:$0xff]  ;;  %v2495_v40 = vld [vmem:[#allocation4 + $0x1b10] sm:$0xff]  ;;  %v1778_v17 = vld [vmem:[#allocation4 + $0x4a8] sm:$0xff] }
 0x136   : > { %4911 = vmatprep.subr.bf16.mxu0 %v4910_v41  ;;  %5039 = vmatprep.subr.bf16.mxu1 %v5038_v46  ;;  %v5058_v41 = vpack.c.bf16 %v2512_v45, %v2496_v34  ;;  %v2528_v46 = vld [vmem:[#allocation4 + $0x1c18] sm:$0xff]  ;;  %v4932_v49 = vpack.c.bf16 %v2509_v39, %v2493_v38  ;;  %v5060_v50 = vpack.c.bf16 %v2511_v42, %v2495_v40  ;;  %v1633_v45 = vld [vmem:[#allocation4 + $0x20] sm:$0xff]  ;;  %v1651_v38 = vld [vmem:[#allocation4 + $0xb0] sm:$0xff] }
 0x137   : > { %v5078_v34 = vpack.c.bf16 %v1650_v29, %v1634_v28  ;;  %v1623_v39 = vld [vmem:[%s6482_s27 + $0x10] sm:$0xff]  ;;  %v1666_v40 = vld [vmem:[#allocation4 + $0x128] sm:$0xff] }
 0x138   : > { %v6079_v18 = vld [vmem:[%s6482_s27 + $0x8] sm:$0xff] }
 0x139   : > { %4913 = vmatpush1.bf16.msra.mxu0 %v4912_v53  ;;  %5041 = vmatpush1.bf16.msra.mxu1 %v5040_v54  ;;  %v2541_v53 = vld [vmem:[#allocation4 + $0x1c80] sm:$0xff]  ;;  %v2527_v54 = vld [vmem:[#allocation4 + $0x1c10] sm:$0xff]  ;;  %v1794_v28 = vld [vmem:[#allocation4 + $0x528] sm:$0xff] }
 0x13a   : > { %4915 = vmatprep.subr.bf16.mxu0 %v4914_v55  ;;  %5043 = vmatprep.subr.bf16.mxu1 %v5042_v59  ;;  %v5062_v55 = vpack.c.bf16 %v2544_v48, %v2528_v46  ;;  %v2560_v59 = vld [vmem:[#allocation4 + $0x1d18] sm:$0xff]  ;;  %v4936_v62 = vpack.c.bf16 %v2541_v53, %v2525_v52  ;;  %v5064_v47 = vpack.c.bf16 %v2543_v56, %v2527_v54  ;;  %v1683_v53 = vld [vmem:[#allocation4 + $0x1b0] sm:$0xff]  ;;  %v1698_v54 = vld [vmem:[#allocation4 + $0x228] sm:$0xff] }
 0x13b   : > { %v1684_v46 = vld [vmem:[#allocation4 + $0x1b8] sm:$0xff]  ;;  %v1810_v29 = vld [vmem:[#allocation4 + $0x5a8] sm:$0xff] }
 0x13c   : > { %v5210_v56 = vpack.c.bf16 %v1684_v46, %v1668_v44 }
 0x13d   : > { %4917 = vmatpush1.bf16.msra.mxu0 %v4916_v1  ;;  %5045 = vmatpush1.bf16.msra.mxu1 %v5044_v2  ;;  %v2573_v1 = vld [vmem:[#allocation4 + $0x1d80] sm:$0xff]  ;;  %v2559_v2 = vld [vmem:[#allocation4 + $0x1d10] sm:$0xff] }
 0x13e   : > { %4919 = vmatprep.subr.bf16.mxu0 %v4918_v3  ;;  %5047 = vmatprep.subr.bf16.mxu1 %v5046_v60  ;;  %v5066_v3 = vpack.c.bf16 %v2576_v61, %v2560_v59  ;;  %v2592_v60 = vld [vmem:[#allocation4 + $0x1e18] sm:$0xff]  ;;  %v4940_v9 = vpack.c.bf16 %v2573_v1, %v2557_v0  ;;  %v5068_v10 = vpack.c.bf16 %v2575_v4, %v2559_v2  ;;  %v1627_v59 = vld [vmem:[%s6482_s27 + $0x30] sm:$0x3]  ;;  %v1713_v0 = vld [vmem:[#allocation4 + $0x2a0] sm:$0xff] }
 0x13f   : > { %v1699_v1 = vld [vmem:[#allocation4 + $0x230] sm:$0xff]  ;;  %v5214_v2 = vpack.c.bf16 %v1716_v58, %v1700_v57  ;;  %v1730_v4 = vld [vmem:[#allocation4 + $0x328] sm:$0xff] }
 0x141   : > { %4921 = vmatpush1.bf16.msra.mxu0 %v4920_v13  ;;  %5049 = vmatpush1.bf16.msra.mxu1 %v5048_v14  ;;  %v2605_v13 = vld [vmem:[#allocation4 + $0x1e80] sm:$0xff]  ;;  %v2591_v14 = vld [vmem:[#allocation4 + $0x1e10] sm:$0xff] }
 0x142   : > { %4923 = vmatprep.subr.bf16.mxu0 %v4922_v15  ;;  %5051 = vmatprep.subr.bf16.mxu1 %v5050_v19  ;;  %v5070_v15 = vpack.c.bf16 %v2608_v8, %v2592_v60  ;;  %v2624_v19 = vld [vmem:[#allocation4 + $0x1f18] sm:$0xff]  ;;  %v4944_v21 = vpack.c.bf16 %v2605_v13, %v2589_v12  ;;  %v5072_v22 = vpack.c.bf16 %v2607_v16, %v2591_v14  ;;  %v1745_v12 = vld [vmem:[#allocation4 + $0x3a0] sm:$0xff]  ;;  %v1731_v13 = vld [vmem:[#allocation4 + $0x330] sm:$0xff] }
 0x143   : > { %v1748_v60 = vld [vmem:[#allocation4 + $0x3b8] sm:$0xff]  ;;  %v1762_v16 = vld [vmem:[#allocation4 + $0x428] sm:$0xff] }
 0x144   : > { %v5218_v14 = vpack.c.bf16 %v1748_v60, %v1732_v6 }
 0x145   : > { %4925 = vmatpush1.bf16.msra.mxu0 %v4924_v7  ;;  %5053 = vmatpush1.bf16.msra.mxu1 %v5052_v25  ;;  %v2637_v7 = vld [vmem:[#allocation4 + $0x1f80] sm:$0xff]  ;;  %v2623_v25 = vld [vmem:[#allocation4 + $0x1f10] sm:$0xff] }
 0x146   : > { %4927 = vmatprep.subr.bf16.mxu0 %v4926_v26  ;;  %5055 = vmatprep.subr.bf16.mxu1 %v5054_v30  ;;  %v5074_v26 = vpack.c.bf16 %v2640_v20, %v2624_v19  ;;  %v1636_v30 = vld [vmem:[#allocation4 + $0x38] sm:$0xff]  ;;  %v4948_v32 = vpack.c.bf16 %v2637_v7, %v2621_v24  ;;  %v5076_v33 = vpack.c.bf16 %v2639_v27, %v2623_v25  ;;  %v1761_v24 = vld [vmem:[#allocation4 + $0x420] sm:$0xff]  ;;  %v1763_v25 = vld [vmem:[#allocation4 + $0x430] sm:$0xff] }
 0x147   : > { %v1764_v19 = vld [vmem:[#allocation4 + $0x438] sm:$0xff]  ;;  %v1777_v7 = vld [vmem:[#allocation4 + $0x4a0] sm:$0xff]  ;;  %v1779_v27 = vld [vmem:[#allocation4 + $0x4b0] sm:$0xff] }
 0x148   : > { %v1780_v20 = vld [vmem:[#allocation4 + $0x4b8] sm:$0xff] }
 0x149   : > { %4929 = vmatpush1.bf16.msra.mxu0 %v4928_v35  ;;  %5057 = vmatpush1.bf16.msra.mxu1 %v5056_v36  ;;  %v1649_v35 = vld [vmem:[#allocation4 + $0xa0] sm:$0xff]  ;;  %v5206_v36 = vpack.c.bf16 %v1652_v31, %v1636_v30  ;;  %v1796_v30 = vld [vmem:[#allocation4 + $0x538] sm:$0xff] }
 0x14a   : > { %4931 = vmatprep.subr.bf16.mxu0 %v4930_v37  ;;  %5059 = vmatprep.subr.bf16.mxu1 %v5058_v41  ;;  %v1635_v37 = vld [vmem:[#allocation4 + $0x30] sm:$0xff]  ;;  %v1682_v41 = vld [vmem:[#allocation4 + $0x1a8] sm:$0xff]  ;;  %v5080_v42 = vpack.c.bf16 %v1649_v35, %v1633_v45  ;;  %v1812_v31 = vld [vmem:[#allocation4 + $0x5b8] sm:$0xff] }
 0x14b   : > { %v5208_v48 = vpack.c.bf16 %v1651_v38, %v1635_v37  ;;  %v5082_v52 = vpack.c.bf16 %v1682_v41, %v1666_v40  ;;  %v1793_v45 = vld [vmem:[#allocation4 + $0x520] sm:$0xff]  ;;  %v5226_v37 = vpack.c.bf16 %v1812_v31, %v1796_v30  ;;  %v1811_v38 = vld [vmem:[#allocation4 + $0x5b0] sm:$0xff]  ;;  %v1842_v40 = vld [vmem:[#allocation4 + $0x6a8] sm:$0xff] }
 0x14c   : > { %v1809_v35 = vld [vmem:[#allocation4 + $0x5a0] sm:$0xff]  ;;  %v1828_v41 = vld [vmem:[#allocation4 + $0x638] sm:$0xff] }
 0x14d   : > { %4933 = vmatpush1.bf16.msra.mxu0 %v4932_v49  ;;  %5061 = vmatpush1.bf16.msra.mxu1 %v5060_v50  ;;  %v1665_v49 = vld [vmem:[#allocation4 + $0x120] sm:$0xff]  ;;  %v1972_v30 = vld [vmem:[#allocation4 + $0xab8] sm:$0xff] }
 0x14e   : > { %4935 = vmatprep.subr.bf16.mxu0 %v4934_v51  ;;  %5063 = vmatprep.subr.bf16.mxu1 %v5062_v55  ;;  %v1681_v50 = vld [vmem:[#allocation4 + $0x1a0] sm:$0xff]  ;;  %v1667_v51 = vld [vmem:[#allocation4 + $0x130] sm:$0xff]  ;;  %v1714_v55 = vld [vmem:[#allocation4 + $0x2a8] sm:$0xff] }
 0x14f   : > { %v5084_v61 = vpack.c.bf16 %v1681_v50, %v1665_v49  ;;  %v1841_v49 = vld [vmem:[#allocation4 + $0x6a0] sm:$0xff]  ;;  %v1827_v50 = vld [vmem:[#allocation4 + $0x630] sm:$0xff] }
 0x151   : > { %4937 = vmatpush1.bf16.msra.mxu0 %v4936_v62  ;;  %5065 = vmatpush1.bf16.msra.mxu1 %v5064_v47  ;;  %v5212_v62 = vpack.c.bf16 %v1683_v53, %v1667_v51  ;;  %v5086_v47 = vpack.c.bf16 %v1714_v55, %v1698_v54  ;;  %v1858_v53 = vld [vmem:[#allocation4 + $0x728] sm:$0xff]  ;;  %v1860_v55 = vld [vmem:[#allocation4 + $0x738] sm:$0xff] }
 0x152   : > { %4939 = vmatprep.subr.bf16.mxu0 %v4938_v63  ;;  %5067 = vmatprep.subr.bf16.mxu1 %v5066_v3  ;;  %v1697_v63 = vld [vmem:[#allocation4 + $0x220] sm:$0xff]  ;;  %v1715_v3 = vld [vmem:[#allocation4 + $0x2b0] sm:$0xff]  ;;  %v1874_v54 = vld [vmem:[#allocation4 + $0x7a8] sm:$0xff] }
 0x153   : > { %v5088_v8 = vpack.c.bf16 %v1713_v0, %v1697_v63  ;;  %v1875_v0 = vld [vmem:[#allocation4 + $0x7b0] sm:$0xff] }
 0x155   : > { %4941 = vmatpush1.bf16.msra.mxu0 %v4940_v9  ;;  %5069 = vmatpush1.bf16.msra.mxu1 %v5068_v10  ;;  %v5216_v9 = vpack.c.bf16 %v1715_v3, %v1699_v1  ;;  %v5090_v10 = vpack.c.bf16 %v1746_v5, %v1730_v4  ;;  %v1890_v1 = vld [vmem:[#allocation4 + $0x828] sm:$0xff]  ;;  %v1892_v3 = vld [vmem:[#allocation4 + $0x838] sm:$0xff] }
 0x156   : > { %4943 = vmatprep.subr.bf16.mxu0 %v4942_v11  ;;  %5071 = vmatprep.subr.bf16.mxu1 %v5070_v15  ;;  %v1729_v11 = vld [vmem:[#allocation4 + $0x320] sm:$0xff]  ;;  %v1747_v15 = vld [vmem:[#allocation4 + $0x3b0] sm:$0xff]  ;;  %v1908_v4 = vld [vmem:[#allocation4 + $0x8b8] sm:$0xff] }
 0x159   : > { %4945 = vmatpush1.bf16.msra.mxu0 %v4944_v21  ;;  %5073 = vmatpush1.bf16.msra.mxu1 %v5072_v22  ;;  %v5092_v21 = vpack.c.bf16 %v1745_v12, %v1729_v11  ;;  %v5220_v22 = vpack.c.bf16 %v1747_v15, %v1731_v13  ;;  %v5238_v11 = vpack.c.bf16 %v1908_v4, %v1892_v3  ;;  %v1907_v12 = vld [vmem:[#allocation4 + $0x8b0] sm:$0xff]  ;;  %v1922_v13 = vld [vmem:[#allocation4 + $0x928] sm:$0xff]  ;;  %v1924_v15 = vld [vmem:[#allocation4 + $0x938] sm:$0xff] }
 0x15a   : > { %4947 = vmatprep.subr.bf16.mxu0 %v4946_v23  ;;  %5075 = vmatprep.subr.bf16.mxu1 %v5074_v26  ;;  %v5094_v23 = vpack.c.bf16 %v1778_v17, %v1762_v16  ;;  %v5222_v26 = vpack.c.bf16 %v1780_v20, %v1764_v19  ;;  %v1940_v16 = vld [vmem:[#allocation4 + $0x9b8] sm:$0xff]  ;;  %v1921_v20 = vld [vmem:[#allocation4 + $0x920] sm:$0xff] }
 0x15d   : > { %4949 = vmatpush1.bf16.msra.mxu0 %v4948_v32  ;;  %5077 = vmatpush1.bf16.msra.mxu1 %v5076_v33  ;;  %v5096_v32 = vpack.c.bf16 %v1777_v7, %v1761_v24  ;;  %v5224_v33 = vpack.c.bf16 %v1779_v27, %v1763_v25  ;;  %v5242_v24 = vpack.c.bf16 %v1940_v16, %v1924_v15  ;;  %v1939_v7 = vld [vmem:[#allocation4 + $0x9b0] sm:$0xff]  ;;  %v1954_v25 = vld [vmem:[#allocation4 + $0xa28] sm:$0xff]  ;;  %v2052_v15 = vld [vmem:[#allocation4 + $0xd38] sm:$0xff] }
 0x15e   : > { %5079 = vmatprep.subr.bf16.mxu0 %v5078_v34  ;;  %5207 = vmatprep.subr.bf16.mxu1 %v5206_v36  ;;  %v5098_v34 = vpack.c.bf16 %v1810_v29, %v1794_v28  ;;  %v1795_v36 = vld [vmem:[#allocation4 + $0x530] sm:$0xff]  ;;  %v1956_v29 = vld [vmem:[#allocation4 + $0xa38] sm:$0xff] }
 0x15f   : > { %v5228_v44 = vpack.c.bf16 %v1811_v38, %v1795_v36  ;;  %v1969_v38 = vld [vmem:[#allocation4 + $0xaa0] sm:$0xff]  ;;  %v2068_v16 = vld [vmem:[#allocation4 + $0xdb8] sm:$0xff] }
 0x160   : > { %2795 = vmatmul.mubr.f32.vlgmr.msra.gmra.mrb[16].mxu0 %v1623_v39  ;;  %2949 = vmatmul.mubr.f32.vlgmr.msra.gmra.mrb[16].mxu1 %v1623_v39  ;;  %v1826_v39 = vld [vmem:[#allocation4 + $0x628] sm:$0xff] }
 0x161   : > { %5081 = vmatpush1.bf16.msra.mxu0 %v5080_v42  ;;  %5209 = vmatpush1.bf16.msra.mxu1 %v5208_v48  ;;  %v1844_v42 = vld [vmem:[#allocation4 + $0x6b8] sm:$0xff]  ;;  %v5102_v46 = vpack.c.bf16 %v1842_v40, %v1826_v39  ;;  %v1825_v48 = vld [vmem:[#allocation4 + $0x620] sm:$0xff]  ;;  %v1955_v39 = vld [vmem:[#allocation4 + $0xa30] sm:$0xff] }
 0x162   : > { %2800 = vmatprep.mubr.f32.mxu0 %v1628_v43  ;;  %2954 = vmatprep.mubr.f32.mxu1 %v1628_v43  ;;  %v5100_v43 = vpack.c.bf16 %v1809_v35, %v1793_v45  ;;  %v5230_v51 = vpack.c.bf16 %v1844_v42, %v1828_v41  ;;  %v5104_v57 = vpack.c.bf16 %v1841_v49, %v1825_v48  ;;  %v1971_v42 = vld [vmem:[#allocation4 + $0xab0] sm:$0xff]  ;;  %v2004_v48 = vld [vmem:[#allocation4 + $0xbb8] sm:$0xff] }
 0x163   : > { %5083 = vmatprep.subr.bf16.mxu0 %v5082_v52  ;;  %5211 = vmatprep.subr.bf16.mxu1 %v5210_v56  ;;  %v1843_v52 = vld [vmem:[#allocation4 + $0x6b0] sm:$0xff]  ;;  %v1876_v56 = vld [vmem:[#allocation4 + $0x7b8] sm:$0xff]  ;;  %v5246_v41 = vpack.c.bf16 %v1972_v30, %v1956_v29 }
 0x164   : > { %2801 = vmatmul.mubr.f32.gmra.mrb[18].mxu0 %v1627_v59  ;;  %2955 = vmatmul.mubr.f32.gmra.mrb[18].mxu1 %v1627_v59  ;;  %v5232_v58 = vpack.c.bf16 %v1843_v52, %v1827_v50  ;;  %v5106_v59 = vpack.c.bf16 %v1874_v54, %v1858_v53  ;;  %v5234_v63 = vpack.c.bf16 %v1876_v56, %v1860_v55  ;;  %v1985_v52 = vld [vmem:[#allocation4 + $0xb20] sm:$0xff]  ;;  %v1987_v54 = vld [vmem:[#allocation4 + $0xb30] sm:$0xff]  ;;  %v2084_v29 = vld [vmem:[#allocation4 + $0xe38] sm:$0xff] }
 0x165   : > { %5085 = vmatpush1.bf16.msra.mxu0 %v5084_v61  ;;  %5213 = vmatpush1.bf16.msra.mxu1 %v5212_v62  ;;  %v1857_v61 = vld [vmem:[#allocation4 + $0x720] sm:$0xff]  ;;  %v5248_v50 = vpack.c.bf16 %v1971_v42, %v1955_v39  ;;  %v2003_v56 = vld [vmem:[#allocation4 + $0xbb0] sm:$0xff]  ;;  %v2100_v30 = vld [vmem:[#allocation4 + $0xeb8] sm:$0xff] }
 0x166   : > { %5087 = vmatprep.subr.bf16.mxu0 %v5086_v47  ;;  %5215 = vmatprep.subr.bf16.mxu1 %v5214_v2  ;;  %v1873_v62 = vld [vmem:[#allocation4 + $0x7a0] sm:$0xff]  ;;  %v1859_v47 = vld [vmem:[#allocation4 + $0x730] sm:$0xff]  ;;  %v1906_v2 = vld [vmem:[#allocation4 + $0x8a8] sm:$0xff]  ;;  %v5252_v3 = vpack.c.bf16 %v2003_v56, %v1987_v54 }
 0x167   : > { %3025 = vmatprep.mubr.f32.mxu0 %v6079_v18  ;;  %3179 = vmatprep.mubr.f32.mxu1 %v6079_v18  ;;  %v5108_v5 = vpack.c.bf16 %v1873_v62, %v1857_v61  ;;  %v5236_v6 = vpack.c.bf16 %v1875_v0, %v1859_v47  ;;  %v5110_v60 = vpack.c.bf16 %v1906_v2, %v1890_v1  ;;  %v2001_v53 = vld [vmem:[#allocation4 + $0xba0] sm:$0xff]  ;;  %v2020_v61 = vld [vmem:[#allocation4 + $0xc38] sm:$0xff]  ;;  %v2083_v39 = vld [vmem:[#allocation4 + $0xe30] sm:$0xff] }
 0x168   : > { %v2036_v62 = vld [vmem:[#allocation4 + $0xcb8] sm:$0xff]  ;;  %v5124_v0 = vpack.c.bf16 %v2001_v53, %v1985_v52  ;;  %v2099_v42 = vld [vmem:[#allocation4 + $0xeb0] sm:$0xff]  ;;  %v2113_v52 = vld [vmem:[#allocation4 + $0xf20] sm:$0xff] }
 0x169   : > { %5089 = vmatpush1.bf16.msra.mxu0 %v5088_v8  ;;  %5217 = vmatpush1.bf16.msra.mxu1 %v5216_v9  ;;  %v1889_v8 = vld [vmem:[#allocation4 + $0x820] sm:$0xff]  ;;  %v2115_v54 = vld [vmem:[#allocation4 + $0xf30] sm:$0xff] }
 0x16a   : > { %5091 = vmatprep.subr.bf16.mxu0 %v5090_v10  ;;  %5219 = vmatprep.subr.bf16.mxu1 %v5218_v14  ;;  %v1905_v9 = vld [vmem:[#allocation4 + $0x8a0] sm:$0xff]  ;;  %v1891_v10 = vld [vmem:[#allocation4 + $0x830] sm:$0xff]  ;;  %v1938_v14 = vld [vmem:[#allocation4 + $0x9a8] sm:$0xff] }
 0x16b   : > { %v5112_v17 = vpack.c.bf16 %v1905_v9, %v1889_v8  ;;  %v5240_v18 = vpack.c.bf16 %v1907_v12, %v1891_v10  ;;  %v5114_v19 = vpack.c.bf16 %v1938_v14, %v1922_v13  ;;  %v5254_v10 = vpack.c.bf16 %v2036_v62, %v2020_v61  ;;  %v2050_v12 = vld [vmem:[#allocation4 + $0xd28] sm:$0xff]  ;;  %v2129_v53 = vld [vmem:[#allocation4 + $0xfa0] sm:$0xff]  ;;  %v2131_v56 = vld [vmem:[#allocation4 + $0xfb0] sm:$0xff] }
 0x16c   : > { %v2066_v13 = vld [vmem:[#allocation4 + $0xda8] sm:$0xff]  ;;  %v2148_v61 = vld [vmem:[#allocation4 + $0x1038] sm:$0xff] }
 0x16d   : > { %5093 = vmatpush1.bf16.msra.mxu0 %v5092_v21  ;;  %5221 = vmatpush1.bf16.msra.mxu1 %v5220_v22  ;;  %v1937_v21 = vld [vmem:[#allocation4 + $0x9a0] sm:$0xff]  ;;  %v1923_v22 = vld [vmem:[#allocation4 + $0x930] sm:$0xff]  ;;  %v2164_v62 = vld [vmem:[#allocation4 + $0x10b8] sm:$0xff] }
 0x16e   : > { %5095 = vmatprep.subr.bf16.mxu0 %v5094_v23  ;;  %5223 = vmatprep.subr.bf16.mxu1 %v5222_v26  ;;  %v1970_v26 = vld [vmem:[#allocation4 + $0xaa8] sm:$0xff]  ;;  %v5244_v35 = vpack.c.bf16 %v1939_v7, %v1923_v22  ;;  %v2051_v22 = vld [vmem:[#allocation4 + $0xd30] sm:$0xff] }
 0x16f   : > { %v5118_v36 = vpack.c.bf16 %v1970_v26, %v1954_v25  ;;  %v2067_v7 = vld [vmem:[#allocation4 + $0xdb0] sm:$0xff]  ;;  %v2082_v25 = vld [vmem:[#allocation4 + $0xe28] sm:$0xff] }
 0x170   : > { %v2098_v26 = vld [vmem:[#allocation4 + $0xea8] sm:$0xff] }
 0x171   : > { %5097 = vmatpush1.bf16.msra.mxu0 %v5096_v32  ;;  %5225 = vmatpush1.bf16.msra.mxu1 %v5224_v33  ;;  %v5116_v33 = vpack.c.bf16 %v1937_v21, %v1921_v20  ;;  %v2049_v20 = vld [vmem:[#allocation4 + $0xd20] sm:$0xff] }
 0x172   : > { %5099 = vmatprep.subr.bf16.mxu0 %v5098_v34  ;;  %5227 = vmatprep.subr.bf16.mxu1 %v5226_v37  ;;  %v1953_v37 = vld [vmem:[#allocation4 + $0xa20] sm:$0xff] }
 0x173   : > { %v5120_v49 = vpack.c.bf16 %v1969_v38, %v1953_v37  ;;  %v2065_v21 = vld [vmem:[#allocation4 + $0xda0] sm:$0xff] }
 0x174   : > { %v2081_v37 = vld [vmem:[#allocation4 + $0xe20] sm:$0xff] }
 0x175   : > { %5101 = vmatpush1.bf16.msra.mxu0 %v5100_v43  ;;  %5229 = vmatpush1.bf16.msra.mxu1 %v5228_v44  ;;  %v1986_v43 = vld [vmem:[#allocation4 + $0xb28] sm:$0xff]  ;;  %v2097_v38 = vld [vmem:[#allocation4 + $0xea0] sm:$0xff] }
 0x176   : > { %5103 = vmatprep.subr.bf16.mxu0 %v5102_v46  ;;  %5231 = vmatprep.subr.bf16.mxu1 %v5230_v51  ;;  %v2002_v44 = vld [vmem:[#allocation4 + $0xba8] sm:$0xff]  ;;  %v1988_v46 = vld [vmem:[#allocation4 + $0xb38] sm:$0xff] }
 0x177   : > { %v5122_v51 = vpack.c.bf16 %v2002_v44, %v1986_v43  ;;  %v5250_v55 = vpack.c.bf16 %v2004_v48, %v1988_v46  ;;  %v2114_v43 = vld [vmem:[#allocation4 + $0xf28] sm:$0xff]  ;;  %v2116_v46 = vld [vmem:[#allocation4 + $0xf38] sm:$0xff] }
 0x178   : > { %v2130_v44 = vld [vmem:[#allocation4 + $0xfa8] sm:$0xff]  ;;  %v2132_v48 = vld [vmem:[#allocation4 + $0xfb8] sm:$0xff] }
 0x179   : > { %5105 = vmatpush1.bf16.msra.mxu0 %v5104_v57  ;;  %5233 = vmatpush1.bf16.msra.mxu1 %v5232_v58  ;;  %v2018_v57 = vld [vmem:[#allocation4 + $0xc28] sm:$0xff] }
 0x17a   : > { %5107 = vmatprep.subr.bf16.mxu0 %v5106_v59  ;;  %5235 = vmatprep.subr.bf16.mxu1 %v5234_v63  ;;  %v2034_v58 = vld [vmem:[#allocation4 + $0xca8] sm:$0xff] }
 0x17b   : > { %v5126_v4 = vpack.c.bf16 %v2034_v58, %v2018_v57  ;;  %v2146_v57 = vld [vmem:[#allocation4 + $0x1028] sm:$0xff] }
 0x17c   : > { %v2162_v58 = vld [vmem:[#allocation4 + $0x10a8] sm:$0xff] }
 0x17d   : > { %5109 = vmatpush1.bf16.msra.mxu0 %v5108_v5  ;;  %5237 = vmatpush1.bf16.msra.mxu1 %v5236_v6  ;;  %v2017_v5 = vld [vmem:[#allocation4 + $0xc20] sm:$0xff] }
 0x17e   : > { %5111 = vmatprep.subr.bf16.mxu0 %v5110_v60  ;;  %5239 = vmatprep.subr.bf16.mxu1 %v5238_v11  ;;  %v2033_v6 = vld [vmem:[#allocation4 + $0xca0] sm:$0xff]  ;;  %v2019_v60 = vld [vmem:[#allocation4 + $0xc30] sm:$0xff] }
 0x17f   : > { %v6495_v23 = vpop.f32.mrb[0].mxu0  ;;  %v6497_v27 = vpop.f32.mrb[0].mxu1  ;;  %v2035_v11 = vld [vmem:[#allocation4 + $0xcb0] sm:$0xff] }
 0x180   : > { %v6499_v28 = vpop.f32.mrb[1].mxu0  ;;  %v6501_v31 = vpop.f32.mrb[1].mxu1 }
 0x181   : > { %v6503_v32 = vpop.f32.mrb[2].mxu0  ;;  %5113 = vmatpush1.bf16.msra.mxu0 %v5112_v17  ;;  %v6505_v34 = vpop.f32.mrb[2].mxu1  ;;  %5241 = vmatpush1.bf16.msra.mxu1 %v5240_v18  ;;  %v5128_v17 = vpack.c.bf16 %v2033_v6, %v2017_v5  ;;  %v5256_v18 = vpack.c.bf16 %v2035_v11, %v2019_v60  ;;  %v2161_v5 = vld [vmem:[#allocation4 + $0x10a0] sm:$0xff]  ;;  %v2147_v6 = vld [vmem:[#allocation4 + $0x1030] sm:$0xff]  ;;  %v5270_v60 = vpack.c.bf16 %v2164_v62, %v2148_v61  ;;  %v2180_v11 = vld [vmem:[#allocation4 + $0x1138] sm:$0xff] }
 0x182   : > { %v6507_v45 = vpop.f32.mrb[3].mxu0  ;;  %5115 = vmatprep.subr.bf16.mxu0 %v5114_v19  ;;  %v6509_v40 = vpop.f32.mrb[3].mxu1  ;;  %5243 = vmatprep.subr.bf16.mxu1 %v5242_v24  ;;  %v5130_v19 = vpack.c.bf16 %v2066_v13, %v2050_v12  ;;  %v5258_v24 = vpack.c.bf16 %v2068_v16, %v2052_v15  ;;  %v2196_v12 = vld [vmem:[#allocation4 + $0x11b8] sm:$0xff]  ;;  %v2177_v16 = vld [vmem:[#allocation4 + $0x1120] sm:$0xff] }
 0x183   : > { %v2276_v61 = vld [vmem:[#allocation4 + $0x1438] sm:$0xff] }
 0x184   : > { %v2292_v62 = vld [vmem:[#allocation4 + $0x14b8] sm:$0xff] }
 0x185   : > { %5117 = vmatpush1.bf16.msra.mxu0 %v5116_v33  ;;  %5245 = vmatpush1.bf16.msra.mxu1 %v5244_v35  ;;  %v5132_v33 = vpack.c.bf16 %v2065_v21, %v2049_v20  ;;  %v5260_v35 = vpack.c.bf16 %v2067_v7, %v2051_v22  ;;  %v2195_v20 = vld [vmem:[#allocation4 + $0x11b0] sm:$0xff]  ;;  %v2210_v21 = vld [vmem:[#allocation4 + $0x1228] sm:$0xff]  ;;  %v2212_v7 = vld [vmem:[#allocation4 + $0x1238] sm:$0xff] }
 0x186   : > { %5119 = vmatprep.subr.bf16.mxu0 %v5118_v36  ;;  %5247 = vmatprep.subr.bf16.mxu1 %v5246_v41  ;;  %v5134_v36 = vpack.c.bf16 %v2098_v26, %v2082_v25  ;;  %v5262_v41 = vpack.c.bf16 %v2100_v30, %v2084_v29  ;;  %v2226_v22 = vld [vmem:[#allocation4 + $0x12a8] sm:$0xff]  ;;  %v2228_v25 = vld [vmem:[#allocation4 + $0x12b8] sm:$0xff] }
 0x187   : > { %v6511_v59 = vpop.f32.mrb[4].mxu0  ;;  %v6513_v47 = vpop.f32.mrb[4].mxu1  ;;  %v5150_v30 = vpack.c.bf16 %v2226_v22, %v2210_v21  ;;  %v2354_v21 = vld [vmem:[#allocation4 + $0x16a8] sm:$0xff]  ;;  %v2340_v22 = vld [vmem:[#allocation4 + $0x1638] sm:$0xff] }
 0x188   : > { %v6515_v63 = vpop.f32.mrb[5].mxu0  ;;  %v6517_v1 = vpop.f32.mrb[5].mxu1 }
 0x189   : > { %5121 = vmatpush1.bf16.msra.mxu0 %v5120_v49  ;;  %v1026_v2 = vpop.f32.mrb[6].mxu0  ;;  %5249 = vmatpush1.bf16.msra.mxu1 %v5248_v50  ;;  %v1077_v8 = vpop.f32.mrb[6].mxu1  ;;  %v5136_v49 = vpack.c.bf16 %v2097_v38, %v2081_v37  ;;  %v5264_v50 = vpack.c.bf16 %v2099_v42, %v2083_v39  ;;  %v5278_v37 = vpack.c.bf16 %v2228_v25, %v2212_v7  ;;  %v2227_v38 = vld [vmem:[#allocation4 + $0x12b0] sm:$0xff]  ;;  %v2242_v39 = vld [vmem:[#allocation4 + $0x1328] sm:$0xff]  ;;  %v6523_v25 = vld [vmem:[#allocation4 + $0x1620] sm:$0xff] }
 0x18a   : > { %5123 = vmatprep.subr.bf16.mxu0 %v5122_v51  ;;  %v1027_v9 = vpop.f32.mrb[7].mxu0  ;;  %5251 = vmatprep.subr.bf16.mxu1 %v5250_v55  ;;  %v1078_v14 = vpop.f32.mrb[7].mxu1  ;;  %v5138_v51 = vpack.c.bf16 %v2130_v44, %v2114_v43  ;;  %v5266_v55 = vpack.c.bf16 %v2132_v48, %v2116_v46  ;;  %v5268_v2 = vpack.c.bf16 %v2131_v56, %v2115_v54  ;;  %v2163_v8 = vld [vmem:[#allocation4 + $0x10b0] sm:$0xff]  ;;  %v6081_v42 = vld [vmem:[%s6482_s27 + $0x28] sm:$0x3]  ;;  %v2244_v43 = vld [vmem:[#allocation4 + $0x1338] sm:$0xff] }
 0x18b   : > { %v2178_v9 = vld [vmem:[#allocation4 + $0x1128] sm:$0xff]  ;;  %v5272_v14 = vpack.c.bf16 %v2163_v8, %v2147_v6  ;;  %v2260_v44 = vld [vmem:[#allocation4 + $0x13b8] sm:$0xff]  ;;  %v6082_v46 = vld [vmem:[%s6482_s27 + $0x20] sm:$0x3]  ;;  %v5286_v8 = vpack.c.bf16 %v2292_v62, %v2276_v61 }
 0x18c   : > { %v5282_v54 = vpack.c.bf16 %v2260_v44, %v2244_v43  ;;  %v2274_v56 = vld [vmem:[#allocation4 + $0x1428] sm:$0xff]  ;;  %v2275_v6 = vld [vmem:[#allocation4 + $0x1430] sm:$0xff]  ;;  %v6559_v61 = vld [vmem:[#allocation4 + $0x1820] sm:$0xff] }
 0x18d   : > { %5125 = vmatpush1.bf16.msra.mxu0 %v5124_v0  ;;  %5253 = vmatpush1.bf16.msra.mxu1 %v5252_v3  ;;  %v5140_v0 = vpack.c.bf16 %v2129_v53, %v2113_v52  ;;  %v5142_v3 = vpack.c.bf16 %v2162_v58, %v2146_v57  ;;  %v2257_v52 = vld [vmem:[#allocation4 + $0x13a0] sm:$0xff]  ;;  %v2243_v53 = vld [vmem:[#allocation4 + $0x1330] sm:$0xff]  ;;  %v2290_v57 = vld [vmem:[#allocation4 + $0x14a8] sm:$0xff] }
 0x18e   : > { %5127 = vmatprep.subr.bf16.mxu0 %v5126_v4  ;;  %5255 = vmatprep.subr.bf16.mxu1 %v5254_v10  ;;  %v2145_v4 = vld [vmem:[#allocation4 + $0x1020] sm:$0xff]  ;;  %v2194_v10 = vld [vmem:[#allocation4 + $0x11a8] sm:$0xff]  ;;  %v6083_v58 = vld [vmem:[%s6482_s27 + $0x18] sm:$0xff] }
 0x18f   : > { %v5144_v13 = vpack.c.bf16 %v2161_v5, %v2145_v4  ;;  %v5146_v15 = vpack.c.bf16 %v2194_v10, %v2178_v9  ;;  %v5158_v4 = vpack.c.bf16 %v2290_v57, %v2274_v56  ;;  %v2289_v5 = vld [vmem:[#allocation4 + $0x14a0] sm:$0xff]  ;;  %v2306_v9 = vld [vmem:[#allocation4 + $0x1528] sm:$0xff]  ;;  %v6543_v44 = vld [vmem:[#allocation4 + $0x1730] sm:$0xff] }
 0x190   : > { %v2322_v10 = vld [vmem:[#allocation4 + $0x15a8] sm:$0xff]  ;;  %v6561_v62 = vld [vmem:[#allocation4 + $0x18a0] sm:$0xff] }
 0x191   : > { %5129 = vmatpush1.bf16.msra.mxu0 %v5128_v17  ;;  %5257 = vmatpush1.bf16.msra.mxu1 %v5256_v18  ;;  %v2193_v17 = vld [vmem:[#allocation4 + $0x11a0] sm:$0xff]  ;;  %v2179_v18 = vld [vmem:[#allocation4 + $0x1130] sm:$0xff] }
 0x192   : > { %5131 = vmatprep.subr.bf16.mxu0 %v5130_v19  ;;  %5259 = vmatprep.subr.bf16.mxu1 %v5258_v24  ;;  %v5274_v19 = vpack.c.bf16 %v2196_v12, %v2180_v11  ;;  %v6080_v24 = vld [vmem:[%s6482_s27] sm:$0xff]  ;;  %v5148_v26 = vpack.c.bf16 %v2193_v17, %v2177_v16  ;;  %v5276_v29 = vpack.c.bf16 %v2195_v20, %v2179_v18  ;;  %v2308_v11 = vld [vmem:[#allocation4 + $0x1538] sm:$0xff]  ;;  %v2307_v16 = vld [vmem:[#allocation4 + $0x1530] sm:$0xff] }
 0x193   : > { %v2324_v12 = vld [vmem:[#allocation4 + $0x15b8] sm:$0xff]  ;;  %v2323_v17 = vld [vmem:[#allocation4 + $0x15b0] sm:$0xff]  ;;  %v2338_v18 = vld [vmem:[#allocation4 + $0x1628] sm:$0xff]  ;;  %v5162_v20 = vpack.c.bf16 %v2322_v10, %v2306_v9 }
 0x194   : > { %v5290_v7 = vpack.c.bf16 %v2324_v12, %v2308_v11  ;;  %v5166_v43 = vpack.c.bf16 %v2354_v21, %v2338_v18  ;;  %v5176_v21 = vpack.c.bf16 %v6561_v62, %v6559_v61  ;;  %v2498_v62 = vld [vmem:[#allocation4 + $0x1b28] sm:$0xff] }
 0x195   : > { %5133 = vmatpush1.bf16.msra.mxu0 %v5132_v33  ;;  %5261 = vmatpush1.bf16.msra.mxu1 %v5260_v35  ;;  %v2209_v33 = vld [vmem:[#allocation4 + $0x1220] sm:$0xff] }
 0x196   : > { %5135 = vmatprep.subr.bf16.mxu0 %v5134_v36  ;;  %5263 = vmatprep.subr.bf16.mxu1 %v5262_v41  ;;  %v2225_v35 = vld [vmem:[#allocation4 + $0x12a0] sm:$0xff]  ;;  %v2211_v36 = vld [vmem:[#allocation4 + $0x1230] sm:$0xff]  ;;  %v2258_v41 = vld [vmem:[#allocation4 + $0x13a8] sm:$0xff] }
 0x197   : > { %v5152_v48 = vpack.c.bf16 %v2225_v35, %v2209_v33  ;;  %v6531_v33 = vld [vmem:[#allocation4 + $0x1728] sm:$0xff] }
 0x198   : > { %v6533_v35 = vld [vmem:[#allocation4 + $0x17a8] sm:$0xff] }
 0x199   : > { %5137 = vmatpush1.bf16.msra.mxu0 %v5136_v49  ;;  %5265 = vmatpush1.bf16.msra.mxu1 %v5264_v50  ;;  %v5280_v49 = vpack.c.bf16 %v2227_v38, %v2211_v36  ;;  %v5154_v50 = vpack.c.bf16 %v2258_v41, %v2242_v39  ;;  %v6535_v36 = vld [vmem:[#allocation4 + $0x1738] sm:$0xff]  ;;  %v6539_v39 = vld [vmem:[#allocation4 + $0x1720] sm:$0xff] }
 0x19a   : > { %5139 = vmatprep.subr.bf16.mxu0 %v5138_v51  ;;  %5267 = vmatprep.subr.bf16.mxu1 %v5266_v55  ;;  %v2241_v51 = vld [vmem:[#allocation4 + $0x1320] sm:$0xff]  ;;  %v2259_v55 = vld [vmem:[#allocation4 + $0x13b0] sm:$0xff]  ;;  %v6537_v38 = vld [vmem:[#allocation4 + $0x17b8] sm:$0xff] }
 0x19b   : > { %v6541_v41 = vld [vmem:[#allocation4 + $0x17a0] sm:$0xff] }
 0x19d   : > { %5141 = vmatpush1.bf16.msra.mxu0 %v5140_v0  ;;  %5269 = vmatpush1.bf16.msra.mxu1 %v5268_v2  ;;  %v5156_v0 = vpack.c.bf16 %v2257_v52, %v2241_v51  ;;  %v2273_v2 = vld [vmem:[#allocation4 + $0x1420] sm:$0xff]  ;;  %v6549_v51 = vld [vmem:[#allocation4 + $0x18a8] sm:$0xff]  ;;  %v6551_v52 = vld [vmem:[#allocation4 + $0x1838] sm:$0xff] }
 0x19e   : > { %5143 = vmatprep.subr.bf16.mxu0 %v5142_v3  ;;  %5271 = vmatprep.subr.bf16.mxu1 %v5270_v60  ;;  %v5284_v3 = vpack.c.bf16 %v2259_v55, %v2243_v53  ;;  %v2291_v60 = vld [vmem:[#allocation4 + $0x14b0] sm:$0xff]  ;;  %v6553_v53 = vld [vmem:[#allocation4 + $0x18b8] sm:$0xff] }
 0x1a0   : > { %3026 = vmatmul.mubr.f32.vlgmr.msra.gmra.mrb[20].mxu0 %v6080_v24  ;;  %3180 = vmatmul.mubr.f32.vlgmr.msra.gmra.mrb[20].mxu1 %v6080_v24  ;;  %v2356_v24 = vld [vmem:[#allocation4 + $0x16b8] sm:$0xff] }
 0x1a1   : > { %5145 = vmatpush1.bf16.msra.mxu0 %v5144_v13  ;;  %5273 = vmatpush1.bf16.msra.mxu1 %v5272_v14  ;;  %v2305_v13 = vld [vmem:[#allocation4 + $0x1520] sm:$0xff] }
 0x1a2   : > { %5147 = vmatprep.subr.bf16.mxu0 %v5146_v15  ;;  %5275 = vmatprep.subr.bf16.mxu1 %v5274_v19  ;;  %v2321_v14 = vld [vmem:[#allocation4 + $0x15a0] sm:$0xff]  ;;  %v5160_v15 = vpack.c.bf16 %v2289_v5, %v2273_v2  ;;  %v5288_v19 = vpack.c.bf16 %v2291_v60, %v2275_v6  ;;  %v5298_v5 = vpack.c.bf16 %v6537_v38, %v6535_v36  ;;  %v6571_v60 = vld [vmem:[#allocation4 + $0x1830] sm:$0xff] }
 0x1a3   : > { %3031 = vmatprep.mubr.f32.mxu0 %v6081_v42  ;;  %3185 = vmatprep.mubr.f32.mxu1 %v6081_v42  ;;  %v5292_v42 = vpack.c.bf16 %v2323_v17, %v2307_v16  ;;  %v5172_v6 = vpack.c.bf16 %v6541_v41, %v6539_v39  ;;  %v6588_v16 = vld [vmem:[#allocation4 + $0x19a8] sm:$0xff]  ;;  %v6613_v39 = vld [vmem:[#allocation4 + $0x1930] sm:$0xff] }
 0x1a4   : > { %3032 = vmatmul.mubr.f32.gmra.mrb[22].mxu0 %v6082_v46  ;;  %3186 = vmatmul.mubr.f32.gmra.mrb[22].mxu1 %v6082_v46  ;;  %v6545_v46 = vld [vmem:[#allocation4 + $0x17b0] sm:$0xff] }
 0x1a5   : > { %5149 = vmatpush1.bf16.msra.mxu0 %v5148_v26  ;;  %5277 = vmatpush1.bf16.msra.mxu1 %v5276_v29  ;;  %v6525_v26 = vld [vmem:[#allocation4 + $0x16a0] sm:$0xff]  ;;  %v6527_v29 = vld [vmem:[#allocation4 + $0x1630] sm:$0xff]  ;;  %v5300_v12 = vpack.c.bf16 %v6545_v46, %v6543_v44  ;;  %v6622_v46 = vld [vmem:[#allocation4 + $0x1aa8] sm:$0xff] }
 0x1a6   : > { %5151 = vmatprep.subr.bf16.mxu0 %v5150_v30  ;;  %5279 = vmatprep.subr.bf16.mxu1 %v5278_v37  ;;  %v6529_v30 = vld [vmem:[#allocation4 + $0x16b0] sm:$0xff]  ;;  %v5164_v37 = vpack.c.bf16 %v2321_v14, %v2305_v13  ;;  %v5168_v57 = vpack.c.bf16 %v6525_v26, %v6523_v25  ;;  %v5302_v14 = vpack.c.bf16 %v6553_v53, %v6551_v52 }
 0x1a7   : > { %3102 = vmatprep.mubr.f32.mxu0 %v6083_v58  ;;  %3256 = vmatprep.mubr.f32.mxu1 %v6083_v58  ;;  %v5296_v58 = vpack.c.bf16 %v6529_v30, %v6527_v29  ;;  %v6602_v29 = vld [vmem:[#allocation4 + $0x19b8] sm:$0xff]  ;;  %v6604_v30 = vld [vmem:[#allocation4 + $0x1920] sm:$0xff]  ;;  %v6615_v41 = vld [vmem:[#allocation4 + $0x19b0] sm:$0xff] }
 0x1a9   : > { %5153 = vmatpush1.bf16.msra.mxu0 %v5152_v48  ;;  %5281 = vmatpush1.bf16.msra.mxu1 %v5280_v49  ;;  %v6547_v48 = vld [vmem:[#allocation4 + $0x1828] sm:$0xff] }
 0x1aa   : > { %5155 = vmatprep.subr.bf16.mxu0 %v5154_v50  ;;  %5283 = vmatprep.subr.bf16.mxu1 %v5282_v54  ;;  %v5294_v50 = vpack.c.bf16 %v2356_v24, %v2340_v22  ;;  %v5174_v13 = vpack.c.bf16 %v6549_v51, %v6547_v48  ;;  %v6596_v22 = vld [vmem:[#allocation4 + $0x1938] sm:$0xff] }
 0x1ab   : > { %v5306_v51 = vpack.c.bf16 %v6602_v29, %v6596_v22 }
 0x1ad   : > { %5157 = vmatpush1.bf16.msra.mxu0 %v5156_v0  ;;  %5285 = vmatpush1.bf16.msra.mxu1 %v5284_v3 }
 0x1ae   : > { %5159 = vmatprep.subr.bf16.mxu0 %v5158_v4  ;;  %5287 = vmatprep.subr.bf16.mxu1 %v5286_v8  ;;  %v5170_v4 = vpack.c.bf16 %v6533_v35, %v6531_v33  ;;  %v6573_v8 = vld [vmem:[#allocation4 + $0x18b0] sm:$0xff]  ;;  %v6606_v33 = vld [vmem:[#allocation4 + $0x19a0] sm:$0xff] }
 0x1af   : > { %v5304_v26 = vpack.c.bf16 %v6573_v8, %v6571_v60 }
 0x1b1   : > { %5161 = vmatpush1.bf16.msra.mxu0 %v5160_v15  ;;  %5289 = vmatpush1.bf16.msra.mxu1 %v5288_v19  ;;  %v6586_v15 = vld [vmem:[#allocation4 + $0x1928] sm:$0xff] }
 0x1b2   : > { %5163 = vmatprep.subr.bf16.mxu0 %v5162_v20  ;;  %5291 = vmatprep.subr.bf16.mxu1 %v5290_v7  ;;  %v5178_v38 = vpack.c.bf16 %v6588_v16, %v6586_v15  ;;  %v2515_v15 = vld [vmem:[#allocation4 + $0x1bb0] sm:$0xff] }
 0x1b3   : > { %v1114_v49 = vpop.f32.mrb[8].mxu0  ;;  %v1165_v55 = vpop.f32.mrb[8].mxu1 }
 0x1b4   : > { %v1189_v54 = vrot.slane %v1114_v49, 1  ;;  %v1116_v56 = vpop.f32.mrb[9].mxu0  ;;  %v1217_v0 = vrot.slane %v1165_v55, 1  ;;  %v1167_v2 = vpop.f32.mrb[9].mxu1 }
 0x1b5   : > { %v6563_v3 = vpop.f32.mrb[10].mxu0  ;;  %5165 = vmatpush1.bf16.msra.mxu0 %v5164_v37  ;;  %v6576_v10 = vpop.f32.mrb[10].mxu1  ;;  %5293 = vmatpush1.bf16.msra.mxu1 %v5292_v42  ;;  %v1192_v17 = vrot.slane %v1116_v56, 1  ;;  %v1220_v24 = vrot.slane %v1167_v2, 1  ;;  %v5308_v56 = vpack.c.bf16 %v6615_v41, %v6613_v39  ;;  %v2578_v41 = vld [vmem:[#allocation4 + $0x1da8] sm:$0xff] }
 0x1b6   : > { %v1190_v9 = vrot.slane %v6563_v3, 1  ;;  %v6578_v11 = vpop.f32.mrb[11].mxu0  ;;  %5167 = vmatprep.subr.bf16.mxu0 %v5166_v43  ;;  %v1218_v18 = vrot.slane %v6576_v10, 1  ;;  %v6592_v20 = vpop.f32.mrb[11].mxu1  ;;  %5295 = vmatprep.subr.bf16.mxu1 %v5294_v50 }
 0x1b7   : > { %v1193_v19 = vrot.slane %v6578_v11, 1  ;;  %v1221_v25 = vrot.slane %v6592_v20, 1 }
 0x1b8   : > { %v1191_v7 = vsel %vm1188_vm2, %v1189_v54, %v1190_v9  ;;  %v1219_v36 = vsel %vm1188_vm2, %v1217_v0, %v1218_v18 }
 0x1b9   : > { %v1205_v35 = vadd.f32 %v1191_v7, %v6495_v23  ;;  %v1194_v37 = vsel %vm1188_vm2, %v1192_v17, %v1193_v19  ;;  %5169 = vmatpush1.bf16.msra.mxu0 %v5168_v57  ;;  %v1233_v42 = vadd.f32 %v1219_v36, %v6497_v27  ;;  %v1222_v44 = vsel %vm1188_vm2, %v1220_v24, %v1221_v25  ;;  %v6620_v23 = vld [vmem:[#allocation4 + $0x1a28] sm:$0xff] }
 0x1ba   : > { %v1206_v43 = vadd.f32 %v1194_v37, %v6499_v28  ;;  %5297 = vmatpush1.bf16.msra.mxu1 %v5296_v58  ;;  %5171 = vmatprep.subr.bf16.mxu0 %v5170_v4  ;;  %v1234_v49 = vadd.f32 %v1222_v44, %v6501_v31  ;;  %v5180_v27 = vpack.c.bf16 %v6606_v33, %v6604_v30  ;;  %v2484_v33 = vld [vmem:[#allocation4 + $0x1ab8] sm:$0xff]  ;;  %v2497_v44 = vld [vmem:[#allocation4 + $0x1b20] sm:$0xff] }
 0x1bb   : > { %v1239_v48 = vmul.f32 %v1205_v35, %v1205_v35  ;;  %v1124_v50 = vpop.f32.mrb[12].mxu0  ;;  %5299 = vmatprep.subr.bf16.mxu1 %v5298_v5  ;;  %v1245_v28 = vmul.f32 %v1233_v42, %v1233_v42  ;;  %v1175_v54 = vpop.f32.mrb[12].mxu1  ;;  %v5182_v2 = vpack.c.bf16 %v6622_v46, %v6620_v23  ;;  %v2467_v42 = vld [vmem:[#allocation4 + $0x1a30] sm:$0xff] }
 0x1bc   : > { %v1240_v52 = vmul.f32 %v1206_v43, %v1206_v43  ;;  %v1195_v53 = vrot.slane %v1124_v50, 1  ;;  %v1126_v55 = vpop.f32.mrb[13].mxu0  ;;  %v1246_v57 = vmul.f32 %v1234_v49, %v1234_v49  ;;  %v1223_v58 = vrot.slane %v1175_v54, 1  ;;  %v1177_v31 = vpop.f32.mrb[13].mxu1  ;;  %v2499_v49 = vld [vmem:[#allocation4 + $0x1b30] sm:$0xff]  ;;  %v2529_v54 = vld [vmem:[#allocation4 + $0x1c20] sm:$0xff] }
 0x1bd   : > { %v1197_v0 = vrot.slane %v1126_v55, 1  ;;  %5173 = vmatpush1.bf16.msra.mxu0 %v5172_v6  ;;  %v1128_v3 = vpop.f32.mrb[14].mxu0  ;;  %v6633_v4 = vadd.f32 %v1245_v28, %v1239_v48  ;;  %v1225_v11 = vrot.slane %v1177_v31, 1  ;;  %v1179_v17 = vpop.f32.mrb[14].mxu1  ;;  %v2513_v48 = vld [vmem:[#allocation4 + $0x1ba0] sm:$0xff]  ;;  %v2546_v28 = vld [vmem:[#allocation4 + $0x1ca8] sm:$0xff] }
 0x1be   : > { %v1196_v5 = vsel %vm1188_vm2, %v1190_v9, %v1195_v53  ;;  %v1209_v10 = vadd.f32 %v1195_v53, %v6511_v59  ;;  %5301 = vmatpush1.bf16.msra.mxu1 %v5300_v12  ;;  %5175 = vmatprep.subr.bf16.mxu0 %v5174_v13  ;;  %v1129_v20 = vpop.f32.mrb[15].mxu0  ;;  %v6637_v22 = vadd.f32 %v1246_v57, %v1240_v52  ;;  %v1180_v29 = vpop.f32.mrb[15].mxu1  ;;  %v2468_v13 = vld [vmem:[#allocation4 + $0x1a38] sm:$0xff]  ;;  %v2545_v55 = vld [vmem:[#allocation4 + $0x1ca0] sm:$0xff]  ;;  %v2531_v57 = vld [vmem:[#allocation4 + $0x1c30] sm:$0xff] }
 0x1bf   : > { %v1207_v24 = vadd.f32 %v1196_v5, %v6503_v32  ;;  %v1224_v6 = vsel %vm1188_vm2, %v1218_v18, %v1223_v58  ;;  %v1237_v7 = vadd.f32 %v1223_v58, %v6513_v47  ;;  %5303 = vmatprep.subr.bf16.mxu1 %v5302_v14  ;;  %v1198_v59 = vsel %vm1188_vm2, %v1193_v19, %v1197_v0  ;;  %v2465_v47 = vld [vmem:[#allocation4 + $0x1a20] sm:$0xff]  ;;  %v2548_v53 = vld [vmem:[#allocation4 + $0x1cb8] sm:$0xff]  ;;  %v2547_v58 = vld [vmem:[#allocation4 + $0x1cb0] sm:$0xff] }
 0x1c0   : > { %v1243_v30 = vmul.f32 %v1209_v10, %v1209_v10  ;;  %v1235_v9 = vadd.f32 %v1224_v6, %v6505_v34  ;;  %v1210_v12 = vadd.f32 %v1197_v0, %v6515_v63  ;;  %v1208_v37 = vadd.f32 %v1198_v59, %v6507_v45  ;;  %v2481_v63 = vld [vmem:[#allocation4 + $0x1aa0] sm:$0xff]  ;;  %v2483_v45 = vld [vmem:[#allocation4 + $0x1ab0] sm:$0xff]  ;;  %v6673_v0 = vld [vmem:[#allocation4 + $0x1d28] sm:$0xff] }
 0x1c1   : > { %v1241_v35 = vmul.f32 %v1207_v24, %v1207_v24  ;;  %v1249_v36 = vmul.f32 %v1237_v7, %v1237_v7  ;;  %v1226_v32 = vsel %vm1188_vm2, %v1221_v25, %v1225_v11  ;;  %5177 = vmatpush1.bf16.msra.mxu0 %v5176_v21  ;;  %v1238_v19 = vadd.f32 %v1225_v11, %v6517_v1  ;;  %v2500_v21 = vld [vmem:[#allocation4 + $0x1b38] sm:$0xff]  ;;  %v6677_v5 = vld [vmem:[#allocation4 + $0x1d20] sm:$0xff]  ;;  %v6681_v11 = vld [vmem:[#allocation4 + $0x1d30] sm:$0xff] }
 0x1c2   : > { %v1247_v14 = vmul.f32 %v1235_v9, %v1235_v9  ;;  %v1244_v18 = vmul.f32 %v1210_v12, %v1210_v12  ;;  %v1236_v34 = vadd.f32 %v1226_v32, %v6509_v40  ;;  %5305 = vmatpush1.bf16.msra.mxu1 %v5304_v26  ;;  %v1242_v25 = vmul.f32 %v1208_v37, %v1208_v37  ;;  %v2514_v40 = vld [vmem:[#allocation4 + $0x1ba8] sm:$0xff]  ;;  %v2516_v26 = vld [vmem:[#allocation4 + $0x1bb8] sm:$0xff]  ;;  %v6679_v10 = vld [vmem:[#allocation4 + $0x1da0] sm:$0xff] }
 0x1c3   : > { %v6655_v43 = vadd.f32 %v1249_v36, %v1243_v30  ;;  %5179 = vmatprep.subr.bf16.mxu0 %v5178_v38  ;;  %5307 = vmatprep.subr.bf16.mxu1 %v5306_v51  ;;  %v5310_v61 = vpack.c.bf16 %v2484_v33, %v2468_v13  ;;  %6051 = vrsqrt.f32 %v6633_v4  ;;  %v1250_v8 = vmul.f32 %v1238_v19, %v1238_v19  ;;  %v2530_v51 = vld [vmem:[#allocation4 + $0x1c28] sm:$0xff]  ;;  %v2580_v31 = vld [vmem:[#allocation4 + $0x1db8] sm:$0xff]  ;;  %v6683_v20 = vld [vmem:[#allocation4 + $0x1db0] sm:$0xff] }
 0x1c4   : > { %v6661_v1 = vadd.f32 %v1247_v14, %v1241_v35  ;;  %v1248_v60 = vmul.f32 %v1236_v34, %v1236_v34  ;;  %v5184_v23 = vpack.c.bf16 %v2481_v63, %v2465_v47  ;;  %v5312_v46 = vpack.c.bf16 %v2483_v45, %v2467_v42  ;;  %v6685_v24 = vld [vmem:[#allocation4 + $0x1e28] sm:$0xff]  ;;  %v6689_v29 = vld [vmem:[#allocation4 + $0x1e38] sm:$0xff] }
 0x1c5   : > { %5181 = vmatpush1.bf16.msra.mxu0 %v5180_v27  ;;  %6053 = vrsqrt.f32 %v6637_v22  ;;  %v6666_v38 = vadd.f32 %v1250_v8, %v1244_v18  ;;  %v5186_v50 = vpack.c.bf16 %v2514_v40, %v2498_v62  ;;  %v2532_v27 = vld [vmem:[#allocation4 + $0x1c38] sm:$0xff]  ;;  %v5314_v52 = vpack.c.bf16 %v2516_v26, %v2500_v21  ;;  %v6687_v6 = vld [vmem:[#allocation4 + $0x1ea8] sm:$0xff]  ;;  %v2609_v8 = vld [vmem:[#allocation4 + $0x1ea0] sm:$0xff] }
 0x1c6   : > { %v6664_v16 = vadd.f32 %v1248_v60, %v1242_v25  ;;  %5309 = vmatpush1.bf16.msra.mxu1 %v5308_v56  ;;  %5183 = vmatprep.subr.bf16.mxu0 %v5182_v2  ;;  %6055 = vrsqrt.f32 %v6655_v43  ;;  %v5188_v39 = vpack.c.bf16 %v2513_v48, %v2497_v44  ;;  %v2564_v56 = vld [vmem:[#allocation4 + $0x1d38] sm:$0xff]  ;;  %v5316_v2 = vpack.c.bf16 %v2515_v15, %v2499_v49  ;;  %v2593_v60 = vld [vmem:[#allocation4 + $0x1e20] sm:$0xff]  ;;  %v2611_v48 = vld [vmem:[#allocation4 + $0x1eb0] sm:$0xff] }
 0x1c7   : > { %5311 = vmatprep.subr.bf16.mxu1 %v5310_v61  ;;  %6057 = vrsqrt.f32 %v6661_v1  ;;  %v5190_v3 = vpack.c.bf16 %v2546_v28, %v2530_v51  ;;  %v5318_v17 = vpack.c.bf16 %v2548_v53, %v2532_v27  ;;  %v5192_v7 = vpack.c.bf16 %v2545_v55, %v2529_v54  ;;  %v6691_v30 = vld [vmem:[#allocation4 + $0x1eb8] sm:$0xff]  ;;  %v2626_v49 = vld [vmem:[#allocation4 + $0x1f28] sm:$0xff] }
 0x1c8   : > { %6059 = vrsqrt.f32 %v6666_v38  ;;  %v5320_v59 = vpack.c.bf16 %v2547_v58, %v2531_v57  ;;  %v5194_v12 = vpack.c.bf16 %v2578_v41, %v6673_v0  ;;  %v5322_v13 = vpack.c.bf16 %v2580_v31, %v2564_v56  ;;  %v2642_v51 = vld [vmem:[#allocation4 + $0x1fa8] sm:$0xff]  ;;  %v2628_v28 = vld [vmem:[#allocation4 + $0x1f38] sm:$0xff]  ;;  %v2625_v57 = vld [vmem:[#allocation4 + $0x1f20] sm:$0xff] }
 0x1c9   : > { %5185 = vmatpush1.bf16.msra.mxu0 %v5184_v23  ;;  %6061 = vrsqrt.f32 %v6664_v16  ;;  %v5196_v33 = vpack.c.bf16 %v6679_v10, %v6677_v5  ;;  %v5324_v36 = vpack.c.bf16 %v6683_v20, %v6681_v11  ;;  %v5198_v37 = vpack.c.bf16 %v6687_v6, %v6685_v24  ;;  %v2644_v27 = vld [vmem:[#allocation4 + $0x1fb8] sm:$0xff]  ;;  %v2641_v58 = vld [vmem:[#allocation4 + $0x1fa0] sm:$0xff]  ;;  %v2627_v0 = vld [vmem:[#allocation4 + $0x1f30] sm:$0xff] }
 0x1ca   : > { %5313 = vmatpush1.bf16.msra.mxu1 %v5312_v46  ;;  %5187 = vmatprep.subr.bf16.mxu0 %v5186_v50  ;;  %vm1259_vm3 = vcmp.eq.f32.partialorder %v6633_v4, inf  ;;  %vm1261_vm4 = vcmp.eq.f32.partialorder %v6633_v4, 0.0  ;;  %v1262_v47 = vand.u32 2147483648, %v6633_v4  ;;  %v5326_v14 = vpack.c.bf16 %v6691_v30, %v6689_v29  ;;  %v2595_v46 = vld [vmem:[#allocation4 + $0x1e30] sm:$0xff]  ;;  %v1638_v31 = vld [vmem:[#allocation4 + $0x48] sm:$0xff]  ;;  %v1640_v5 = vld [vmem:[#allocation4 + $0x58] sm:$0xff] }
 0x1cb   : > { %5315 = vmatprep.subr.bf16.mxu1 %v5314_v52  ;;  %vm1266_vm5 = vcmp.eq.f32.partialorder %v6637_v22, inf  ;;  %vm1268_vm6 = vcmp.eq.f32.partialorder %v6637_v22, 0.0  ;;  %v1269_v45 = vand.u32 2147483648, %v6637_v22  ;;  %vm1287_vm7 = vcmp.eq.f32.partialorder %v6655_v43, inf  ;;  %v2643_v56 = vld [vmem:[#allocation4 + $0x1fb0] sm:$0xff]  ;;  %v1656_v10 = vld [vmem:[#allocation4 + $0xd8] sm:$0xff] }
 0x1cc   : > { %vm1289_vm8 = vcmp.eq.f32.partialorder %v6655_v43, 0.0  ;;  %v1290_v62 = vand.u32 2147483648, %v6655_v43  ;;  %vm1273_vm9 = vcmp.eq.f32.partialorder %v6661_v1, inf  ;;  %v1276_v23 = vand.u32 2147483648, %v6661_v1  ;;  %v1653_v29 = vld [vmem:[#allocation4 + $0xc0] sm:$0xff] }
 0x1cd   : > { %v6052_v9 = vpop.eup %6051  ;;  %5189 = vmatpush1.bf16.msra.mxu0 %v5188_v39  ;;  %vm1275_vm10 = vcmp.eq.f32.partialorder %v6661_v1, 0.0  ;;  %vm1280_vm11 = vcmp.eq.f32.partialorder %v6664_v16, inf  ;;  %v5200_v54 = vpack.c.bf16 %v2609_v8, %v2593_v60  ;;  %v5328_v55 = vpack.c.bf16 %v2611_v48, %v2595_v46  ;;  %v1701_v8 = vld [vmem:[#allocation4 + $0x240] sm:$0xff]  ;;  %v1719_v46 = vld [vmem:[#allocation4 + $0x2d0] sm:$0xff]  ;;  %v1734_v48 = vld [vmem:[#allocation4 + $0x348] sm:$0xff] }
 0x1ce   : > { %5317 = vmatpush1.bf16.msra.mxu1 %v5316_v2  ;;  %v1258_v35 = vmul.f32 %v6052_v9, %v6633_v4  ;;  %5191 = vmatprep.subr.bf16.mxu0 %v5190_v3  ;;  %vm1294_vm12 = vcmp.eq.f32.partialorder %v6666_v38, inf  ;;  %v5202_v39 = vpack.c.bf16 %v2642_v51, %v2626_v49  ;;  %v5330_v41 = vpack.c.bf16 %v2644_v27, %v2628_v28  ;;  %v1654_v2 = vld [vmem:[#allocation4 + $0xc8] sm:$0xff]  ;;  %v1639_v9 = vld [vmem:[#allocation4 + $0x50] sm:$0xff] }
 0x1cf   : > { %v6054_v32 = vpop.eup %6053  ;;  %5319 = vmatprep.subr.bf16.mxu1 %v5318_v17  ;;  %vm1282_vm13 = vcmp.eq.f32.partialorder %v6664_v16, 0.0  ;;  %v1297_v11 = vand.u32 2147483648, %v6666_v38  ;;  %v5204_v20 = vpack.c.bf16 %v2641_v58, %v2625_v57  ;;  %vm1296_vm14 = vcmp.eq.f32.partialorder %v6666_v38, 0.0  ;;  %v1750_v49 = vld [vmem:[#allocation4 + $0x3c8] sm:$0xff]  ;;  %v1751_v58 = vld [vmem:[#allocation4 + $0x3d0] sm:$0xff] }
 0x1d0   : > { %v6056_v18 = vpop.eup %6055  ;;  %v1260_v34 = vsel %vm1259_vm3, %v6633_v4, %v1258_v35  ;;  %v1265_v19 = vmul.f32 %v6054_v32, %v6637_v22  ;;  %v5332_v24 = vpack.c.bf16 %v2643_v56, %v2627_v0  ;;  %v5334_v6 = vpack.c.bf16 %v1654_v2, %v1638_v31  ;;  %v1688_v35 = vld [vmem:[#allocation4 + $0x1d8] sm:$0xff]  ;;  %v1685_v32 = vld [vmem:[#allocation4 + $0x1c0] sm:$0xff]  ;;  %v1766_v0 = vld [vmem:[#allocation4 + $0x448] sm:$0xff] }
 0x1d1   : > { %v6058_v63 = vpop.eup %6057  ;;  %v6710_v42 = vsel %vm1261_vm4, %v1262_v47, %v1260_v34  ;;  %5193 = vmatpush1.bf16.msra.mxu0 %v5192_v7  ;;  %v1286_v25 = vmul.f32 %v6056_v18, %v6655_v43  ;;  %v1637_v7 = vld [vmem:[#allocation4 + $0x40] sm:$0xff]  ;;  %v1671_v47 = vld [vmem:[#allocation4 + $0x150] sm:$0xff]  ;;  %v1702_v34 = vld [vmem:[#allocation4 + $0x248] sm:$0xff]  ;;  %v5346_v27 = vpack.c.bf16 %v1750_v49, %v1734_v48 }
 0x1d2   : > { %v6060_v61 = vpop.eup %6059  ;;  %1341 = vrot.lane.b32.xlu0 %v6710_v42, %s6244_s7  ;;  %v1267_v4 = vsel %vm1266_vm5, %v6637_v22, %v1265_v19  ;;  %5321 = vmatpush1.bf16.msra.mxu1 %v5320_v59  ;;  %v1272_v40 = vmul.f32 %v6058_v63, %v6661_v1  ;;  %v1655_v59 = vld [vmem:[#allocation4 + $0xd0] sm:$0xff]  ;;  %v1718_v19 = vld [vmem:[#allocation4 + $0x2c8] sm:$0xff]  ;;  %v1784_v56 = vld [vmem:[#allocation4 + $0x4d8] sm:$0xff] }
 0x1d3   : > { %v6062_v21 = vpop.eup %6061  ;;  %v6723_v26 = vsel %vm1268_vm6, %v1269_v45, %v1267_v4  ;;  %v1288_v44 = vsel %vm1287_vm7, %v6655_v43, %v1286_v25  ;;  %5195 = vmatprep.subr.bf16.mxu0 %v5194_v12  ;;  %5323 = vmatprep.subr.bf16.mxu1 %v5322_v13  ;;  %v1293_v22 = vmul.f32 %v6060_v61, %v6666_v38  ;;  %v1283_v43 = vand.u32 2147483648, %v6664_v16  ;;  %v1670_v12 = vld [vmem:[#allocation4 + $0x148] sm:$0xff]  ;;  %v1687_v18 = vld [vmem:[#allocation4 + $0x1d0] sm:$0xff]  ;;  %v1704_v25 = vld [vmem:[#allocation4 + $0x258] sm:$0xff] }
 0x1d4   : > { %1347 = vrot.lane.b32.xlu1 %v6723_v26, %s6244_s7  ;;  %v1274_v15 = vsel %vm1273_vm9, %v6661_v1, %v1272_v40  ;;  %v1279_v50 = vmul.f32 %v6062_v21, %v6664_v16  ;;  %v6736_v52 = vsel %vm1289_vm8, %v1290_v62, %v1288_v44  ;;  %v5336_v13 = vpack.c.bf16 %v1653_v29, %v1637_v7  ;;  %v6084_v63 = vld [vmem:[%s6482_s27 + $0x10] sm:$0xff]  ;;  %v1720_v61 = vld [vmem:[#allocation4 + $0x2d8] sm:$0xff]  ;;  %v1717_v21 = vld [vmem:[#allocation4 + $0x2c0] sm:$0xff] }
 0x1d5   : > { %v6738_v53 = vsel %vm1275_vm10, %v1276_v23, %v1274_v15  ;;  %5197 = vmatpush1.bf16.msra.mxu0 %v5196_v33  ;;  %v1295_v3 = vsel %vm1294_vm12, %v6666_v38, %v1293_v22  ;;  %v1686_v38 = vld [vmem:[#allocation4 + $0x1c8] sm:$0xff]  ;;  %v1672_v33 = vld [vmem:[#allocation4 + $0x158] sm:$0xff]  ;;  %v5468_v40 = vpack.c.bf16 %v1687_v18, %v1671_v47  ;;  %v5342_v60 = vpack.c.bf16 %v1718_v19, %v1702_v34  ;;  %v1703_v44 = vld [vmem:[#allocation4 + $0x250] sm:$0xff] }
 0x1d6   : > { %1343 = vrot.lane.b32.xlu0 %v6738_v53, %s6244_s7  ;;  %5325 = vmatpush1.bf16.msra.mxu1 %v5324_v36  ;;  %v1281_v1 = vsel %vm1280_vm11, %v6664_v16, %v1279_v50  ;;  %v6756_v30 = vsel %vm1296_vm14, %v1297_v11, %v1295_v3  ;;  %v5462_v16 = vpack.c.bf16 %v1656_v10, %v1640_v5  ;;  %v6085_v62 = vld [vmem:[%s6482_s27 + $0x38] sm:$0x3]  ;;  %v6086_v15 = vld [vmem:[%s6482_s27 + $0x30] sm:$0x3]  ;;  %v1765_v5 = vld [vmem:[#allocation4 + $0x440] sm:$0xff]  ;;  %vm1308_vm11 = vcmask 1044480  }
 0x1d7   : > { %5199 = vmatprep.subr.bf16.mxu0 %v5198_v37  ;;  %5327 = vmatprep.subr.bf16.mxu1 %v5326_v14  ;;  %v6751_v17 = vsel %vm1282_vm13, %v1283_v43, %v1281_v1  ;;  %v5464_v36 = vpack.c.bf16 %v1655_v59, %v1639_v9  ;;  %v1669_v37 = vld [vmem:[#allocation4 + $0x140] sm:$0xff]  ;;  %v5338_v14 = vpack.c.bf16 %v1686_v38, %v1670_v12  ;;  %v1736_v22 = vld [vmem:[#allocation4 + $0x358] sm:$0xff]  ;;  %v1782_v43 = vld [vmem:[#allocation4 + $0x4c8] sm:$0xff]  ;;  %vm4394_vm12 = vcmask 98304  }
 0x1d8   : > { %1345 = vrot.lane.b32.xlu1 %v6736_v52, %s6244_s7  ;;  %v5466_v45 = vpack.c.bf16 %v1688_v35, %v1672_v33  ;;  %v5340_v4 = vpack.c.bf16 %v1685_v32, %v1669_v37  ;;  %v5470_v23 = vpack.c.bf16 %v1720_v61, %v1704_v25  ;;  %v1752_v50 = vld [vmem:[#allocation4 + $0x3d8] sm:$0xff]  ;;  %v5344_v51 = vpack.c.bf16 %v1717_v21, %v1701_v8  ;;  %v1749_v1 = vld [vmem:[#allocation4 + $0x3c0] sm:$0xff]  ;;  %v1767_v11 = vld [vmem:[#allocation4 + $0x450] sm:$0xff] }
 0x1d9   : > { %5201 = vmatpush1.bf16.msra.mxu0 %v5200_v54  ;;  %v5472_v28 = vpack.c.bf16 %v1719_v46, %v1703_v44  ;;  %v1733_v54 = vld [vmem:[#allocation4 + $0x340] sm:$0xff]  ;;  %v5474_v57 = vpack.c.bf16 %v1752_v50, %v1736_v22  ;;  %v5350_v3 = vpack.c.bf16 %v1782_v43, %v1766_v0  ;;  %v1814_v7 = vld [vmem:[#allocation4 + $0x5c8] sm:$0xff]  ;;  %v1800_v29 = vld [vmem:[#allocation4 + $0x558] sm:$0xff]  ;;  %vm4392_vm13 = vcmask 105472  }
 0x1da   : > { %1349 = vrot.lane.b32.xlu0 %v6751_v17, %s6244_s7  ;;  %5329 = vmatpush1.bf16.msra.mxu1 %v5328_v55  ;;  %v1735_v55 = vld [vmem:[#allocation4 + $0x350] sm:$0xff]  ;;  %v5348_v31 = vpack.c.bf16 %v1749_v1, %v1733_v54  ;;  %v1781_v10 = vld [vmem:[#allocation4 + $0x4c0] sm:$0xff]  ;;  %v1830_v37 = vld [vmem:[#allocation4 + $0x648] sm:$0xff] }
 0x1db   : > { %5203 = vmatprep.subr.bf16.mxu0 %v5202_v39  ;;  %5331 = vmatprep.subr.bf16.mxu1 %v5330_v41  ;;  %v6087_v39 = vld [vmem:[%s6482_s27 + $0x8] sm:$0xff]  ;;  %v1768_v41 = vld [vmem:[#allocation4 + $0x458] sm:$0xff]  ;;  %v5476_v2 = vpack.c.bf16 %v1751_v58, %v1735_v55  ;;  %v5352_v9 = vpack.c.bf16 %v1781_v10, %v1765_v5  ;;  %v1797_v38 = vld [vmem:[#allocation4 + $0x540] sm:$0xff] }
 0x1dc   : > { %1351 = vrot.lane.b32.xlu1 %v6756_v30, %s6244_s7  ;;  %v1799_v33 = vld [vmem:[#allocation4 + $0x550] sm:$0xff]  ;;  %v1846_v32 = vld [vmem:[#allocation4 + $0x6c8] sm:$0xff]  ;;  %v1832_v47 = vld [vmem:[#allocation4 + $0x658] sm:$0xff] }
 0x1dd   : > { %5205 = vmatpush1.bf16.msra.mxu0 %v5204_v20  ;;  %v5478_v20 = vpack.c.bf16 %v1784_v56, %v1768_v41  ;;  %v5358_v19 = vpack.c.bf16 %v1846_v32, %v1830_v37  ;;  %v1831_v25 = vld [vmem:[#allocation4 + $0x650] sm:$0xff]  ;;  %v1880_v8 = vld [vmem:[#allocation4 + $0x7d8] sm:$0xff]  ;;  %v1861_v46 = vld [vmem:[#allocation4 + $0x740] sm:$0xff] }
 0x1de   : > { %5333 = vmatpush1.bf16.msra.mxu1 %v5332_v24  ;;  %5335 = vmatprep.subr.bf16.mxu0 %v5334_v6  ;;  %v1783_v24 = vld [vmem:[#allocation4 + $0x4d0] sm:$0xff]  ;;  %v1798_v6 = vld [vmem:[#allocation4 + $0x548] sm:$0xff]  ;;  %v1877_v48 = vld [vmem:[#allocation4 + $0x7c0] sm:$0xff] }
 0x1df   : > { %5463 = vmatprep.subr.bf16.mxu1 %v5462_v16  ;;  %v1816_v16 = vld [vmem:[#allocation4 + $0x5d8] sm:$0xff]  ;;  %v5480_v59 = vpack.c.bf16 %v1783_v24, %v1767_v11  ;;  %v5354_v12 = vpack.c.bf16 %v1814_v7, %v1798_v6  ;;  %v1863_v49 = vld [vmem:[#allocation4 + $0x750] sm:$0xff]  ;;  %v1894_v50 = vld [vmem:[#allocation4 + $0x848] sm:$0xff]  ;;  %v5364_v54 = vpack.c.bf16 %v1877_v48, %v1861_v46 }
 0x1e0   : > { %3103 = vmatmul.mubr.f32.vlgmr.msra.gmra.mrb[20].mxu0 %v6084_v63  ;;  %v5482_v35 = vpack.c.bf16 %v1816_v16, %v1800_v29  ;;  %v1879_v22 = vld [vmem:[#allocation4 + $0x7d0] sm:$0xff]  ;;  %v1909_v58 = vld [vmem:[#allocation4 + $0x8c0] sm:$0xff]  ;;  %v1926_v41 = vld [vmem:[#allocation4 + $0x948] sm:$0xff] }
 0x1e1   : > { %3257 = vmatmul.mubr.f32.vlgmr.msra.gmra.mrb[20].mxu1 %v6084_v63  ;;  %5337 = vmatpush1.bf16.msra.mxu0 %v5336_v13  ;;  %v1813_v13 = vld [vmem:[#allocation4 + $0x5c0] sm:$0xff]  ;;  %v5492_v1 = vpack.c.bf16 %v1879_v22, %v1863_v49  ;;  %v1895_v0 = vld [vmem:[#allocation4 + $0x850] sm:$0xff]  ;;  %v1942_v56 = vld [vmem:[#allocation4 + $0x9c8] sm:$0xff] }
 0x1e2   : > { %5465 = vmatpush1.bf16.msra.mxu1 %v5464_v36  ;;  %3108 = vmatprep.mubr.f32.mxu0 %v6085_v62  ;;  %v1815_v36 = vld [vmem:[#allocation4 + $0x5d0] sm:$0xff]  ;;  %v5356_v18 = vpack.c.bf16 %v1813_v13, %v1797_v38  ;;  %v1829_v63 = vld [vmem:[#allocation4 + $0x640] sm:$0xff]  ;;  %v5370_v10 = vpack.c.bf16 %v1942_v56, %v1926_v41  ;;  %v1958_v29 = vld [vmem:[#allocation4 + $0xa48] sm:$0xff] }
 0x1e3   : > { %3262 = vmatprep.mubr.f32.mxu1 %v6085_v62  ;;  %5339 = vmatprep.subr.bf16.mxu0 %v5338_v14  ;;  %v1848_v14 = vld [vmem:[#allocation4 + $0x6d8] sm:$0xff]  ;;  %v5484_v34 = vpack.c.bf16 %v1815_v36, %v1799_v33  ;;  %v1862_v62 = vld [vmem:[#allocation4 + $0x748] sm:$0xff]  ;;  %v1925_v11 = vld [vmem:[#allocation4 + $0x940] sm:$0xff] }
 0x1e4   : > { %3109 = vmatmul.mubr.f32.gmra.mrb[22].mxu0 %v6086_v15  ;;  %5467 = vmatprep.subr.bf16.mxu1 %v5466_v45  ;;  %v1845_v45 = vld [vmem:[#allocation4 + $0x6c0] sm:$0xff]  ;;  %v5486_v61 = vpack.c.bf16 %v1848_v14, %v1832_v47  ;;  %v1927_v24 = vld [vmem:[#allocation4 + $0x950] sm:$0xff]  ;;  %v1974_v16 = vld [vmem:[#allocation4 + $0xac8] sm:$0xff] }
 0x1e5   : > { %3263 = vmatmul.mubr.f32.gmra.mrb[22].mxu1 %v6086_v15  ;;  %5341 = vmatpush1.bf16.msra.mxu0 %v5340_v4  ;;  %v1847_v4 = vld [vmem:[#allocation4 + $0x6d0] sm:$0xff]  ;;  %v5360_v21 = vpack.c.bf16 %v1845_v45, %v1829_v63  ;;  %v5374_v13 = vpack.c.bf16 %v1974_v16, %v1958_v29  ;;  %v1957_v33 = vld [vmem:[#allocation4 + $0xa40] sm:$0xff]  ;;  %v1990_v47 = vld [vmem:[#allocation4 + $0xb48] sm:$0xff] }
 0x1e6   : > { %5469 = vmatpush1.bf16.msra.mxu1 %v5468_v40  ;;  %5343 = vmatprep.subr.bf16.mxu0 %v5342_v60  ;;  %v1878_v40 = vld [vmem:[#allocation4 + $0x7c8] sm:$0xff]  ;;  %v1864_v60 = vld [vmem:[#allocation4 + $0x758] sm:$0xff]  ;;  %v5488_v44 = vpack.c.bf16 %v1847_v4, %v1831_v25  ;;  %v1943_v7 = vld [vmem:[#allocation4 + $0x9d0] sm:$0xff] }
 0x1e7   : > { %5471 = vmatprep.subr.bf16.mxu1 %v5470_v23  ;;  %3333 = vmatprep.mubr.f32.mxu0 %v6087_v39  ;;  %v5362_v23 = vpack.c.bf16 %v1878_v40, %v1862_v62  ;;  %v5490_v15 = vpack.c.bf16 %v1880_v8, %v1864_v60  ;;  %v5500_v38 = vpack.c.bf16 %v1943_v7, %v1927_v24  ;;  %v1959_v36 = vld [vmem:[#allocation4 + $0xa50] sm:$0xff]  ;;  %v2006_v14 = vld [vmem:[#allocation4 + $0xbc8] sm:$0xff]  ;;  %v1989_v25 = vld [vmem:[#allocation4 + $0xb40] sm:$0xff] }
 0x1e8   : > { %3487 = vmatprep.mubr.f32.mxu1 %v6087_v39  ;;  %v1911_v39 = vld [vmem:[#allocation4 + $0x8d0] sm:$0xff]  ;;  %v5378_v45 = vpack.c.bf16 %v2006_v14, %v1990_v47  ;;  %v2022_v60 = vld [vmem:[#allocation4 + $0xc48] sm:$0xff]  ;;  %v2021_v49 = vld [vmem:[#allocation4 + $0xc40] sm:$0xff] }
 0x1e9   : > { %5345 = vmatpush1.bf16.msra.mxu0 %v5344_v51  ;;  %v1910_v51 = vld [vmem:[#allocation4 + $0x8c8] sm:$0xff]  ;;  %v5496_v5 = vpack.c.bf16 %v1911_v39, %v1895_v0  ;;  %v1975_v32 = vld [vmem:[#allocation4 + $0xad0] sm:$0xff]  ;;  %v2053_v0 = vld [vmem:[#allocation4 + $0xd40] sm:$0xff] }
 0x1ea   : > { %5473 = vmatpush1.bf16.msra.mxu1 %v5472_v28  ;;  %5347 = vmatprep.subr.bf16.mxu0 %v5346_v27  ;;  %v1896_v28 = vld [vmem:[#allocation4 + $0x858] sm:$0xff]  ;;  %v5366_v55 = vpack.c.bf16 %v1910_v51, %v1894_v50  ;;  %v5504_v63 = vpack.c.bf16 %v1975_v32, %v1959_v36  ;;  %v1991_v4 = vld [vmem:[#allocation4 + $0xb50] sm:$0xff]  ;;  %v2038_v8 = vld [vmem:[#allocation4 + $0xcc8] sm:$0xff] }
 0x1eb   : > { %5475 = vmatprep.subr.bf16.mxu1 %v5474_v57  ;;  %v1912_v27 = vld [vmem:[#allocation4 + $0x8d8] sm:$0xff]  ;;  %v1893_v57 = vld [vmem:[#allocation4 + $0x840] sm:$0xff]  ;;  %v2007_v40 = vld [vmem:[#allocation4 + $0xbd0] sm:$0xff]  ;;  %v5382_v48 = vpack.c.bf16 %v2038_v8, %v2022_v60 }
 0x1ec   : > { %v5494_v43 = vpack.c.bf16 %v1912_v27, %v1896_v28  ;;  %v5508_v46 = vpack.c.bf16 %v2007_v40, %v1991_v4  ;;  %v2023_v22 = vld [vmem:[#allocation4 + $0xc50] sm:$0xff]  ;;  %v2054_v28 = vld [vmem:[#allocation4 + $0xd48] sm:$0xff]  ;;  %v2085_v24 = vld [vmem:[#allocation4 + $0xe40] sm:$0xff] }
 0x1ed   : > { %5349 = vmatpush1.bf16.msra.mxu0 %v5348_v31  ;;  %v1928_v31 = vld [vmem:[#allocation4 + $0x958] sm:$0xff]  ;;  %v2039_v51 = vld [vmem:[#allocation4 + $0xcd0] sm:$0xff]  ;;  %v2070_v27 = vld [vmem:[#allocation4 + $0xdc8] sm:$0xff] }
 0x1ee   : > { %5477 = vmatpush1.bf16.msra.mxu1 %v5476_v2  ;;  %5351 = vmatprep.subr.bf16.mxu0 %v5350_v3  ;;  %v1944_v2 = vld [vmem:[#allocation4 + $0x9d8] sm:$0xff]  ;;  %v5368_v3 = vpack.c.bf16 %v1909_v58, %v1893_v57  ;;  %v5512_v57 = vpack.c.bf16 %v2039_v51, %v2023_v22  ;;  %v5386_v58 = vpack.c.bf16 %v2070_v27, %v2054_v28  ;;  %v2055_v39 = vld [vmem:[#allocation4 + $0xd50] sm:$0xff]  ;;  %v2117_v36 = vld [vmem:[#allocation4 + $0xf40] sm:$0xff] }
 0x1ef   : > { %5479 = vmatprep.subr.bf16.mxu1 %v5478_v20  ;;  %v1941_v20 = vld [vmem:[#allocation4 + $0x9c0] sm:$0xff]  ;;  %v5498_v6 = vpack.c.bf16 %v1944_v2, %v1928_v31  ;;  %v2071_v56 = vld [vmem:[#allocation4 + $0xdd0] sm:$0xff]  ;;  %v2086_v31 = vld [vmem:[#allocation4 + $0xe48] sm:$0xff] }
 0x1f0   : > { %v2102_v2 = vld [vmem:[#allocation4 + $0xec8] sm:$0xff]  ;;  %v2087_v7 = vld [vmem:[#allocation4 + $0xe50] sm:$0xff]  ;;  %v2149_v4 = vld [vmem:[#allocation4 + $0x1040] sm:$0xff] }
 0x1f1   : > { %5353 = vmatpush1.bf16.msra.mxu0 %v5352_v9  ;;  %v1960_v9 = vld [vmem:[#allocation4 + $0xa58] sm:$0xff]  ;;  %v2103_v16 = vld [vmem:[#allocation4 + $0xed0] sm:$0xff]  ;;  %v2181_v22 = vld [vmem:[#allocation4 + $0x1140] sm:$0xff] }
 0x1f2   : > { %5481 = vmatpush1.bf16.msra.mxu1 %v5480_v59  ;;  %5355 = vmatprep.subr.bf16.mxu0 %v5354_v12  ;;  %v1976_v59 = vld [vmem:[#allocation4 + $0xad8] sm:$0xff]  ;;  %v5372_v12 = vpack.c.bf16 %v1941_v20, %v1925_v11  ;;  %v5516_v11 = vpack.c.bf16 %v2071_v56, %v2055_v39  ;;  %v5390_v20 = vpack.c.bf16 %v2102_v2, %v2086_v31  ;;  %v2119_v32 = vld [vmem:[#allocation4 + $0xf50] sm:$0xff]  ;;  %v2229_v56 = vld [vmem:[#allocation4 + $0x12c0] sm:$0xff] }
 0x1f3   : > { %5483 = vmatprep.subr.bf16.mxu1 %v5482_v35  ;;  %v1973_v35 = vld [vmem:[#allocation4 + $0xac0] sm:$0xff]  ;;  %v5502_v37 = vpack.c.bf16 %v1976_v59, %v1960_v9  ;;  %v2118_v9 = vld [vmem:[#allocation4 + $0xf48] sm:$0xff]  ;;  %v2135_v14 = vld [vmem:[#allocation4 + $0xfd0] sm:$0xff] }
 0x1f4   : > { %v2134_v59 = vld [vmem:[#allocation4 + $0xfc8] sm:$0xff]  ;;  %v2151_v40 = vld [vmem:[#allocation4 + $0x1050] sm:$0xff] }
 0x1f5   : > { %5357 = vmatpush1.bf16.msra.mxu0 %v5356_v18  ;;  %v1992_v18 = vld [vmem:[#allocation4 + $0xb58] sm:$0xff]  ;;  %v2167_v8 = vld [vmem:[#allocation4 + $0x10d0] sm:$0xff] }
 0x1f6   : > { %5485 = vmatpush1.bf16.msra.mxu1 %v5484_v34  ;;  %5359 = vmatprep.subr.bf16.mxu0 %v5358_v19  ;;  %v2008_v34 = vld [vmem:[#allocation4 + $0xbd8] sm:$0xff]  ;;  %v5376_v19 = vpack.c.bf16 %v1973_v35, %v1957_v33  ;;  %v5520_v33 = vpack.c.bf16 %v2103_v16, %v2087_v7  ;;  %v5394_v35 = vpack.c.bf16 %v2134_v59, %v2118_v9  ;;  %v2183_v51 = vld [vmem:[#allocation4 + $0x1150] sm:$0xff]  ;;  %v2245_v9 = vld [vmem:[#allocation4 + $0x1340] sm:$0xff] }
 0x1f7   : > { %5487 = vmatprep.subr.bf16.mxu1 %v5486_v61  ;;  %v2005_v61 = vld [vmem:[#allocation4 + $0xbc0] sm:$0xff]  ;;  %v5506_v62 = vpack.c.bf16 %v2008_v34, %v1992_v18  ;;  %v2150_v18 = vld [vmem:[#allocation4 + $0x1048] sm:$0xff]  ;;  %v2199_v27 = vld [vmem:[#allocation4 + $0x11d0] sm:$0xff] }
 0x1f8   : > { %v2166_v34 = vld [vmem:[#allocation4 + $0x10c8] sm:$0xff]  ;;  %v2215_v31 = vld [vmem:[#allocation4 + $0x1250] sm:$0xff]  ;;  %v2261_v59 = vld [vmem:[#allocation4 + $0x13c0] sm:$0xff] }
 0x1f9   : > { %5361 = vmatpush1.bf16.msra.mxu0 %v5360_v21  ;;  %v2024_v21 = vld [vmem:[#allocation4 + $0xc58] sm:$0xff] }
 0x1fa   : > { %5489 = vmatpush1.bf16.msra.mxu1 %v5488_v44  ;;  %5363 = vmatprep.subr.bf16.mxu0 %v5362_v23  ;;  %v2040_v44 = vld [vmem:[#allocation4 + $0xcd8] sm:$0xff]  ;;  %v5380_v23 = vpack.c.bf16 %v2005_v61, %v1989_v25  ;;  %v5524_v25 = vpack.c.bf16 %v2135_v14, %v2119_v32  ;;  %v5398_v61 = vpack.c.bf16 %v2166_v34, %v2150_v18  ;;  %v2277_v34 = vld [vmem:[#allocation4 + $0x1440] sm:$0xff] }
 0x1fb   : > { %5491 = vmatprep.subr.bf16.mxu1 %v5490_v15  ;;  %v2037_v15 = vld [vmem:[#allocation4 + $0xcc0] sm:$0xff]  ;;  %v5510_v50 = vpack.c.bf16 %v2040_v44, %v2024_v21  ;;  %v2182_v21 = vld [vmem:[#allocation4 + $0x1148] sm:$0xff]  ;;  %v2296_v32 = vld [vmem:[#allocation4 + $0x14d8] sm:$0xff] }
 0x1fc   : > { %v2198_v44 = vld [vmem:[#allocation4 + $0x11c8] sm:$0xff] }
 0x1fd   : > { %5365 = vmatpush1.bf16.msra.mxu0 %v5364_v54  ;;  %v2056_v54 = vld [vmem:[#allocation4 + $0xd58] sm:$0xff] }
 0x1fe   : > { %5493 = vmatpush1.bf16.msra.mxu1 %v5492_v1  ;;  %5367 = vmatprep.subr.bf16.mxu0 %v5366_v55  ;;  %v2072_v1 = vld [vmem:[#allocation4 + $0xdd8] sm:$0xff]  ;;  %v5384_v55 = vpack.c.bf16 %v2037_v15, %v2021_v49  ;;  %v5528_v49 = vpack.c.bf16 %v2167_v8, %v2151_v40  ;;  %v5402_v15 = vpack.c.bf16 %v2198_v44, %v2182_v21  ;;  %v2309_v44 = vld [vmem:[#allocation4 + $0x1540] sm:$0xff] }
 0x1ff   : > { %5495 = vmatprep.subr.bf16.mxu1 %v5494_v43  ;;  %v2069_v43 = vld [vmem:[#allocation4 + $0xdc0] sm:$0xff]  ;;  %v5514_v41 = vpack.c.bf16 %v2072_v1, %v2056_v54  ;;  %v2214_v54 = vld [vmem:[#allocation4 + $0x1248] sm:$0xff]  ;;  %v2328_v40 = vld [vmem:[#allocation4 + $0x15d8] sm:$0xff] }
 0x200   : > { %v2230_v1 = vld [vmem:[#allocation4 + $0x12c8] sm:$0xff] }
 0x201   : > { %5369 = vmatpush1.bf16.msra.mxu0 %v5368_v3  ;;  %v2088_v3 = vld [vmem:[#allocation4 + $0xe58] sm:$0xff]  ;;  %v5406_v39 = vpack.c.bf16 %v2230_v1, %v2214_v54  ;;  %v2341_v1 = vld [vmem:[#allocation4 + $0x1640] sm:$0xff] }
 0x202   : > { %5497 = vmatpush1.bf16.msra.mxu1 %v5496_v5  ;;  %5371 = vmatprep.subr.bf16.mxu0 %v5370_v10  ;;  %v2104_v5 = vld [vmem:[#allocation4 + $0xed8] sm:$0xff]  ;;  %v5388_v10 = vpack.c.bf16 %v2069_v43, %v2053_v0  ;;  %v5532_v43 = vpack.c.bf16 %v2199_v27, %v2183_v51 }
 0x203   : > { %5499 = vmatprep.subr.bf16.mxu1 %v5498_v6  ;;  %v2101_v6 = vld [vmem:[#allocation4 + $0xec0] sm:$0xff]  ;;  %v5518_v29 = vpack.c.bf16 %v2104_v5, %v2088_v3  ;;  %v2231_v3 = vld [vmem:[#allocation4 + $0x12d0] sm:$0xff]  ;;  %v2246_v5 = vld [vmem:[#allocation4 + $0x1348] sm:$0xff] }
 0x204   : > { %v2360_v51 = vld [vmem:[#allocation4 + $0x16d8] sm:$0xff] }
 0x205   : > { %5373 = vmatpush1.bf16.msra.mxu0 %v5372_v12  ;;  %v2120_v12 = vld [vmem:[#allocation4 + $0xf58] sm:$0xff] }
 0x206   : > { %5501 = vmatpush1.bf16.msra.mxu1 %v5500_v38  ;;  %5375 = vmatprep.subr.bf16.mxu0 %v5374_v13  ;;  %v2136_v38 = vld [vmem:[#allocation4 + $0xfd8] sm:$0xff]  ;;  %v5392_v13 = vpack.c.bf16 %v2101_v6, %v2085_v24  ;;  %v6090_v6 = vld [vmem:[%s6482_s27 + $0x20] sm:$0x3] }
 0x207   : > { %5503 = vmatprep.subr.bf16.mxu1 %v5502_v37  ;;  %v2133_v37 = vld [vmem:[#allocation4 + $0xfc0] sm:$0xff]  ;;  %v5522_v47 = vpack.c.bf16 %v2136_v38, %v2120_v12  ;;  %v2264_v24 = vld [vmem:[#allocation4 + $0x13d8] sm:$0xff]  ;;  %v2247_v12 = vld [vmem:[#allocation4 + $0x1350] sm:$0xff] }
 0x209   : > { %5377 = vmatpush1.bf16.msra.mxu0 %v5376_v19  ;;  %v2152_v19 = vld [vmem:[#allocation4 + $0x1058] sm:$0xff] }
 0x20a   : > { %5505 = vmatpush1.bf16.msra.mxu1 %v5504_v63  ;;  %5379 = vmatprep.subr.bf16.mxu0 %v5378_v45  ;;  %v2168_v63 = vld [vmem:[#allocation4 + $0x10d8] sm:$0xff]  ;;  %v5396_v45 = vpack.c.bf16 %v2133_v37, %v2117_v36 }
 0x20b   : > { %5507 = vmatprep.subr.bf16.mxu1 %v5506_v62  ;;  %v2165_v62 = vld [vmem:[#allocation4 + $0x10c0] sm:$0xff]  ;;  %v5526_v60 = vpack.c.bf16 %v2168_v63, %v2152_v19  ;;  %v6091_v36 = vld [vmem:[%s6482_s27 + $0x18] sm:$0xff]  ;;  %v2279_v63 = vld [vmem:[#allocation4 + $0x1450] sm:$0xff] }
 0x20c   : > { %v2280_v37 = vld [vmem:[#allocation4 + $0x1458] sm:$0xff]  ;;  %v2293_v19 = vld [vmem:[#allocation4 + $0x14c0] sm:$0xff] }
 0x20d   : > { %5381 = vmatpush1.bf16.msra.mxu0 %v5380_v23  ;;  %v2184_v23 = vld [vmem:[#allocation4 + $0x1158] sm:$0xff] }
 0x20e   : > { %5509 = vmatpush1.bf16.msra.mxu1 %v5508_v46  ;;  %5383 = vmatprep.subr.bf16.mxu0 %v5382_v48  ;;  %v2200_v46 = vld [vmem:[#allocation4 + $0x11d8] sm:$0xff]  ;;  %v5400_v48 = vpack.c.bf16 %v2165_v62, %v2149_v4  ;;  %v2326_v4 = vld [vmem:[#allocation4 + $0x15c8] sm:$0xff] }
 0x20f   : > { %5511 = vmatprep.subr.bf16.mxu1 %v5510_v50  ;;  %v2197_v50 = vld [vmem:[#allocation4 + $0x11c0] sm:$0xff]  ;;  %v5530_v28 = vpack.c.bf16 %v2200_v46, %v2184_v23  ;;  %v2312_v62 = vld [vmem:[#allocation4 + $0x1558] sm:$0xff]  ;;  %v2311_v46 = vld [vmem:[#allocation4 + $0x1550] sm:$0xff] }
 0x210   : > { %v5404_v0 = vpack.c.bf16 %v2197_v50, %v2181_v22  ;;  %v2325_v23 = vld [vmem:[#allocation4 + $0x15c0] sm:$0xff]  ;;  %v2358_v22 = vld [vmem:[#allocation4 + $0x16c8] sm:$0xff]  ;;  %v2344_v50 = vld [vmem:[#allocation4 + $0x1658] sm:$0xff] }
 0x211   : > { %5385 = vmatpush1.bf16.msra.mxu0 %v5384_v55  ;;  %v6088_v55 = vld [vmem:[%s6482_s27] sm:$0xff] }
 0x212   : > { %5513 = vmatpush1.bf16.msra.mxu1 %v5512_v57  ;;  %5387 = vmatprep.subr.bf16.mxu0 %v5386_v58  ;;  %v2216_v57 = vld [vmem:[#allocation4 + $0x1258] sm:$0xff] }
 0x213   : > { %5515 = vmatprep.subr.bf16.mxu1 %v5514_v41  ;;  %v2232_v58 = vld [vmem:[#allocation4 + $0x12d8] sm:$0xff]  ;;  %v2213_v41 = vld [vmem:[#allocation4 + $0x1240] sm:$0xff] }
 0x214   : > { %v5534_v2 = vpack.c.bf16 %v2232_v58, %v2216_v57  ;;  %v5408_v7 = vpack.c.bf16 %v2229_v56, %v2213_v41  ;;  %v2343_v57 = vld [vmem:[#allocation4 + $0x1650] sm:$0xff]  ;;  %v2390_v41 = vld [vmem:[#allocation4 + $0x17c8] sm:$0xff] }
 0x215   : > { %5389 = vmatpush1.bf16.msra.mxu0 %v5388_v10  ;;  %v2262_v10 = vld [vmem:[#allocation4 + $0x13c8] sm:$0xff] }
 0x216   : > { %5517 = vmatpush1.bf16.msra.mxu1 %v5516_v11  ;;  %5391 = vmatprep.subr.bf16.mxu0 %v5390_v20  ;;  %v6089_v11 = vld [vmem:[%s6482_s27 + $0x28] sm:$0x3]  ;;  %v2248_v20 = vld [vmem:[#allocation4 + $0x1358] sm:$0xff]  ;;  %v5410_v16 = vpack.c.bf16 %v2262_v10, %v2246_v5 }
 0x217   : > { %5519 = vmatprep.subr.bf16.mxu1 %v5518_v29  ;;  %v5536_v29 = vpack.c.bf16 %v2231_v3, %v2215_v31  ;;  %v5538_v38 = vpack.c.bf16 %v2264_v24, %v2248_v20  ;;  %v2392_v3 = vld [vmem:[#allocation4 + $0x17d8] sm:$0xff]  ;;  %v2373_v24 = vld [vmem:[#allocation4 + $0x1740] sm:$0xff] }
 0x219   : > { %5393 = vmatpush1.bf16.msra.mxu0 %v5392_v13  ;;  %v2263_v13 = vld [vmem:[#allocation4 + $0x13d0] sm:$0xff] }
 0x21a   : > { %5521 = vmatpush1.bf16.msra.mxu1 %v5520_v33  ;;  %5395 = vmatprep.subr.bf16.mxu0 %v5394_v35  ;;  %v2278_v33 = vld [vmem:[#allocation4 + $0x1448] sm:$0xff]  ;;  %v5540_v14 = vpack.c.bf16 %v2263_v13, %v2247_v12 }
 0x21b   : > { %5523 = vmatprep.subr.bf16.mxu1 %v5522_v47  ;;  %v2294_v35 = vld [vmem:[#allocation4 + $0x14c8] sm:$0xff]  ;;  %v5412_v47 = vpack.c.bf16 %v2261_v59, %v2245_v9  ;;  %v2391_v9 = vld [vmem:[#allocation4 + $0x17d0] sm:$0xff] }
 0x21c   : > { %v5414_v18 = vpack.c.bf16 %v2294_v35, %v2278_v33  ;;  %v2406_v59 = vld [vmem:[#allocation4 + $0x1848] sm:$0xff]  ;;  %v2408_v33 = vld [vmem:[#allocation4 + $0x1858] sm:$0xff] }
 0x21d   : > { %5397 = vmatpush1.bf16.msra.mxu0 %v5396_v45  ;;  %v5542_v45 = vpack.c.bf16 %v2296_v32, %v2280_v37  ;;  %v2422_v12 = vld [vmem:[#allocation4 + $0x18c8] sm:$0xff]  ;;  %v2424_v35 = vld [vmem:[#allocation4 + $0x18d8] sm:$0xff] }
 0x21e   : > { %5525 = vmatpush1.bf16.msra.mxu1 %v5524_v25  ;;  %5399 = vmatprep.subr.bf16.mxu0 %v5398_v61  ;;  %v2295_v25 = vld [vmem:[#allocation4 + $0x14d0] sm:$0xff]  ;;  %v2310_v61 = vld [vmem:[#allocation4 + $0x1548] sm:$0xff] }
 0x21f   : > { %5527 = vmatprep.subr.bf16.mxu1 %v5526_v60  ;;  %v5416_v60 = vpack.c.bf16 %v2293_v19, %v2277_v34  ;;  %v5544_v8 = vpack.c.bf16 %v2295_v25, %v2279_v63  ;;  %v5418_v21 = vpack.c.bf16 %v2326_v4, %v2310_v61  ;;  %v2407_v34 = vld [vmem:[#allocation4 + $0x1850] sm:$0xff]  ;;  %v5558_v19 = vpack.c.bf16 %v2424_v35, %v2408_v33  ;;  %v2454_v25 = vld [vmem:[#allocation4 + $0x19c8] sm:$0xff]  ;;  %v2440_v61 = vld [vmem:[#allocation4 + $0x1958] sm:$0xff] }
 0x220   : > { %3334 = vmatmul.mubr.f32.vlgmr.msra.gmra.mrb[24].mxu0 %v6088_v55  ;;  %v2423_v63 = vld [vmem:[#allocation4 + $0x18d0] sm:$0xff]  ;;  %v2456_v4 = vld [vmem:[#allocation4 + $0x19d8] sm:$0xff]  ;;  %v2534_v35 = vld [vmem:[#allocation4 + $0x1c48] sm:$0xff] }
 0x221   : > { %5401 = vmatpush1.bf16.msra.mxu0 %v5400_v48  ;;  %3488 = vmatmul.mubr.f32.vlgmr.msra.gmra.mrb[24].mxu1 %v6088_v55  ;;  %v5546_v48 = vpack.c.bf16 %v2328_v40, %v2312_v62  ;;  %v2357_v55 = vld [vmem:[#allocation4 + $0x16c0] sm:$0xff]  ;;  %v5560_v40 = vpack.c.bf16 %v2423_v63, %v2407_v34  ;;  %v2519_v33 = vld [vmem:[#allocation4 + $0x1bd0] sm:$0xff]  ;;  %v2536_v34 = vld [vmem:[#allocation4 + $0x1c58] sm:$0xff] }
 0x222   : > { %5529 = vmatpush1.bf16.msra.mxu1 %v5528_v49  ;;  %5403 = vmatprep.subr.bf16.mxu0 %v5402_v15  ;;  %v2327_v49 = vld [vmem:[#allocation4 + $0x15d0] sm:$0xff]  ;;  %v2342_v15 = vld [vmem:[#allocation4 + $0x1648] sm:$0xff]  ;;  %v5424_v10 = vpack.c.bf16 %v2357_v55, %v2341_v1  ;;  %v2469_v1 = vld [vmem:[#allocation4 + $0x1a40] sm:$0xff] }
 0x223   : > { %5531 = vmatprep.subr.bf16.mxu1 %v5530_v28  ;;  %3339 = vmatprep.mubr.f32.mxu0 %v6089_v11  ;;  %v5420_v28 = vpack.c.bf16 %v2325_v23, %v2309_v44  ;;  %v5548_v27 = vpack.c.bf16 %v2327_v49, %v2311_v46  ;;  %v5422_v54 = vpack.c.bf16 %v2358_v22, %v2342_v15  ;;  %v2453_v44 = vld [vmem:[#allocation4 + $0x19c0] sm:$0xff]  ;;  %v2439_v23 = vld [vmem:[#allocation4 + $0x1950] sm:$0xff]  ;;  %v2470_v49 = vld [vmem:[#allocation4 + $0x1a48] sm:$0xff] }
 0x224   : > { %3493 = vmatprep.mubr.f32.mxu1 %v6089_v11  ;;  %3340 = vmatmul.mubr.f32.gmra.mrb[26].mxu0 %v6090_v6  ;;  %v5562_v46 = vpack.c.bf16 %v2456_v4, %v2440_v61  ;;  %v2486_v15 = vld [vmem:[#allocation4 + $0x1ac8] sm:$0xff]  ;;  %v2472_v22 = vld [vmem:[#allocation4 + $0x1a58] sm:$0xff]  ;;  %v2485_v55 = vld [vmem:[#allocation4 + $0x1ac0] sm:$0xff] }
 0x225   : > { %5405 = vmatpush1.bf16.msra.mxu0 %v5404_v0  ;;  %3494 = vmatmul.mubr.f32.gmra.mrb[26].mxu1 %v6090_v6  ;;  %v5550_v0 = vpack.c.bf16 %v2360_v51, %v2344_v50  ;;  %v2389_v6 = vld [vmem:[#allocation4 + $0x17c0] sm:$0xff]  ;;  %v2488_v50 = vld [vmem:[#allocation4 + $0x1ad8] sm:$0xff] }
 0x226   : > { %5533 = vmatpush1.bf16.msra.mxu1 %v5532_v43  ;;  %5407 = vmatprep.subr.bf16.mxu0 %v5406_v39  ;;  %v2359_v43 = vld [vmem:[#allocation4 + $0x16d0] sm:$0xff]  ;;  %v2374_v39 = vld [vmem:[#allocation4 + $0x1748] sm:$0xff]  ;;  %v5428_v37 = vpack.c.bf16 %v2389_v6, %v2373_v24  ;;  %v2501_v6 = vld [vmem:[#allocation4 + $0x1b40] sm:$0xff] }
 0x227   : > { %5535 = vmatprep.subr.bf16.mxu1 %v5534_v2  ;;  %3410 = vmatprep.mubr.f32.mxu0 %v6091_v36  ;;  %v2376_v2 = vld [vmem:[#allocation4 + $0x1758] sm:$0xff]  ;;  %v5552_v11 = vpack.c.bf16 %v2359_v43, %v2343_v57  ;;  %v5426_v20 = vpack.c.bf16 %v2390_v41, %v2374_v39  ;;  %v5566_v57 = vpack.c.bf16 %v2488_v50, %v2472_v22  ;;  %v2487_v43 = vld [vmem:[#allocation4 + $0x1ad0] sm:$0xff]  ;;  %v2502_v41 = vld [vmem:[#allocation4 + $0x1b48] sm:$0xff] }
 0x228   : > { %3564 = vmatprep.mubr.f32.mxu1 %v6091_v36 }
 0x229   : > { %5409 = vmatpush1.bf16.msra.mxu0 %v5408_v7  ;;  %v2375_v7 = vld [vmem:[#allocation4 + $0x1750] sm:$0xff] }
 0x22a   : > { %5537 = vmatpush1.bf16.msra.mxu1 %v5536_v29  ;;  %5411 = vmatprep.subr.bf16.mxu0 %v5410_v16  ;;  %v5554_v16 = vpack.c.bf16 %v2392_v3, %v2376_v2  ;;  %v5556_v32 = vpack.c.bf16 %v2391_v9, %v2375_v7  ;;  %v2518_v2 = vld [vmem:[#allocation4 + $0x1bc8] sm:$0xff]  ;;  %v5440_v3 = vpack.c.bf16 %v2485_v55, %v2469_v1  ;;  %v2517_v7 = vld [vmem:[#allocation4 + $0x1bc0] sm:$0xff] }
 0x22b   : > { %5539 = vmatprep.subr.bf16.mxu1 %v5538_v38  ;;  %v2565_v55 = vld [vmem:[#allocation4 + $0x1d40] sm:$0xff] }
 0x22d   : > { %5413 = vmatpush1.bf16.msra.mxu0 %v5412_v47  ;;  %v5430_v47 = vpack.c.bf16 %v2422_v12, %v2406_v59  ;;  %v5442_v12 = vpack.c.bf16 %v2518_v2, %v2502_v41  ;;  %v2583_v2 = vld [vmem:[#allocation4 + $0x1dd0] sm:$0xff] }
 0x22e   : > { %5541 = vmatpush1.bf16.msra.mxu1 %v5540_v14  ;;  %5415 = vmatprep.subr.bf16.mxu0 %v5414_v18  ;;  %v2405_v14 = vld [vmem:[#allocation4 + $0x1840] sm:$0xff] }
 0x22f   : > { %5543 = vmatprep.subr.bf16.mxu1 %v5542_v45  ;;  %v2421_v18 = vld [vmem:[#allocation4 + $0x18c0] sm:$0xff]  ;;  %v2438_v45 = vld [vmem:[#allocation4 + $0x1948] sm:$0xff] }
 0x230   : > { %v5432_v62 = vpack.c.bf16 %v2421_v18, %v2405_v14 }
 0x231   : > { %5417 = vmatpush1.bf16.msra.mxu0 %v5416_v60  ;;  %v1299_v60 = vlaneseq }
 0x232   : > { %5545 = vmatpush1.bf16.msra.mxu1 %v5544_v8  ;;  %5419 = vmatprep.subr.bf16.mxu0 %v5418_v21  ;;  %v5434_v8 = vpack.c.bf16 %v2454_v25, %v2438_v45  ;;  %v2437_v21 = vld [vmem:[#allocation4 + $0x1940] sm:$0xff]  ;;  %v5444_v45 = vpack.c.bf16 %v2517_v7, %v2501_v6  ;;  %v2616_v6 = vld [vmem:[#allocation4 + $0x1ed8] sm:$0xff] }
 0x233   : > { %v6768_v58 = vpop.f32.mrb[16].mxu0  ;;  %5547 = vmatprep.subr.bf16.mxu1 %v5546_v48  ;;  %v6770_v56 = vpop.f32.mrb[16].mxu1  ;;  %v2455_v48 = vld [vmem:[#allocation4 + $0x19d0] sm:$0xff]  ;;  %v5436_v51 = vpack.c.bf16 %v2453_v44, %v2437_v21 }
 0x234   : > { %v6772_v31 = vpop.f32.mrb[17].mxu0  ;;  %v6774_v5 = vpop.f32.mrb[17].mxu1  ;;  %v2551_v44 = vld [vmem:[#allocation4 + $0x1cd0] sm:$0xff] }
 0x235   : > { %5421 = vmatpush1.bf16.msra.mxu0 %v5420_v28  ;;  %v6785_v28 = vand.u32 127, %v1299_v60 }
 0x236   : > { %5549 = vmatpush1.bf16.msra.mxu1 %v5548_v27  ;;  %5423 = vmatprep.subr.bf16.mxu0 %v5422_v54  ;;  %v5564_v27 = vpack.c.bf16 %v2455_v48, %v2439_v23  ;;  %v5438_v54 = vpack.c.bf16 %v2486_v15, %v2470_v49  ;;  %v2566_v23 = vld [vmem:[#allocation4 + $0x1d48] sm:$0xff]  ;;  %v2568_v49 = vld [vmem:[#allocation4 + $0x1d58] sm:$0xff] }
 0x237   : > { %v6776_v29 = vpop.f32.mrb[18].mxu0  ;;  %5551 = vmatprep.subr.bf16.mxu1 %v5550_v0  ;;  %v6778_v38 = vpop.f32.mrb[18].mxu1  ;;  %v2471_v0 = vld [vmem:[#allocation4 + $0x1a50] sm:$0xff]  ;;  %vm1353_vm15 = vcmp.lt.s32.totalorder %v6785_v28, 1  ;;  %vm1360_vm0 = vcmp.ge.s32.totalorder %v6785_v28, 1  ;;  %v2584_v15 = vld [vmem:[#allocation4 + $0x1dd8] sm:$0xff] }
 0x238   : > { %v6780_v13 = vpop.f32.mrb[19].mxu0  ;;  %v6782_v36 = vpop.f32.mrb[19].mxu1  ;;  %v5568_v24 = vpack.c.bf16 %v2487_v43, %v2471_v0  ;;  %v2567_v0 = vld [vmem:[#allocation4 + $0x1d50] sm:$0xff]  ;;  %v5578_v41 = vpack.c.bf16 %v2584_v15, %v2568_v49  ;;  %v1658_v49 = vld [vmem:[#allocation4 + $0xe8] sm:$0xff]  ;;  %v1644_v15 = vld [vmem:[#allocation4 + $0x78] sm:$0xff]  ;;  %vm1386_vm1 = vcmp.lt.s32.totalorder %v6785_v28, 2 }
 0x239   : > { %5425 = vmatpush1.bf16.msra.mxu0 %v5424_v10  ;;  %v2504_v10 = vld [vmem:[#allocation4 + $0x1b58] sm:$0xff]  ;;  %vm1393_vm3 = vcmp.ge.s32.totalorder %v6785_v28, 2  ;;  %vm1419_vm4 = vcmp.lt.s32.totalorder %v6785_v28, 4  ;;  %vm1426_vm5 = vcmp.ge.s32.totalorder %v6785_v28, 4  ;;  %vm1452_vm6 = vcmp.lt.s32.totalorder %v6785_v28, 8 }
 0x23a   : > { %5553 = vmatpush1.bf16.msra.mxu1 %v5552_v11  ;;  %5427 = vmatprep.subr.bf16.mxu0 %v5426_v20  ;;  %v2520_v11 = vld [vmem:[#allocation4 + $0x1bd8] sm:$0xff]  ;;  %vm1459_vm7 = vcmp.ge.s32.totalorder %v6785_v28, 8  ;;  %vm1485_vm9 = vcmp.lt.s32.totalorder %v6785_v28, 16  ;;  %vm1492_vm10 = vcmp.ge.s32.totalorder %v6785_v28, 16  ;;  %vm1518_vm14 = vcmp.lt.s32.totalorder %v6785_v28, 32 }
 0x23b   : > { %5555 = vmatprep.subr.bf16.mxu1 %v5554_v16  ;;  %v2503_v16 = vld [vmem:[#allocation4 + $0x1b50] sm:$0xff]  ;;  %v5570_v18 = vpack.c.bf16 %v2520_v11, %v2504_v10  ;;  %v2614_v10 = vld [vmem:[#allocation4 + $0x1ec8] sm:$0xff] }
 0x23c   : > { %v5572_v61 = vpack.c.bf16 %v2519_v33, %v2503_v16  ;;  %v2597_v33 = vld [vmem:[#allocation4 + $0x1e40] sm:$0xff] }
 0x23d   : > { %5429 = vmatpush1.bf16.msra.mxu0 %v5428_v37  ;;  %v2550_v37 = vld [vmem:[#allocation4 + $0x1cc8] sm:$0xff] }
 0x23e   : > { %5557 = vmatpush1.bf16.msra.mxu1 %v5556_v32  ;;  %5431 = vmatprep.subr.bf16.mxu0 %v5430_v47  ;;  %v5446_v4 = vpack.c.bf16 %v2550_v37, %v2534_v35  ;;  %v2613_v35 = vld [vmem:[#allocation4 + $0x1ec0] sm:$0xff]  ;;  %v2599_v37 = vld [vmem:[#allocation4 + $0x1e50] sm:$0xff] }
 0x23f   : > { %5559 = vmatprep.subr.bf16.mxu1 %v5558_v19  ;;  %v2552_v19 = vld [vmem:[#allocation4 + $0x1cd8] sm:$0xff] }
 0x240   : > { %v5574_v21 = vpack.c.bf16 %v2552_v19, %v2536_v34  ;;  %v2615_v34 = vld [vmem:[#allocation4 + $0x1ed0] sm:$0xff]  ;;  %v2630_v19 = vld [vmem:[#allocation4 + $0x1f48] sm:$0xff] }
 0x241   : > { %5433 = vmatpush1.bf16.msra.mxu0 %v5432_v62  ;;  %v2533_v62 = vld [vmem:[#allocation4 + $0x1c40] sm:$0xff] }
 0x242   : > { %5561 = vmatpush1.bf16.msra.mxu1 %v5560_v40  ;;  %5435 = vmatprep.subr.bf16.mxu0 %v5434_v8  ;;  %v2549_v40 = vld [vmem:[#allocation4 + $0x1cc0] sm:$0xff]  ;;  %v2535_v8 = vld [vmem:[#allocation4 + $0x1c50] sm:$0xff] }
 0x243   : > { %5563 = vmatprep.subr.bf16.mxu1 %v5562_v46  ;;  %v2582_v46 = vld [vmem:[#allocation4 + $0x1dc8] sm:$0xff]  ;;  %v5448_v50 = vpack.c.bf16 %v2549_v40, %v2533_v62  ;;  %v5584_v62 = vpack.c.bf16 %v2615_v34, %v2599_v37  ;;  %v1708_v37 = vld [vmem:[#allocation4 + $0x278] sm:$0xff] }
 0x244   : > { %v1342_v39 = vpop.permute.xlu0 %1341  ;;  %v5450_v1 = vpack.c.bf16 %v2582_v46, %v2566_v23  ;;  %v2647_v46 = vld [vmem:[#allocation4 + $0x1fd0] sm:$0xff] }
 0x245   : > { %5437 = vmatpush1.bf16.msra.mxu0 %v5436_v51 }
 0x246   : > { %v1348_v20 = vpop.permute.xlu1 %1347  ;;  %5565 = vmatpush1.bf16.msra.mxu1 %v5564_v27  ;;  %5439 = vmatprep.subr.bf16.mxu0 %v5438_v54  ;;  %v5576_v54 = vpack.c.bf16 %v2551_v44, %v2535_v8  ;;  %v2629_v8 = vld [vmem:[#allocation4 + $0x1f40] sm:$0xff]  ;;  %v2631_v44 = vld [vmem:[#allocation4 + $0x1f50] sm:$0xff] }
 0x247   : > { %v1354_v9 = vsel %vm1353_vm15, %v1342_v39, %v1348_v20  ;;  %v1357_v59 = vsel %vm1353_vm15, %v1348_v20, %v1342_v39  ;;  %5567 = vmatprep.subr.bf16.mxu1 %v5566_v57  ;;  %v2581_v57 = vld [vmem:[#allocation4 + $0x1dc0] sm:$0xff] }
 0x248   : > { %v1362_v32 = vsel %vm1360_vm0, %v1357_v59, 0.0  ;;  %v6796_v47 = vadd.f32 %v1354_v9, %v6723_v26  ;;  %v1344_v14 = vpop.permute.xlu0 %1343  ;;  %v5452_v16 = vpack.c.bf16 %v2581_v57, %v2565_v55  ;;  %v5580_v59 = vpack.c.bf16 %v2583_v2, %v2567_v0  ;;  %v1643_v57 = vld [vmem:[#allocation4 + $0x70] sm:$0xff] }
 0x249   : > { %v6799_v63 = vadd.f32 %v1362_v32, %v6710_v42  ;;  %5441 = vmatpush1.bf16.msra.mxu0 %v5440_v3  ;;  %v2598_v3 = vld [vmem:[#allocation4 + $0x1e48] sm:$0xff]  ;;  %v1659_v0 = vld [vmem:[#allocation4 + $0xf0] sm:$0xff] }
 0x24a   : > { %v1346_v25 = vpop.permute.xlu1 %1345  ;;  %1380 = vrot.lane.b32.xlu1 %v6796_v47, %s6245_s8  ;;  %5569 = vmatpush1.bf16.msra.mxu1 %v5568_v24  ;;  %v2600_v24 = vld [vmem:[#allocation4 + $0x1e58] sm:$0xff] }
 0x24b   : > { %1374 = vrot.lane.b32.xlu0 %v6799_v63, %s6245_s8  ;;  %5443 = vmatprep.subr.bf16.mxu0 %v5442_v12  ;;  %v5454_v12 = vpack.c.bf16 %v2614_v10, %v2598_v3  ;;  %v1676_v3 = vld [vmem:[#allocation4 + $0x178] sm:$0xff] }
 0x24c   : > { %v1350_v48 = vpop.permute.xlu0 %1349  ;;  %5571 = vmatprep.subr.bf16.mxu1 %v5570_v18  ;;  %v5582_v18 = vpack.c.bf16 %v2616_v6, %v2600_v24  ;;  %v1692_v10 = vld [vmem:[#allocation4 + $0x1f8] sm:$0xff]  ;;  %v1689_v24 = vld [vmem:[#allocation4 + $0x1e0] sm:$0xff]  ;;  %v1675_v6 = vld [vmem:[#allocation4 + $0x170] sm:$0xff] }
 0x24d   : > { %v1358_v22 = vsel %vm1353_vm15, %v1350_v48, %v1344_v14  ;;  %5445 = vmatpush1.bf16.msra.mxu0 %v5444_v45  ;;  %v1355_v9 = vsel %vm1353_vm15, %v1344_v14, %v1350_v48  ;;  %v2646_v45 = vld [vmem:[#allocation4 + $0x1fc8] sm:$0xff]  ;;  %v2648_v14 = vld [vmem:[#allocation4 + $0x1fd8] sm:$0xff] }
 0x24e   : > { %v1352_v51 = vpop.permute.xlu1 %1351  ;;  %v1364_v27 = vsel %vm1360_vm0, %v1358_v22, 0.0  ;;  %5573 = vmatpush1.bf16.msra.mxu1 %v5572_v61  ;;  %5447 = vmatprep.subr.bf16.mxu0 %v5446_v4  ;;  %v6831_v61 = vadd.f32 %v1355_v9, %v6751_v17  ;;  %v5456_v4 = vpack.c.bf16 %v2613_v35, %v2597_v33  ;;  %v5458_v40 = vpack.c.bf16 %v2646_v45, %v2630_v19  ;;  %v1642_v48 = vld [vmem:[#allocation4 + $0x68] sm:$0xff]  ;;  %v1660_v22 = vld [vmem:[#allocation4 + $0xf8] sm:$0xff]  ;;  %v1691_v9 = vld [vmem:[#allocation4 + $0x1f0] sm:$0xff] }
 0x24f   : > { %v1359_v43 = vsel %vm1353_vm15, %v1352_v51, %v1346_v25  ;;  %v6812_v39 = vadd.f32 %v1364_v27, %v6738_v53  ;;  %5575 = vmatprep.subr.bf16.mxu1 %v5574_v21  ;;  %v1356_v11 = vsel %vm1353_vm15, %v1346_v25, %v1352_v51  ;;  %v2632_v25 = vld [vmem:[#allocation4 + $0x1f58] sm:$0xff]  ;;  %v2645_v21 = vld [vmem:[#allocation4 + $0x1fc0] sm:$0xff]  ;;  %v5588_v51 = vpack.c.bf16 %v2647_v46, %v2631_v44  ;;  %v6092_v33 = vld [vmem:[%s6482_s27 + $0x10] sm:$0xff] }
 0x250   : > { %v1366_v20 = vsel %vm1360_vm0, %v1359_v43, 0.0  ;;  %v6826_v32 = vadd.f32 %v1356_v11, %v6756_v30  ;;  %v5586_v23 = vpack.c.bf16 %v2648_v14, %v2632_v25  ;;  %v5590_v27 = vpack.c.bf16 %v1658_v49, %v1642_v48  ;;  %v1674_v43 = vld [vmem:[#allocation4 + $0x168] sm:$0xff]  ;;  %v6093_v19 = vld [vmem:[%s6482_s27 + $0x38] sm:$0x3]  ;;  %v1705_v14 = vld [vmem:[#allocation4 + $0x260] sm:$0xff] }
 0x251   : > { %v6819_v7 = vadd.f32 %v1366_v20, %v6736_v52  ;;  %1376 = vrot.lane.b32.xlu1 %v6812_v39, %s6245_s8  ;;  %5449 = vmatpush1.bf16.msra.mxu0 %v5448_v50  ;;  %v5460_v50 = vpack.c.bf16 %v2645_v21, %v2629_v8  ;;  %v5718_v55 = vpack.c.bf16 %v1660_v22, %v1644_v15  ;;  %v1673_v20 = vld [vmem:[#allocation4 + $0x160] sm:$0xff]  ;;  %v1723_v8 = vld [vmem:[#allocation4 + $0x2f0] sm:$0xff]  ;;  %v1738_v21 = vld [vmem:[#allocation4 + $0x368] sm:$0xff]  ;;  %vm1525_vm15 = vcmp.ge.s32.totalorder %v6785_v28, 32 }
 0x252   : > { %5577 = vmatpush1.bf16.msra.mxu1 %v5576_v54  ;;  %5451 = vmatprep.subr.bf16.mxu0 %v5450_v1  ;;  %v1641_v54 = vld [vmem:[#allocation4 + $0x60] sm:$0xff]  ;;  %v5720_v11 = vpack.c.bf16 %v1659_v0, %v1643_v57  ;;  %v5722_v35 = vpack.c.bf16 %v1692_v10, %v1676_v3  ;;  %v5596_v34 = vpack.c.bf16 %v1689_v24, %v1673_v20  ;;  %v1754_v44 = vld [vmem:[#allocation4 + $0x3e8] sm:$0xff]  ;;  %v1740_v46 = vld [vmem:[#allocation4 + $0x378] sm:$0xff]  ;;  %vm1551_vm0 = vcmp.lt.s32.totalorder %v6785_v28, 64 }
 0x253   : > { %1378 = vrot.lane.b32.xlu0 %v6819_v7, %s6245_s8  ;;  %5579 = vmatprep.subr.bf16.mxu1 %v5578_v41  ;;  %v1657_v1 = vld [vmem:[#allocation4 + $0xe0] sm:$0xff]  ;;  %v1690_v41 = vld [vmem:[#allocation4 + $0x1e8] sm:$0xff]  ;;  %v5724_v45 = vpack.c.bf16 %v1691_v9, %v1675_v6  ;;  %v1756_v48 = vld [vmem:[#allocation4 + $0x3f8] sm:$0xff]  ;;  %v5602_v22 = vpack.c.bf16 %v1754_v44, %v1738_v21 }
 0x254   : > { %v5592_v2 = vpack.c.bf16 %v1657_v1, %v1641_v54  ;;  %v5730_v54 = vpack.c.bf16 %v1756_v48, %v1740_v46  ;;  %v1755_v1 = vld [vmem:[#allocation4 + $0x3f0] sm:$0xff]  ;;  %v1786_v57 = vld [vmem:[#allocation4 + $0x4e8] sm:$0xff]  ;;  %v1785_v20 = vld [vmem:[#allocation4 + $0x4e0] sm:$0xff] }
 0x255   : > { %1384 = vrot.lane.b32.xlu1 %v6826_v32, %s6245_s8  ;;  %5453 = vmatpush1.bf16.msra.mxu0 %v5452_v16  ;;  %v5594_v16 = vpack.c.bf16 %v1690_v41, %v1674_v43  ;;  %v6095_v0 = vld [vmem:[%s6482_s27 + $0x8] sm:$0xff]  ;;  %v1772_v43 = vld [vmem:[#allocation4 + $0x478] sm:$0xff]  ;;  %v1771_v24 = vld [vmem:[#allocation4 + $0x470] sm:$0xff] }
 0x256   : > { %5581 = vmatpush1.bf16.msra.mxu1 %v5580_v59  ;;  %5455 = vmatprep.subr.bf16.mxu0 %v5454_v12  ;;  %v1706_v59 = vld [vmem:[#allocation4 + $0x268] sm:$0xff]  ;;  %v1788_v41 = vld [vmem:[#allocation4 + $0x4f8] sm:$0xff]  ;;  %v1833_v46 = vld [vmem:[#allocation4 + $0x660] sm:$0xff] }
 0x257   : > { %1382 = vrot.lane.b32.xlu0 %v6831_v61, %s6245_s8  ;;  %5583 = vmatprep.subr.bf16.mxu1 %v5582_v18  ;;  %v1722_v12 = vld [vmem:[#allocation4 + $0x2e8] sm:$0xff]  ;;  %v1724_v18 = vld [vmem:[#allocation4 + $0x2f8] sm:$0xff]  ;;  %v5734_v6 = vpack.c.bf16 %v1788_v41, %v1772_v43  ;;  %v1849_v48 = vld [vmem:[#allocation4 + $0x6e0] sm:$0xff] }
 0x258   : > { %v5598_v25 = vpack.c.bf16 %v1722_v12, %v1706_v59  ;;  %v1802_v9 = vld [vmem:[#allocation4 + $0x568] sm:$0xff]  ;;  %v1804_v12 = vld [vmem:[#allocation4 + $0x578] sm:$0xff]  ;;  %v1881_v43 = vld [vmem:[#allocation4 + $0x7e0] sm:$0xff] }
 0x259   : > { %5457 = vmatpush1.bf16.msra.mxu0 %v5456_v4  ;;  %v1721_v4 = vld [vmem:[#allocation4 + $0x2e0] sm:$0xff]  ;;  %v1818_v59 = vld [vmem:[#allocation4 + $0x5e8] sm:$0xff]  ;;  %v1867_v41 = vld [vmem:[#allocation4 + $0x770] sm:$0xff] }
 0x25a   : > { %5585 = vmatpush1.bf16.msra.mxu1 %v5584_v62  ;;  %5459 = vmatprep.subr.bf16.mxu0 %v5458_v40  ;;  %v1707_v62 = vld [vmem:[#allocation4 + $0x270] sm:$0xff]  ;;  %v5726_v40 = vpack.c.bf16 %v1724_v18, %v1708_v37  ;;  %v5600_v49 = vpack.c.bf16 %v1721_v4, %v1705_v14  ;;  %v5610_v18 = vpack.c.bf16 %v1818_v59, %v1802_v9  ;;  %v1834_v4 = vld [vmem:[#allocation4 + $0x668] sm:$0xff]  ;;  %v1897_v59 = vld [vmem:[#allocation4 + $0x860] sm:$0xff] }
 0x25b   : > { %5587 = vmatprep.subr.bf16.mxu1 %v5586_v23  ;;  %v6094_v23 = vld [vmem:[%s6482_s27 + $0x30] sm:$0x3]  ;;  %v5728_v15 = vpack.c.bf16 %v1723_v8, %v1707_v62  ;;  %v1850_v62 = vld [vmem:[#allocation4 + $0x6e8] sm:$0xff]  ;;  %v1852_v8 = vld [vmem:[#allocation4 + $0x6f8] sm:$0xff] }
 0x25c   : > { %v1819_v14 = vld [vmem:[#allocation4 + $0x5f0] sm:$0xff] }
 0x25d   : > { %5461 = vmatpush1.bf16.msra.mxu0 %v5460_v50  ;;  %v1737_v50 = vld [vmem:[#allocation4 + $0x360] sm:$0xff] }
 0x25e   : > { %5589 = vmatpush1.bf16.msra.mxu1 %v5588_v51  ;;  %5591 = vmatprep.subr.bf16.mxu0 %v5590_v27  ;;  %v1753_v51 = vld [vmem:[#allocation4 + $0x3e0] sm:$0xff]  ;;  %v1739_v27 = vld [vmem:[#allocation4 + $0x370] sm:$0xff] }
 0x25f   : > { %5719 = vmatprep.subr.bf16.mxu1 %v5718_v55  ;;  %v1770_v55 = vld [vmem:[#allocation4 + $0x468] sm:$0xff]  ;;  %v5732_v3 = vpack.c.bf16 %v1755_v1, %v1739_v27  ;;  %v1868_v27 = vld [vmem:[#allocation4 + $0x778] sm:$0xff]  ;;  %v5616_v1 = vpack.c.bf16 %v1849_v48, %v1833_v46 }
 0x260   : > { %3411 = vmatmul.mubr.f32.vlgmr.msra.gmra.mrb[24].mxu0 %v6092_v33  ;;  %v5606_v10 = vpack.c.bf16 %v1786_v57, %v1770_v55  ;;  %v1978_v46 = vld [vmem:[#allocation4 + $0xae8] sm:$0xff]  ;;  %v1964_v48 = vld [vmem:[#allocation4 + $0xa78] sm:$0xff] }
 0x261   : > { %3565 = vmatmul.mubr.f32.vlgmr.msra.gmra.mrb[24].mxu1 %v6092_v33  ;;  %5593 = vmatpush1.bf16.msra.mxu0 %v5592_v2  ;;  %v5604_v2 = vpack.c.bf16 %v1753_v51, %v1737_v50  ;;  %v1820_v33 = vld [vmem:[#allocation4 + $0x5f8] sm:$0xff]  ;;  %v1866_v50 = vld [vmem:[#allocation4 + $0x768] sm:$0xff] }
 0x262   : > { %5721 = vmatpush1.bf16.msra.mxu1 %v5720_v11  ;;  %3416 = vmatprep.mubr.f32.mxu0 %v6093_v19  ;;  %v1769_v11 = vld [vmem:[#allocation4 + $0x460] sm:$0xff]  ;;  %v1882_v51 = vld [vmem:[#allocation4 + $0x7e8] sm:$0xff] }
 0x263   : > { %3570 = vmatprep.mubr.f32.mxu1 %v6093_v19  ;;  %5595 = vmatprep.subr.bf16.mxu0 %v5594_v16  ;;  %v1787_v16 = vld [vmem:[#allocation4 + $0x4f0] sm:$0xff]  ;;  %v1817_v19 = vld [vmem:[#allocation4 + $0x5e0] sm:$0xff]  ;;  %v5618_v57 = vpack.c.bf16 %v1882_v51, %v1866_v50 }
 0x264   : > { %3417 = vmatmul.mubr.f32.gmra.mrb[26].mxu0 %v6094_v23  ;;  %5723 = vmatprep.subr.bf16.mxu1 %v5722_v35  ;;  %v5608_v35 = vpack.c.bf16 %v1785_v20, %v1769_v11  ;;  %v5736_v37 = vpack.c.bf16 %v1787_v16, %v1771_v24  ;;  %v1914_v11 = vld [vmem:[#allocation4 + $0x8e8] sm:$0xff]  ;;  %v1900_v20 = vld [vmem:[#allocation4 + $0x878] sm:$0xff]  ;;  %v1961_v51 = vld [vmem:[#allocation4 + $0xa60] sm:$0xff] }
 0x265   : > { %3571 = vmatmul.mubr.f32.gmra.mrb[26].mxu1 %v6094_v23  ;;  %5597 = vmatpush1.bf16.msra.mxu0 %v5596_v34  ;;  %v1801_v34 = vld [vmem:[#allocation4 + $0x560] sm:$0xff]  ;;  %v5614_v23 = vpack.c.bf16 %v1850_v62, %v1834_v4  ;;  %v1916_v24 = vld [vmem:[#allocation4 + $0x8f8] sm:$0xff] }
 0x266   : > { %5725 = vmatpush1.bf16.msra.mxu1 %v5724_v45  ;;  %5599 = vmatprep.subr.bf16.mxu0 %v5598_v25  ;;  %v1803_v45 = vld [vmem:[#allocation4 + $0x570] sm:$0xff]  ;;  %v5738_v25 = vpack.c.bf16 %v1820_v33, %v1804_v12  ;;  %v5612_v21 = vpack.c.bf16 %v1817_v19, %v1801_v34  ;;  %v1913_v12 = vld [vmem:[#allocation4 + $0x8e0] sm:$0xff]  ;;  %v1946_v34 = vld [vmem:[#allocation4 + $0x9e8] sm:$0xff] }
 0x267   : > { %5727 = vmatprep.subr.bf16.mxu1 %v5726_v40  ;;  %3641 = vmatprep.mubr.f32.mxu0 %v6095_v0  ;;  %v1836_v40 = vld [vmem:[#allocation4 + $0x678] sm:$0xff]  ;;  %v5740_v44 = vpack.c.bf16 %v1819_v14, %v1803_v45  ;;  %v1899_v33 = vld [vmem:[#allocation4 + $0x870] sm:$0xff]  ;;  %v1929_v62 = vld [vmem:[#allocation4 + $0x960] sm:$0xff] }
 0x268   : > { %3795 = vmatprep.mubr.f32.mxu1 %v6095_v0  ;;  %v1865_v0 = vld [vmem:[#allocation4 + $0x760] sm:$0xff]  ;;  %v1932_v19 = vld [vmem:[#allocation4 + $0x978] sm:$0xff] }
 0x269   : > { %5601 = vmatpush1.bf16.msra.mxu0 %v5600_v49  ;;  %v1835_v49 = vld [vmem:[#allocation4 + $0x670] sm:$0xff]  ;;  %v1948_v45 = vld [vmem:[#allocation4 + $0x9f8] sm:$0xff] }
 0x26a   : > { %5729 = vmatpush1.bf16.msra.mxu1 %v5728_v15  ;;  %5603 = vmatprep.subr.bf16.mxu0 %v5602_v22  ;;  %v5742_v15 = vpack.c.bf16 %v1852_v8, %v1836_v40  ;;  %v1851_v22 = vld [vmem:[#allocation4 + $0x6f0] sm:$0xff]  ;;  %v1945_v40 = vld [vmem:[#allocation4 + $0x9e0] sm:$0xff] }
 0x26b   : > { %5731 = vmatprep.subr.bf16.mxu1 %v5730_v54  ;;  %v1884_v54 = vld [vmem:[#allocation4 + $0x7f8] sm:$0xff]  ;;  %v5744_v55 = vpack.c.bf16 %v1851_v22, %v1835_v49  ;;  %v1931_v8 = vld [vmem:[#allocation4 + $0x970] sm:$0xff] }
 0x26c   : > { %v1980_v49 = vld [vmem:[#allocation4 + $0xaf8] sm:$0xff] }
 0x26d   : > { %5605 = vmatpush1.bf16.msra.mxu0 %v5604_v2  ;;  %v5746_v2 = vpack.c.bf16 %v1884_v54, %v1868_v27  ;;  %v1977_v27 = vld [vmem:[#allocation4 + $0xae0] sm:$0xff]  ;;  %v1963_v54 = vld [vmem:[#allocation4 + $0xa70] sm:$0xff] }
 0x26e   : > { %5733 = vmatpush1.bf16.msra.mxu1 %v5732_v3  ;;  %5607 = vmatprep.subr.bf16.mxu0 %v5606_v10  ;;  %v1883_v3 = vld [vmem:[#allocation4 + $0x7f0] sm:$0xff]  ;;  %v1898_v10 = vld [vmem:[#allocation4 + $0x868] sm:$0xff] }
 0x26f   : > { %5735 = vmatprep.subr.bf16.mxu1 %v5734_v6  ;;  %v5620_v6 = vpack.c.bf16 %v1881_v43, %v1865_v0  ;;  %v5748_v16 = vpack.c.bf16 %v1883_v3, %v1867_v41  ;;  %v5622_v9 = vpack.c.bf16 %v1914_v11, %v1898_v10  ;;  %v2010_v0 = vld [vmem:[#allocation4 + $0xbe8] sm:$0xff]  ;;  %v1996_v43 = vld [vmem:[#allocation4 + $0xb78] sm:$0xff]  ;;  %v1993_v11 = vld [vmem:[#allocation4 + $0xb60] sm:$0xff] }
 0x270   : > { %v2012_v41 = vld [vmem:[#allocation4 + $0xbf8] sm:$0xff] }
 0x271   : > { %5609 = vmatpush1.bf16.msra.mxu0 %v5608_v35  ;;  %v5750_v35 = vpack.c.bf16 %v1916_v24, %v1900_v20  ;;  %v2009_v20 = vld [vmem:[#allocation4 + $0xbe0] sm:$0xff]  ;;  %v1995_v24 = vld [vmem:[#allocation4 + $0xb70] sm:$0xff] }
 0x272   : > { %5737 = vmatpush1.bf16.msra.mxu1 %v5736_v37  ;;  %5611 = vmatprep.subr.bf16.mxu0 %v5610_v18  ;;  %v1915_v37 = vld [vmem:[#allocation4 + $0x8f0] sm:$0xff]  ;;  %v1930_v18 = vld [vmem:[#allocation4 + $0x968] sm:$0xff] }
 0x273   : > { %5739 = vmatprep.subr.bf16.mxu1 %v5738_v25  ;;  %v5624_v25 = vpack.c.bf16 %v1913_v12, %v1897_v59  ;;  %v5752_v14 = vpack.c.bf16 %v1915_v37, %v1899_v33  ;;  %v5626_v4 = vpack.c.bf16 %v1946_v34, %v1930_v18  ;;  %v2042_v59 = vld [vmem:[#allocation4 + $0xce8] sm:$0xff]  ;;  %v2028_v12 = vld [vmem:[#allocation4 + $0xc78] sm:$0xff]  ;;  %v2025_v34 = vld [vmem:[#allocation4 + $0xc60] sm:$0xff] }
 0x274   : > { %v2044_v33 = vld [vmem:[#allocation4 + $0xcf8] sm:$0xff] }
 0x275   : > { %5613 = vmatpush1.bf16.msra.mxu0 %v5612_v21  ;;  %v5754_v21 = vpack.c.bf16 %v1948_v45, %v1932_v19  ;;  %v2041_v19 = vld [vmem:[#allocation4 + $0xce0] sm:$0xff]  ;;  %v2027_v45 = vld [vmem:[#allocation4 + $0xc70] sm:$0xff] }
 0x276   : > { %5741 = vmatpush1.bf16.msra.mxu1 %v5740_v44  ;;  %5615 = vmatprep.subr.bf16.mxu0 %v5614_v23  ;;  %v1947_v44 = vld [vmem:[#allocation4 + $0x9f0] sm:$0xff]  ;;  %v1962_v23 = vld [vmem:[#allocation4 + $0xa68] sm:$0xff] }
 0x277   : > { %5743 = vmatprep.subr.bf16.mxu1 %v5742_v15  ;;  %v5628_v15 = vpack.c.bf16 %v1945_v40, %v1929_v62  ;;  %v5756_v22 = vpack.c.bf16 %v1947_v44, %v1931_v8  ;;  %v5630_v50 = vpack.c.bf16 %v1978_v46, %v1962_v23  ;;  %v2074_v62 = vld [vmem:[#allocation4 + $0xde8] sm:$0xff]  ;;  %v2060_v40 = vld [vmem:[#allocation4 + $0xd78] sm:$0xff]  ;;  %v2057_v46 = vld [vmem:[#allocation4 + $0xd60] sm:$0xff] }
 0x278   : > { %v2076_v8 = vld [vmem:[#allocation4 + $0xdf8] sm:$0xff] }
 0x279   : > { %5617 = vmatpush1.bf16.msra.mxu0 %v5616_v1  ;;  %v5758_v1 = vpack.c.bf16 %v1980_v49, %v1964_v48  ;;  %v2073_v48 = vld [vmem:[#allocation4 + $0xde0] sm:$0xff]  ;;  %v2059_v49 = vld [vmem:[#allocation4 + $0xd70] sm:$0xff] }
 0x27a   : > { %5745 = vmatpush1.bf16.msra.mxu1 %v5744_v55  ;;  %5619 = vmatprep.subr.bf16.mxu0 %v5618_v57  ;;  %v1979_v55 = vld [vmem:[#allocation4 + $0xaf0] sm:$0xff]  ;;  %v1994_v57 = vld [vmem:[#allocation4 + $0xb68] sm:$0xff] }
 0x27b   : > { %5747 = vmatprep.subr.bf16.mxu1 %v5746_v2  ;;  %v5632_v2 = vpack.c.bf16 %v1977_v27, %v1961_v51  ;;  %v5760_v3 = vpack.c.bf16 %v1979_v55, %v1963_v54  ;;  %v5634_v10 = vpack.c.bf16 %v2010_v0, %v1994_v57  ;;  %v2106_v51 = vld [vmem:[#allocation4 + $0xee8] sm:$0xff]  ;;  %v2092_v27 = vld [vmem:[#allocation4 + $0xe78] sm:$0xff]  ;;  %v2089_v0 = vld [vmem:[#allocation4 + $0xe60] sm:$0xff] }
 0x27c   : > { %v2108_v54 = vld [vmem:[#allocation4 + $0xef8] sm:$0xff] }
 0x27d   : > { %5621 = vmatpush1.bf16.msra.mxu0 %v5620_v6  ;;  %v5762_v6 = vpack.c.bf16 %v2012_v41, %v1996_v43  ;;  %v2105_v43 = vld [vmem:[#allocation4 + $0xee0] sm:$0xff]  ;;  %v2091_v41 = vld [vmem:[#allocation4 + $0xe70] sm:$0xff] }
 0x27e   : > { %5749 = vmatpush1.bf16.msra.mxu1 %v5748_v16  ;;  %5623 = vmatprep.subr.bf16.mxu0 %v5622_v9  ;;  %v2011_v16 = vld [vmem:[#allocation4 + $0xbf0] sm:$0xff]  ;;  %v2026_v9 = vld [vmem:[#allocation4 + $0xc68] sm:$0xff] }
 0x27f   : > { %5751 = vmatprep.subr.bf16.mxu1 %v5750_v35  ;;  %v5636_v35 = vpack.c.bf16 %v2009_v20, %v1993_v11  ;;  %v5764_v37 = vpack.c.bf16 %v2011_v16, %v1995_v24  ;;  %v5638_v18 = vpack.c.bf16 %v2042_v59, %v2026_v9  ;;  %v2138_v11 = vld [vmem:[#allocation4 + $0xfe8] sm:$0xff]  ;;  %v2124_v20 = vld [vmem:[#allocation4 + $0xf78] sm:$0xff]  ;;  %v2121_v59 = vld [vmem:[#allocation4 + $0xf60] sm:$0xff] }
 0x280   : > { %v2140_v24 = vld [vmem:[#allocation4 + $0xff8] sm:$0xff] }
 0x281   : > { %5625 = vmatpush1.bf16.msra.mxu0 %v5624_v25  ;;  %v5766_v25 = vpack.c.bf16 %v2044_v33, %v2028_v12  ;;  %v2137_v12 = vld [vmem:[#allocation4 + $0xfe0] sm:$0xff]  ;;  %v2123_v33 = vld [vmem:[#allocation4 + $0xf70] sm:$0xff] }
 0x282   : > { %5753 = vmatpush1.bf16.msra.mxu1 %v5752_v14  ;;  %5627 = vmatprep.subr.bf16.mxu0 %v5626_v4  ;;  %v2043_v14 = vld [vmem:[#allocation4 + $0xcf0] sm:$0xff]  ;;  %v2058_v4 = vld [vmem:[#allocation4 + $0xd68] sm:$0xff] }
 0x283   : > { %5755 = vmatprep.subr.bf16.mxu1 %v5754_v21  ;;  %v5640_v21 = vpack.c.bf16 %v2041_v19, %v2025_v34  ;;  %v5768_v44 = vpack.c.bf16 %v2043_v14, %v2027_v45  ;;  %v5642_v23 = vpack.c.bf16 %v2074_v62, %v2058_v4  ;;  %v2170_v34 = vld [vmem:[#allocation4 + $0x10e8] sm:$0xff]  ;;  %v2156_v19 = vld [vmem:[#allocation4 + $0x1078] sm:$0xff]  ;;  %v2153_v62 = vld [vmem:[#allocation4 + $0x1060] sm:$0xff] }
 0x284   : > { %v2172_v45 = vld [vmem:[#allocation4 + $0x10f8] sm:$0xff] }
 0x285   : > { %5629 = vmatpush1.bf16.msra.mxu0 %v5628_v15  ;;  %v5770_v15 = vpack.c.bf16 %v2076_v8, %v2060_v40  ;;  %v2169_v40 = vld [vmem:[#allocation4 + $0x10e0] sm:$0xff]  ;;  %v2155_v8 = vld [vmem:[#allocation4 + $0x1070] sm:$0xff] }
 0x286   : > { %5757 = vmatpush1.bf16.msra.mxu1 %v5756_v22  ;;  %5631 = vmatprep.subr.bf16.mxu0 %v5630_v50  ;;  %v2075_v22 = vld [vmem:[#allocation4 + $0xdf0] sm:$0xff]  ;;  %v2090_v50 = vld [vmem:[#allocation4 + $0xe68] sm:$0xff] }
 0x287   : > { %5759 = vmatprep.subr.bf16.mxu1 %v5758_v1  ;;  %v5644_v1 = vpack.c.bf16 %v2073_v48, %v2057_v46  ;;  %v5772_v55 = vpack.c.bf16 %v2075_v22, %v2059_v49  ;;  %v5646_v57 = vpack.c.bf16 %v2106_v51, %v2090_v50  ;;  %v2202_v46 = vld [vmem:[#allocation4 + $0x11e8] sm:$0xff]  ;;  %v2188_v48 = vld [vmem:[#allocation4 + $0x1178] sm:$0xff]  ;;  %v2185_v51 = vld [vmem:[#allocation4 + $0x1160] sm:$0xff] }
 0x288   : > { %v2204_v49 = vld [vmem:[#allocation4 + $0x11f8] sm:$0xff] }
 0x289   : > { %5633 = vmatpush1.bf16.msra.mxu0 %v5632_v2  ;;  %v5774_v2 = vpack.c.bf16 %v2108_v54, %v2092_v27  ;;  %v2201_v27 = vld [vmem:[#allocation4 + $0x11e0] sm:$0xff]  ;;  %v2187_v54 = vld [vmem:[#allocation4 + $0x1170] sm:$0xff] }
 0x28a   : > { %5761 = vmatpush1.bf16.msra.mxu1 %v5760_v3  ;;  %5635 = vmatprep.subr.bf16.mxu0 %v5634_v10  ;;  %v2107_v3 = vld [vmem:[#allocation4 + $0xef0] sm:$0xff]  ;;  %v2122_v10 = vld [vmem:[#allocation4 + $0xf68] sm:$0xff] }
 0x28b   : > { %5763 = vmatprep.subr.bf16.mxu1 %v5762_v6  ;;  %v5648_v6 = vpack.c.bf16 %v2105_v43, %v2089_v0  ;;  %v5776_v16 = vpack.c.bf16 %v2107_v3, %v2091_v41  ;;  %v5650_v9 = vpack.c.bf16 %v2138_v11, %v2122_v10  ;;  %v2234_v0 = vld [vmem:[#allocation4 + $0x12e8] sm:$0xff]  ;;  %v6096_v43 = vld [vmem:[%s6482_s27] sm:$0xff]  ;;  %v2220_v41 = vld [vmem:[#allocation4 + $0x1278] sm:$0xff]  ;;  %v5660_v3 = vpack.c.bf16 %v2201_v27, %v2185_v51 }
 0x28c   : > { %v2283_v51 = vld [vmem:[#allocation4 + $0x1470] sm:$0xff] }
 0x28d   : > { %5637 = vmatpush1.bf16.msra.mxu0 %v5636_v35  ;;  %v5778_v35 = vpack.c.bf16 %v2140_v24, %v2124_v20  ;;  %v2217_v20 = vld [vmem:[#allocation4 + $0x1260] sm:$0xff] }
 0x28e   : > { %5765 = vmatpush1.bf16.msra.mxu1 %v5764_v37  ;;  %5639 = vmatprep.subr.bf16.mxu0 %v5638_v18  ;;  %v2139_v37 = vld [vmem:[#allocation4 + $0xff0] sm:$0xff]  ;;  %v2154_v18 = vld [vmem:[#allocation4 + $0x1068] sm:$0xff]  ;;  %v2233_v24 = vld [vmem:[#allocation4 + $0x12e0] sm:$0xff] }
 0x28f   : > { %5767 = vmatprep.subr.bf16.mxu1 %v5766_v25  ;;  %v5652_v25 = vpack.c.bf16 %v2137_v12, %v2121_v59  ;;  %v5780_v14 = vpack.c.bf16 %v2139_v37, %v2123_v33  ;;  %v5654_v4 = vpack.c.bf16 %v2170_v34, %v2154_v18  ;;  %v2250_v59 = vld [vmem:[#allocation4 + $0x1368] sm:$0xff]  ;;  %v2268_v37 = vld [vmem:[#allocation4 + $0x13f8] sm:$0xff]  ;;  %v6098_v18 = vld [vmem:[%s6482_s27 + $0x20] sm:$0x3]  ;;  %v5664_v34 = vpack.c.bf16 %v2233_v24, %v2217_v20 }
 0x290   : > { %v2266_v12 = vld [vmem:[#allocation4 + $0x13e8] sm:$0xff]  ;;  %v2331_v24 = vld [vmem:[#allocation4 + $0x15f0] sm:$0xff] }
 0x291   : > { %5641 = vmatpush1.bf16.msra.mxu0 %v5640_v21  ;;  %v5782_v21 = vpack.c.bf16 %v2172_v45, %v2156_v19  ;;  %v6097_v33 = vld [vmem:[%s6482_s27 + $0x28] sm:$0x3]  ;;  %v5666_v45 = vpack.c.bf16 %v2266_v12, %v2250_v59  ;;  %v2364_v59 = vld [vmem:[#allocation4 + $0x16f8] sm:$0xff] }
 0x292   : > { %5769 = vmatpush1.bf16.msra.mxu1 %v5768_v44  ;;  %5643 = vmatprep.subr.bf16.mxu0 %v5642_v23  ;;  %v2171_v44 = vld [vmem:[#allocation4 + $0x10f0] sm:$0xff]  ;;  %v2186_v23 = vld [vmem:[#allocation4 + $0x1168] sm:$0xff] }
 0x293   : > { %5771 = vmatprep.subr.bf16.mxu1 %v5770_v15  ;;  %v5656_v15 = vpack.c.bf16 %v2169_v40, %v2153_v62  ;;  %v5784_v22 = vpack.c.bf16 %v2171_v44, %v2155_v8  ;;  %v5658_v50 = vpack.c.bf16 %v2202_v46, %v2186_v23  ;;  %v2267_v40 = vld [vmem:[#allocation4 + $0x13f0] sm:$0xff]  ;;  %v2282_v8 = vld [vmem:[#allocation4 + $0x1468] sm:$0xff]  ;;  %v6099_v44 = vld [vmem:[%s6482_s27 + $0x18] sm:$0xff] }
 0x294   : > { %v2284_v23 = vld [vmem:[#allocation4 + $0x1478] sm:$0xff] }
 0x295   : > { %5645 = vmatpush1.bf16.msra.mxu0 %v5644_v1  ;;  %v5786_v1 = vpack.c.bf16 %v2204_v49, %v2188_v48  ;;  %v2300_v46 = vld [vmem:[#allocation4 + $0x14f8] sm:$0xff] }
 0x296   : > { %5773 = vmatpush1.bf16.msra.mxu1 %v5772_v55  ;;  %5647 = vmatprep.subr.bf16.mxu0 %v5646_v57  ;;  %v2203_v55 = vld [vmem:[#allocation4 + $0x11f0] sm:$0xff]  ;;  %v2218_v57 = vld [vmem:[#allocation4 + $0x1268] sm:$0xff]  ;;  %v5798_v27 = vpack.c.bf16 %v2300_v46, %v2284_v23 }
 0x297   : > { %5775 = vmatprep.subr.bf16.mxu1 %v5774_v2  ;;  %v2236_v2 = vld [vmem:[#allocation4 + $0x12f8] sm:$0xff]  ;;  %v5788_v10 = vpack.c.bf16 %v2203_v55, %v2187_v54  ;;  %v5662_v11 = vpack.c.bf16 %v2234_v0, %v2218_v57  ;;  %v2299_v54 = vld [vmem:[#allocation4 + $0x14f0] sm:$0xff]  ;;  %v2330_v55 = vld [vmem:[#allocation4 + $0x15e8] sm:$0xff] }
 0x298   : > { %v2316_v57 = vld [vmem:[#allocation4 + $0x1578] sm:$0xff] }
 0x299   : > { %5649 = vmatpush1.bf16.msra.mxu0 %v5648_v6  ;;  %v2219_v6 = vld [vmem:[#allocation4 + $0x1270] sm:$0xff]  ;;  %v2332_v0 = vld [vmem:[#allocation4 + $0x15f8] sm:$0xff] }
 0x29a   : > { %5777 = vmatpush1.bf16.msra.mxu1 %v5776_v16  ;;  %5651 = vmatprep.subr.bf16.mxu0 %v5650_v9  ;;  %v5790_v16 = vpack.c.bf16 %v2236_v2, %v2220_v41  ;;  %v2235_v9 = vld [vmem:[#allocation4 + $0x12f0] sm:$0xff]  ;;  %v5800_v41 = vpack.c.bf16 %v2299_v54, %v2283_v51  ;;  %v5802_v20 = vpack.c.bf16 %v2332_v0, %v2316_v57  ;;  %v2410_v54 = vld [vmem:[#allocation4 + $0x1868] sm:$0xff]  ;;  %v2412_v0 = vld [vmem:[#allocation4 + $0x1878] sm:$0xff] }
 0x29b   : > { %5779 = vmatprep.subr.bf16.mxu1 %v5778_v35  ;;  %v2252_v35 = vld [vmem:[#allocation4 + $0x1378] sm:$0xff]  ;;  %v5792_v19 = vpack.c.bf16 %v2235_v9, %v2219_v6  ;;  %v2346_v6 = vld [vmem:[#allocation4 + $0x1668] sm:$0xff] }
 0x29c   : > { %v5794_v62 = vpack.c.bf16 %v2268_v37, %v2252_v35  ;;  %v2348_v9 = vld [vmem:[#allocation4 + $0x1678] sm:$0xff]  ;;  %v2345_v37 = vld [vmem:[#allocation4 + $0x1660] sm:$0xff] }
 0x29d   : > { %5653 = vmatpush1.bf16.msra.mxu0 %v5652_v25  ;;  %v2249_v25 = vld [vmem:[#allocation4 + $0x1360] sm:$0xff] }
 0x29e   : > { %5781 = vmatpush1.bf16.msra.mxu1 %v5780_v14  ;;  %5655 = vmatprep.subr.bf16.mxu0 %v5654_v4  ;;  %v2265_v14 = vld [vmem:[#allocation4 + $0x13e0] sm:$0xff]  ;;  %v2251_v4 = vld [vmem:[#allocation4 + $0x1370] sm:$0xff] }
 0x29f   : > { %5783 = vmatprep.subr.bf16.mxu1 %v5782_v21  ;;  %v2298_v21 = vld [vmem:[#allocation4 + $0x14e8] sm:$0xff]  ;;  %v5668_v48 = vpack.c.bf16 %v2265_v14, %v2249_v25  ;;  %v5796_v49 = vpack.c.bf16 %v2267_v40, %v2251_v4  ;;  %v2363_v25 = vld [vmem:[#allocation4 + $0x16f0] sm:$0xff] }
 0x2a0   : > { %3642 = vmatmul.mubr.f32.vlgmr.msra.gmra.mrb[28].mxu0 %v6096_v43  ;;  %v2378_v14 = vld [vmem:[#allocation4 + $0x1768] sm:$0xff] }
 0x2a1   : > { %5657 = vmatpush1.bf16.msra.mxu0 %v5656_v15  ;;  %3796 = vmatmul.mubr.f32.vlgmr.msra.gmra.mrb[28].mxu1 %v6096_v43  ;;  %v5670_v15 = vpack.c.bf16 %v2298_v21, %v2282_v8  ;;  %v2394_v4 = vld [vmem:[#allocation4 + $0x17e8] sm:$0xff]  ;;  %v2380_v8 = vld [vmem:[#allocation4 + $0x1778] sm:$0xff] }
 0x2a2   : > { %5785 = vmatpush1.bf16.msra.mxu1 %v5784_v22  ;;  %5659 = vmatprep.subr.bf16.mxu0 %v5658_v50  ;;  %v2281_v22 = vld [vmem:[#allocation4 + $0x1460] sm:$0xff]  ;;  %v2396_v21 = vld [vmem:[#allocation4 + $0x17f8] sm:$0xff] }
 0x2a3   : > { %5787 = vmatprep.subr.bf16.mxu1 %v5786_v1  ;;  %3647 = vmatprep.mubr.f32.mxu0 %v6097_v33  ;;  %v2297_v50 = vld [vmem:[#allocation4 + $0x14e0] sm:$0xff]  ;;  %v2314_v1 = vld [vmem:[#allocation4 + $0x1568] sm:$0xff]  ;;  %v5810_v51 = vpack.c.bf16 %v2396_v21, %v2380_v8  ;;  %v2443_v8 = vld [vmem:[#allocation4 + $0x1970] sm:$0xff] }
 0x2a4   : > { %3801 = vmatprep.mubr.f32.mxu1 %v6097_v33  ;;  %3648 = vmatmul.mubr.f32.gmra.mrb[30].mxu0 %v6098_v18  ;;  %v5672_v43 = vpack.c.bf16 %v2297_v50, %v2281_v22  ;;  %v5674_v2 = vpack.c.bf16 %v2330_v55, %v2314_v1  ;;  %v2379_v22 = vld [vmem:[#allocation4 + $0x1770] sm:$0xff]  ;;  %v2426_v1 = vld [vmem:[#allocation4 + $0x18e8] sm:$0xff] }
 0x2a5   : > { %5661 = vmatpush1.bf16.msra.mxu0 %v5660_v3  ;;  %3802 = vmatmul.mubr.f32.gmra.mrb[30].mxu1 %v6098_v18  ;;  %v2313_v3 = vld [vmem:[#allocation4 + $0x1560] sm:$0xff] }
 0x2a6   : > { %5789 = vmatpush1.bf16.msra.mxu1 %v5788_v10  ;;  %5663 = vmatprep.subr.bf16.mxu0 %v5662_v11  ;;  %v2329_v10 = vld [vmem:[#allocation4 + $0x15e0] sm:$0xff]  ;;  %v2315_v11 = vld [vmem:[#allocation4 + $0x1570] sm:$0xff] }
 0x2a7   : > { %5791 = vmatprep.subr.bf16.mxu1 %v5790_v16  ;;  %3718 = vmatprep.mubr.f32.mxu0 %v6099_v44  ;;  %v2362_v16 = vld [vmem:[#allocation4 + $0x16e8] sm:$0xff]  ;;  %v5676_v12 = vpack.c.bf16 %v2329_v10, %v2313_v3  ;;  %v5804_v33 = vpack.c.bf16 %v2331_v24, %v2315_v11  ;;  %v2361_v18 = vld [vmem:[#allocation4 + $0x16e0] sm:$0xff]  ;;  %v5686_v10 = vpack.c.bf16 %v2426_v1, %v2410_v54  ;;  %v2492_v54 = vld [vmem:[#allocation4 + $0x1af8] sm:$0xff] }
 0x2a8   : > { %3872 = vmatprep.mubr.f32.mxu1 %v6099_v44  ;;  %v5678_v35 = vpack.c.bf16 %v2362_v16, %v2346_v6  ;;  %v5680_v23 = vpack.c.bf16 %v2361_v18, %v2345_v37  ;;  %v2409_v11 = vld [vmem:[#allocation4 + $0x1860] sm:$0xff]  ;;  %v2411_v6 = vld [vmem:[#allocation4 + $0x1870] sm:$0xff] }
 0x2a9   : > { %5665 = vmatpush1.bf16.msra.mxu0 %v5664_v34  ;;  %v2347_v34 = vld [vmem:[#allocation4 + $0x1670] sm:$0xff] }
 0x2aa   : > { %5793 = vmatpush1.bf16.msra.mxu1 %v5792_v19  ;;  %5667 = vmatprep.subr.bf16.mxu0 %v5666_v45  ;;  %v5806_v45 = vpack.c.bf16 %v2364_v59, %v2348_v9  ;;  %v5808_v46 = vpack.c.bf16 %v2363_v25, %v2347_v34  ;;  %v2427_v16 = vld [vmem:[#allocation4 + $0x18f0] sm:$0xff]  ;;  %v2442_v9 = vld [vmem:[#allocation4 + $0x1968] sm:$0xff] }
 0x2ab   : > { %5795 = vmatprep.subr.bf16.mxu1 %v5794_v62  ;;  %v5816_v25 = vpack.c.bf16 %v2427_v16, %v2411_v6  ;;  %v2508_v6 = vld [vmem:[#allocation4 + $0x1b78] sm:$0xff] }
 0x2ac   : > { %v2524_v16 = vld [vmem:[#allocation4 + $0x1bf8] sm:$0xff] }
 0x2ad   : > { %5669 = vmatpush1.bf16.msra.mxu0 %v5668_v48  ;;  %v5682_v48 = vpack.c.bf16 %v2394_v4, %v2378_v14  ;;  %v2441_v14 = vld [vmem:[#allocation4 + $0x1960] sm:$0xff] }
 0x2ae   : > { %5797 = vmatpush1.bf16.msra.mxu1 %v5796_v49  ;;  %5671 = vmatprep.subr.bf16.mxu0 %v5670_v15  ;;  %v2377_v49 = vld [vmem:[#allocation4 + $0x1760] sm:$0xff] }
 0x2af   : > { %5799 = vmatprep.subr.bf16.mxu1 %v5798_v27  ;;  %v2393_v15 = vld [vmem:[#allocation4 + $0x17e0] sm:$0xff]  ;;  %v2395_v27 = vld [vmem:[#allocation4 + $0x17f0] sm:$0xff] }
 0x2b0   : > { %v5812_v3 = vpack.c.bf16 %v2395_v27, %v2379_v22  ;;  %v2457_v4 = vld [vmem:[#allocation4 + $0x19e0] sm:$0xff]  ;;  %v2490_v22 = vld [vmem:[#allocation4 + $0x1ae8] sm:$0xff]  ;;  %v2476_v27 = vld [vmem:[#allocation4 + $0x1a78] sm:$0xff] }
 0x2b1   : > { %5673 = vmatpush1.bf16.msra.mxu0 %v5672_v43  ;;  %v2428_v43 = vld [vmem:[#allocation4 + $0x18f8] sm:$0xff]  ;;  %v5692_v1 = vpack.c.bf16 %v2457_v4, %v2441_v14  ;;  %v2538_v14 = vld [vmem:[#allocation4 + $0x1c68] sm:$0xff] }
 0x2b2   : > { %5801 = vmatpush1.bf16.msra.mxu1 %v5800_v41  ;;  %5675 = vmatprep.subr.bf16.mxu0 %v5674_v2  ;;  %v5684_v2 = vpack.c.bf16 %v2393_v15, %v2377_v49  ;;  %v5814_v24 = vpack.c.bf16 %v2428_v43, %v2412_v0  ;;  %v2459_v49 = vld [vmem:[#allocation4 + $0x19f0] sm:$0xff]  ;;  %v2474_v15 = vld [vmem:[#allocation4 + $0x1a68] sm:$0xff]  ;;  %v2473_v43 = vld [vmem:[#allocation4 + $0x1a60] sm:$0xff] }
 0x2b3   : > { %v6845_v19 = vpop.f32.mrb[20].mxu0  ;;  %5803 = vmatprep.subr.bf16.mxu1 %v5802_v20  ;;  %v2425_v20 = vld [vmem:[#allocation4 + $0x18e0] sm:$0xff]  ;;  %v5694_v0 = vpack.c.bf16 %v2490_v22, %v2474_v15 }
 0x2b4   : > { %v6847_v62 = vpop.f32.mrb[20].mxu1  ;;  %v6849_v40 = vpop.f32.mrb[21].mxu0  ;;  %v5688_v18 = vpack.c.bf16 %v2425_v20, %v2409_v11  ;;  %v2491_v11 = vld [vmem:[#allocation4 + $0x1af0] sm:$0xff]  ;;  %v2506_v20 = vld [vmem:[#allocation4 + $0x1b68] sm:$0xff] }
 0x2b5   : > { %v6851_v44 = vpop.f32.mrb[21].mxu1  ;;  %5677 = vmatpush1.bf16.msra.mxu0 %v5676_v12  ;;  %v2458_v12 = vld [vmem:[#allocation4 + $0x19e8] sm:$0xff] }
 0x2b6   : > { %5805 = vmatpush1.bf16.msra.mxu1 %v5804_v33  ;;  %5679 = vmatprep.subr.bf16.mxu0 %v5678_v35  ;;  %v2444_v33 = vld [vmem:[#allocation4 + $0x1978] sm:$0xff] }
 0x2b7   : > { %v6853_v50 = vpop.f32.mrb[22].mxu0  ;;  %5807 = vmatprep.subr.bf16.mxu1 %v5806_v45  ;;  %v2460_v35 = vld [vmem:[#allocation4 + $0x19f8] sm:$0xff] }
 0x2b8   : > { %v6855_v55 = vpop.f32.mrb[22].mxu1  ;;  %v6857_v57 = vpop.f32.mrb[23].mxu0 }
 0x2b9   : > { %v6859_v41 = vpop.f32.mrb[23].mxu1  ;;  %5681 = vmatpush1.bf16.msra.mxu0 %v5680_v23 }
 0x2ba   : > { %5809 = vmatpush1.bf16.msra.mxu1 %v5808_v46  ;;  %5683 = vmatprep.subr.bf16.mxu0 %v5682_v48  ;;  %v5690_v46 = vpack.c.bf16 %v2458_v12, %v2442_v9  ;;  %v5818_v48 = vpack.c.bf16 %v2460_v35, %v2444_v33  ;;  %v2505_v35 = vld [vmem:[#allocation4 + $0x1b60] sm:$0xff] }
 0x2bb   : > { %5811 = vmatprep.subr.bf16.mxu1 %v5810_v51 }
 0x2bc   : > { %v1381_v59 = vpop.permute.xlu1 %1380 }
 0x2bd   : > { %v1375_v37 = vpop.permute.xlu0 %1374  ;;  %5685 = vmatpush1.bf16.msra.mxu0 %v5684_v2  ;;  %v2489_v2 = vld [vmem:[#allocation4 + $0x1ae0] sm:$0xff] }
 0x2be   : > { %v1387_v34 = vsel %vm1386_vm1, %v1375_v37, %v1381_v59  ;;  %v1390_v45 = vsel %vm1386_vm1, %v1381_v59, %v1375_v37  ;;  %5813 = vmatpush1.bf16.msra.mxu1 %v5812_v3  ;;  %5687 = vmatprep.subr.bf16.mxu0 %v5686_v10  ;;  %v2475_v3 = vld [vmem:[#allocation4 + $0x1a70] sm:$0xff]  ;;  %v5696_v59 = vpack.c.bf16 %v2489_v2, %v2473_v43  ;;  %v2521_v37 = vld [vmem:[#allocation4 + $0x1be0] sm:$0xff] }
 0x2bf   : > { %v1395_v21 = vsel %vm1393_vm3, %v1390_v45, 0.0  ;;  %v6870_v23 = vadd.f32 %v1387_v34, %v6796_v47  ;;  %5815 = vmatprep.subr.bf16.mxu1 %v5814_v24  ;;  %v5820_v47 = vpack.c.bf16 %v2459_v49, %v2443_v8  ;;  %v2522_v24 = vld [vmem:[#allocation4 + $0x1be8] sm:$0xff]  ;;  %v5824_v12 = vpack.c.bf16 %v2491_v11, %v2475_v3  ;;  %v2507_v45 = vld [vmem:[#allocation4 + $0x1b70] sm:$0xff] }
 0x2c0   : > { %v6873_v51 = vadd.f32 %v1395_v21, %v6799_v63  ;;  %v5822_v63 = vpack.c.bf16 %v2492_v54, %v2476_v27  ;;  %v5698_v33 = vpack.c.bf16 %v2522_v24, %v2506_v20  ;;  %v5826_v34 = vpack.c.bf16 %v2524_v16, %v2508_v6  ;;  %v2554_v8 = vld [vmem:[#allocation4 + $0x1ce8] sm:$0xff]  ;;  %v2540_v21 = vld [vmem:[#allocation4 + $0x1c78] sm:$0xff]  ;;  %v2555_v11 = vld [vmem:[#allocation4 + $0x1cf0] sm:$0xff] }
 0x2c1   : > { %1413 = vrot.lane.b32.xlu1 %v6870_v23, %s6246_s9  ;;  %5689 = vmatpush1.bf16.msra.mxu0 %v5688_v18  ;;  %v5700_v15 = vpack.c.bf16 %v2521_v37, %v2505_v35  ;;  %v5702_v2 = vpack.c.bf16 %v2554_v8, %v2538_v14  ;;  %v2570_v20 = vld [vmem:[#allocation4 + $0x1d68] sm:$0xff]  ;;  %v2572_v6 = vld [vmem:[#allocation4 + $0x1d78] sm:$0xff]  ;;  %v2585_v35 = vld [vmem:[#allocation4 + $0x1de0] sm:$0xff] }
 0x2c2   : > { %1407 = vrot.lane.b32.xlu0 %v6873_v51, %s6246_s9  ;;  %5817 = vmatpush1.bf16.msra.mxu1 %v5816_v25  ;;  %v2523_v25 = vld [vmem:[#allocation4 + $0x1bf0] sm:$0xff]  ;;  %v2586_v24 = vld [vmem:[#allocation4 + $0x1de8] sm:$0xff]  ;;  %v2588_v16 = vld [vmem:[#allocation4 + $0x1df8] sm:$0xff] }
 0x2c3   : > { %v1377_v10 = vpop.permute.xlu1 %1376  ;;  %5691 = vmatprep.subr.bf16.mxu0 %v5690_v46  ;;  %5819 = vmatprep.subr.bf16.mxu1 %v5818_v48  ;;  %v2556_v46 = vld [vmem:[#allocation4 + $0x1cf8] sm:$0xff]  ;;  %v5828_v54 = vpack.c.bf16 %v2523_v25, %v2507_v45  ;;  %v2571_v37 = vld [vmem:[#allocation4 + $0x1d70] sm:$0xff]  ;;  %v5834_v45 = vpack.c.bf16 %v2588_v16, %v2572_v6  ;;  %v2602_v14 = vld [vmem:[#allocation4 + $0x1e68] sm:$0xff] }
 0x2c4   : > { %v5830_v3 = vpack.c.bf16 %v2556_v46, %v2540_v21  ;;  %v2587_v25 = vld [vmem:[#allocation4 + $0x1df0] sm:$0xff]  ;;  %v3997_v16 = vld [vmem:[#allocation6 + $0x80] sm:$0xff] }
 0x2c5   : > { %v1379_v9 = vpop.permute.xlu0 %1378  ;;  %5693 = vmatpush1.bf16.msra.mxu0 %v5692_v1  ;;  %v2537_v1 = vld [vmem:[#allocation4 + $0x1c60] sm:$0xff]  ;;  %v5836_v21 = vpack.c.bf16 %v2587_v25, %v2571_v37  ;;  %v2651_v6 = vld [vmem:[#allocation4 + $0x1ff0] sm:$0xff]  ;;  %v3982_v25 = vld [vmem:[#allocation6 + $0x8] sm:$0xff] }
 0x2c6   : > { %5821 = vmatpush1.bf16.msra.mxu1 %v5820_v47  ;;  %5695 = vmatprep.subr.bf16.mxu0 %v5694_v0  ;;  %v2553_v47 = vld [vmem:[#allocation4 + $0x1ce0] sm:$0xff] }
 0x2c7   : > { %v1385_v18 = vpop.permute.xlu1 %1384  ;;  %5823 = vmatprep.subr.bf16.mxu1 %v5822_v63  ;;  %v2539_v63 = vld [vmem:[#allocation4 + $0x1c70] sm:$0xff] }
 0x2c8   : > { %v1392_v4 = vsel %vm1386_vm1, %v1385_v18, %v1379_v9 }
 0x2c9   : > { %v1383_v48 = vpop.permute.xlu0 %1382  ;;  %v1399_v49 = vsel %vm1393_vm3, %v1392_v4, 0.0  ;;  %5697 = vmatpush1.bf16.msra.mxu0 %v5696_v59  ;;  %v5704_v59 = vpack.c.bf16 %v2553_v47, %v2537_v1  ;;  %v2620_v4 = vld [vmem:[#allocation4 + $0x1ef8] sm:$0xff]  ;;  %v2650_v1 = vld [vmem:[#allocation4 + $0x1fe8] sm:$0xff] }
 0x2ca   : > { %v1391_v22 = vsel %vm1386_vm1, %v1383_v48, %v1377_v10  ;;  %v6886_v27 = vadd.f32 %v1399_v49, %v6819_v7  ;;  %5825 = vmatpush1.bf16.msra.mxu1 %v5824_v12  ;;  %5699 = vmatprep.subr.bf16.mxu0 %v5698_v33  ;;  %v1388_v0 = vsel %vm1386_vm1, %v1377_v10, %v1383_v48  ;;  %v2569_v33 = vld [vmem:[#allocation4 + $0x1d60] sm:$0xff]  ;;  %v2636_v47 = vld [vmem:[#allocation4 + $0x1f78] sm:$0xff] }
 0x2cb   : > { %v1397_v43 = vsel %vm1393_vm3, %v1391_v22, 0.0  ;;  %5827 = vmatprep.subr.bf16.mxu1 %v5826_v34  ;;  %v1389_v10 = vsel %vm1386_vm1, %v1379_v9, %v1385_v18  ;;  %v6900_v12 = vadd.f32 %v1388_v0, %v6831_v61  ;;  %v5706_v34 = vpack.c.bf16 %v2586_v24, %v2570_v20  ;;  %v2618_v9 = vld [vmem:[#allocation4 + $0x1ee8] sm:$0xff]  ;;  %v2604_v61 = vld [vmem:[#allocation4 + $0x1e78] sm:$0xff]  ;;  %v2601_v48 = vld [vmem:[#allocation4 + $0x1e60] sm:$0xff] }
 0x2cc   : > { %v6893_v7 = vadd.f32 %v1397_v43, %v6812_v39  ;;  %1411 = vrot.lane.b32.xlu0 %v6886_v27, %s6246_s9  ;;  %v5832_v39 = vpack.c.bf16 %v2555_v11, %v2539_v63  ;;  %v6905_v18 = vadd.f32 %v1389_v10, %v6826_v32  ;;  %v5708_v8 = vpack.c.bf16 %v2585_v35, %v2569_v33  ;;  %v2617_v49 = vld [vmem:[#allocation4 + $0x1ee0] sm:$0xff]  ;;  %v2619_v22 = vld [vmem:[#allocation4 + $0x1ef0] sm:$0xff]  ;;  %v2652_v0 = vld [vmem:[#allocation4 + $0x1ff8] sm:$0xff] }
 0x2cd   : > { %5701 = vmatpush1.bf16.msra.mxu0 %v5700_v15  ;;  %v5710_v46 = vpack.c.bf16 %v2618_v9, %v2602_v14  ;;  %v2603_v15 = vld [vmem:[#allocation4 + $0x1e70] sm:$0xff]  ;;  %v5838_v32 = vpack.c.bf16 %v2620_v4, %v2604_v61  ;;  %v5712_v43 = vpack.c.bf16 %v2617_v49, %v2601_v48  ;;  %v2633_v63 = vld [vmem:[#allocation4 + $0x1f60] sm:$0xff]  ;;  %v5842_v24 = vpack.c.bf16 %v2652_v0, %v2636_v47  ;;  %v3998_v10 = vld [vmem:[#allocation6 + $0x88] sm:$0xff] }
 0x2ce   : > { %1409 = vrot.lane.b32.xlu1 %v6893_v7, %s6246_s9  ;;  %5829 = vmatpush1.bf16.msra.mxu1 %v5828_v54  ;;  %v2634_v54 = vld [vmem:[#allocation4 + $0x1f68] sm:$0xff]  ;;  %v2649_v11 = vld [vmem:[#allocation4 + $0x1fe0] sm:$0xff]  ;;  %v2635_v20 = vld [vmem:[#allocation4 + $0x1f70] sm:$0xff]  ;;  %v5846_v37 = vpack.c.bf16 %v3998_v10, %v3997_v16  ;;  %vm1558_vm1 = vcmp.ge.s32.totalorder %v6785_v28, 64 }
 0x2cf   : > { %5703 = vmatprep.subr.bf16.mxu0 %v5702_v2  ;;  %5831 = vmatprep.subr.bf16.mxu1 %v5830_v3  ;;  %v5840_v2 = vpack.c.bf16 %v2619_v22, %v2603_v15  ;;  %v5714_v3 = vpack.c.bf16 %v2650_v1, %v2634_v54  ;;  %v5716_v33 = vpack.c.bf16 %v2649_v11, %v2633_v63  ;;  %v4013_v14 = vld [vmem:[#allocation6 + $0x100] sm:$0xff]  ;;  %v4014_v9 = vld [vmem:[#allocation6 + $0x108] sm:$0xff]  ;;  %v3999_v48 = vld [vmem:[#allocation6 + $0x90] sm:$0xff] }
 0x2d0   : > { %1415 = vrot.lane.b32.xlu0 %v6900_v12, %s6246_s9  ;;  %v5844_v35 = vpack.c.bf16 %v2651_v6, %v2635_v20  ;;  %v5880_v4 = vpack.c.bf16 %v4014_v9, %v4013_v14  ;;  %v4000_v49 = vld [vmem:[#allocation6 + $0x98] sm:$0xff]  ;;  %v4031_v15 = vld [vmem:[#allocation6 + $0x190] sm:$0xff]  ;;  %v4001_v63 = vld [vmem:[#allocation6 + $0xa0] sm:$0xff] }
 0x2d1   : > { %5705 = vmatpush1.bf16.msra.mxu0 %v5704_v59  ;;  %v4029_v59 = vld [vmem:[#allocation6 + $0x180] sm:$0xff]  ;;  %v4032_v22 = vld [vmem:[#allocation6 + $0x198] sm:$0xff]  ;;  %v3983_v54 = vld [vmem:[#allocation6 + $0x10] sm:$0xff] }
 0x2d2   : > { %1417 = vrot.lane.b32.xlu1 %v6905_v18, %s6246_s9  ;;  %5833 = vmatpush1.bf16.msra.mxu1 %v5832_v39  ;;  %v4030_v39 = vld [vmem:[#allocation6 + $0x188] sm:$0xff]  ;;  %v3984_v1 = vld [vmem:[#allocation6 + $0x18] sm:$0xff]  ;;  %v5882_v47 = vpack.c.bf16 %v4032_v22, %v4031_v15  ;;  %v4033_v20 = vld [vmem:[#allocation6 + $0x1a0] sm:$0xff] }
 0x2d3   : > { %5707 = vmatprep.subr.bf16.mxu0 %v5706_v34  ;;  %5835 = vmatprep.subr.bf16.mxu1 %v5834_v45  ;;  %v5878_v34 = vpack.c.bf16 %v4030_v39, %v4029_v59  ;;  %v3981_v45 = vld [vmem:[#allocation6] sm:$0xff]  ;;  %v5852_v0 = vpack.c.bf16 %v3984_v1, %v3983_v54  ;;  %v4002_v11 = vld [vmem:[#allocation6 + $0xa8] sm:$0xff]  ;;  %v4036_v14 = vld [vmem:[#allocation6 + $0x1b8] sm:$0xff] }
 0x2d4   : > { %v5848_v61 = vpack.c.bf16 %v3982_v25, %v3981_v45  ;;  %v4034_v6 = vld [vmem:[#allocation6 + $0x1a8] sm:$0xff]  ;;  %v3985_v16 = vld [vmem:[#allocation6 + $0x20] sm:$0xff]  ;;  %v4004_v45 = vld [vmem:[#allocation6 + $0xb8] sm:$0xff] }
 0x2d5   : > { %5709 = vmatpush1.bf16.msra.mxu0 %v5708_v8  ;;  %v6100_v8 = vld [vmem:[%s6482_s27 + $0x10] sm:$0xff]  ;;  %v3986_v10 = vld [vmem:[#allocation6 + $0x28] sm:$0xff]  ;;  %v5886_v59 = vpack.c.bf16 %v4034_v6, %v4033_v20  ;;  %v4020_v15 = vld [vmem:[#allocation6 + $0x138] sm:$0xff] }
 0x2d6   : > { %5837 = vmatpush1.bf16.msra.mxu1 %v5836_v21  ;;  %5711 = vmatprep.subr.bf16.mxu0 %v5710_v46  ;;  %v6101_v21 = vld [vmem:[%s6482_s27 + $0x38] sm:$0x3]  ;;  %v6102_v46 = vld [vmem:[%s6482_s27 + $0x30] sm:$0x3]  ;;  %v5856_v39 = vpack.c.bf16 %v3986_v10, %v3985_v16  ;;  %v3989_v6 = vld [vmem:[#allocation6 + $0x40] sm:$0xff] }
 0x2d7   : > { %5839 = vmatprep.subr.bf16.mxu1 %v5838_v32  ;;  %v5850_v32 = vpack.c.bf16 %v4000_v49, %v3999_v48  ;;  %v4035_v25 = vld [vmem:[#allocation6 + $0x1b0] sm:$0xff]  ;;  %v3990_v16 = vld [vmem:[#allocation6 + $0x48] sm:$0xff] }
 0x2d9   : > { %5713 = vmatpush1.bf16.msra.mxu0 %v5712_v43  ;;  %v4015_v43 = vld [vmem:[#allocation6 + $0x110] sm:$0xff] }
 0x2da   : > { %5841 = vmatpush1.bf16.msra.mxu1 %v5840_v2  ;;  %5715 = vmatprep.subr.bf16.mxu0 %v5714_v3  ;;  %v4016_v2 = vld [vmem:[#allocation6 + $0x118] sm:$0xff] }
 0x2db   : > { %5843 = vmatprep.subr.bf16.mxu1 %v5842_v24  ;;  %v5884_v3 = vpack.c.bf16 %v4016_v2, %v4015_v43  ;;  %v5854_v24 = vpack.c.bf16 %v4002_v11, %v4001_v63  ;;  %v4005_v2 = vld [vmem:[#allocation6 + $0xc0] sm:$0xff] }
 0x2dc   : > { %v4037_v63 = vld [vmem:[#allocation6 + $0x1c0] sm:$0xff] }
 0x2dd   : > { %5717 = vmatpush1.bf16.msra.mxu0 %v5716_v33  ;;  %v4017_v33 = vld [vmem:[#allocation6 + $0x120] sm:$0xff] }
 0x2de   : > { %5845 = vmatpush1.bf16.msra.mxu1 %v5844_v35  ;;  %5847 = vmatprep.subr.bf16.mxu0 %v5846_v37  ;;  %v4018_v35 = vld [vmem:[#allocation6 + $0x128] sm:$0xff]  ;;  %v4003_v37 = vld [vmem:[#allocation6 + $0xb0] sm:$0xff] }
 0x2df   : > { %5879 = vmatprep.subr.bf16.mxu1 %v5878_v34  ;;  %v5888_v34 = vpack.c.bf16 %v4018_v35, %v4017_v33  ;;  %v5858_v9 = vpack.c.bf16 %v4004_v45, %v4003_v37  ;;  %v5864_v35 = vpack.c.bf16 %v3990_v16, %v3989_v6  ;;  %v4021_v37 = vld [vmem:[#allocation6 + $0x140] sm:$0xff]  ;;  %v4024_v6 = vld [vmem:[#allocation6 + $0x158] sm:$0xff] }
 0x2e0   : > { %3719 = vmatmul.mubr.f32.vlgmr.msra.gmra.mrb[28].mxu0 %v6100_v8 }
 0x2e1   : > { %3873 = vmatmul.mubr.f32.vlgmr.msra.gmra.mrb[28].mxu1 %v6100_v8  ;;  %3724 = vmatprep.mubr.f32.mxu0 %v6101_v21  ;;  %v3988_v8 = vld [vmem:[#allocation6 + $0x38] sm:$0xff] }
 0x2e2   : > { %3878 = vmatprep.mubr.f32.mxu1 %v6101_v21  ;;  %5849 = vmatpush3.bf16.msra.mxu0 %v5848_v61  ;;  %v5890_v61 = vpack.c.bf16 %v4036_v14, %v4035_v25  ;;  %v4019_v21 = vld [vmem:[#allocation6 + $0x130] sm:$0xff] }
 0x2e3   : > { %5881 = vmatpush3.bf16.msra.mxu1 %v5880_v4  ;;  %5851 = vmatprep.subr.bf16.mxu0 %v5850_v32  ;;  %v3987_v4 = vld [vmem:[#allocation6 + $0x30] sm:$0xff]  ;;  %v5892_v54 = vpack.c.bf16 %v4020_v15, %v4019_v21 }
 0x2e4   : > { %3725 = vmatmul.mubr.f32.gmra.mrb[30].mxu0 %v6102_v46  ;;  %5883 = vmatprep.subr.bf16.mxu1 %v5882_v47  ;;  %v5860_v49 = vpack.c.bf16 %v3988_v8, %v3987_v4 }
 0x2e5   : > { %3879 = vmatmul.mubr.f32.gmra.mrb[30].mxu1 %v6102_v46 }
 0x2e6   : > { %5853 = vmatpush3.bf16.msra.mxu0 %v5852_v0 }
 0x2e7   : > { %5885 = vmatpush3.bf16.msra.mxu1 %v5884_v3  ;;  %5855 = vmatprep.subr.bf16.mxu0 %v5854_v24  ;;  %v4006_v3 = vld [vmem:[#allocation6 + $0xc8] sm:$0xff] }
 0x2e8   : > { %5887 = vmatprep.subr.bf16.mxu1 %v5886_v59  ;;  %v4038_v24 = vld [vmem:[#allocation6 + $0x1c8] sm:$0xff] }
 0x2e9   : > { %v5894_v33 = vpack.c.bf16 %v4038_v24, %v4037_v63  ;;  %v4023_v24 = vld [vmem:[#allocation6 + $0x150] sm:$0xff] }
 0x2ea   : > { %5857 = vmatpush3.bf16.msra.mxu0 %v5856_v39  ;;  %v5862_v39 = vpack.c.bf16 %v4006_v3, %v4005_v2  ;;  %v4040_v2 = vld [vmem:[#allocation6 + $0x1d8] sm:$0xff] }
 0x2eb   : > { %5889 = vmatpush3.bf16.msra.mxu1 %v5888_v34  ;;  %5859 = vmatprep.subr.bf16.mxu0 %v5858_v9  ;;  %v4022_v34 = vld [vmem:[#allocation6 + $0x148] sm:$0xff] }
 0x2ec   : > { %5891 = vmatprep.subr.bf16.mxu1 %v5890_v61  ;;  %v5896_v9 = vpack.c.bf16 %v4022_v34, %v4021_v37 }
 0x2ee   : > { %5861 = vmatpush3.bf16.msra.mxu0 %v5860_v49 }
 0x2ef   : > { %5893 = vmatpush3.bf16.msra.mxu1 %v5892_v54  ;;  %5863 = vmatprep.subr.bf16.mxu0 %v5862_v39  ;;  %v4008_v54 = vld [vmem:[#allocation6 + $0xd8] sm:$0xff] }
 0x2f0   : > { %5895 = vmatprep.subr.bf16.mxu1 %v5894_v33  ;;  %v4009_v33 = vld [vmem:[#allocation6 + $0xe0] sm:$0xff] }
 0x2f2   : > { %5865 = vmatpush3.bf16.msra.mxu0 %v5864_v35  ;;  %v4010_v35 = vld [vmem:[#allocation6 + $0xe8] sm:$0xff] }
 0x2f3   : > { %5897 = vmatpush3.bf16.msra.mxu1 %v5896_v9  ;;  %v5870_v9 = vpack.c.bf16 %v4010_v35, %v4009_v33 }
 0x333   : > { %v1414_v46 = vpop.permute.xlu1 %1413  ;;  %v3412_v48 = vpop.f32.mrb[24].mxu0 }
 0x334   : > { %v1408_v32 = vpop.permute.xlu0 %1407  ;;  %v3566_v22 = vpop.f32.mrb[24].mxu1 }
 0x335   : > { %v1420_v1 = vsel %vm1419_vm4, %v1408_v32, %v1414_v46  ;;  %v1423_v47 = vsel %vm1419_vm4, %v1414_v46, %v1408_v32  ;;  %v3568_v0 = vpop.f32.mrb[25].mxu1  ;;  %v3414_v43 = vpop.f32.mrb[25].mxu0  ;;  %v3899_v61 = vrot.slane %v3566_v22, 1  ;;  %v4007_v32 = vld [vmem:[#allocation6 + $0xd0] sm:$0xff] }
 0x336   : > { %v1428_v11 = vsel %vm1426_vm5, %v1423_v47, 0.0  ;;  %v6923_v20 = vadd.f32 %v1420_v1, %v6870_v23  ;;  %v3893_v23 = vrot.slane %v3412_v48, 1  ;;  %v3902_v46 = vrot.slane %v3568_v0, 1 }
 0x337   : > { %v6926_v10 = vadd.f32 %v1428_v11, %v6873_v51  ;;  %v3418_v59 = vpop.f32.mrb[26].mxu0  ;;  %v3896_v51 = vrot.slane %v3414_v43, 1  ;;  %v4039_v43 = vld [vmem:[#allocation6 + $0x1d0] sm:$0xff]  ;;  %v3992_v11 = vld [vmem:[#allocation6 + $0x58] sm:$0xff] }
 0x338   : > { %1446 = vrot.lane.b32.xlu1 %v6923_v20, %s6247_s23  ;;  %v3894_v45 = vrot.slane %v3418_v59, 1  ;;  %v3572_v25 = vpop.f32.mrb[26].mxu1  ;;  %v3420_v14 = vpop.f32.mrb[27].mxu0  ;;  %v5898_v37 = vpack.c.bf16 %v4040_v2, %v4039_v43 }
 0x339   : > { %1440 = vrot.lane.b32.xlu0 %v6926_v10, %s6247_s23  ;;  %v3900_v4 = vrot.slane %v3572_v25, 1  ;;  %v3897_v8 = vrot.slane %v3420_v14, 1  ;;  %v3574_v21 = vpop.f32.mrb[27].mxu1  ;;  %v3994_v25 = vld [vmem:[#allocation6 + $0x68] sm:$0xff] }
 0x33a   : > { %v3895_v49 = vsel %vm1188_vm2, %v3893_v23, %v3894_v45  ;;  %v6934_v15 = vadd.f32 %v3894_v45, %v6776_v29  ;;  %v3903_v48 = vrot.slane %v3574_v21, 1  ;;  %v3991_v29 = vld [vmem:[#allocation6 + $0x50] sm:$0xff]  ;;  %v4042_v23 = vld [vmem:[#allocation6 + $0x1e8] sm:$0xff]  ;;  %v3993_v45 = vld [vmem:[#allocation6 + $0x60] sm:$0xff]  ;;  %5899 = vmatprep.subr.bf16.mxu1 %v5898_v37 }
 0x33b   : > { %v6937_v22 = vadd.f32 %v3895_v49, %v6768_v58  ;;  %v3901_v1 = vsel %vm1188_vm2, %v3899_v61, %v3900_v4  ;;  %v6941_v47 = vadd.f32 %v3900_v4, %v6778_v38  ;;  %v3898_v0 = vsel %vm1188_vm2, %v3896_v51, %v3897_v8  ;;  %v4026_v51 = vld [vmem:[#allocation6 + $0x168] sm:$0xff]  ;;  %v4011_v4 = vld [vmem:[#allocation6 + $0xf0] sm:$0xff] }
 0x33c   : > { %v6945_v3 = vadd.f32 %v3901_v1, %v6770_v56  ;;  %v6948_v63 = vadd.f32 %v3898_v0, %v6772_v31  ;;  %v6951_v58 = vadd.f32 %v3897_v8, %v6780_v13  ;;  %v3904_v38 = vsel %vm1188_vm2, %v3902_v46, %v3903_v48  ;;  %v4041_v31 = vld [vmem:[#allocation6 + $0x1e0] sm:$0xff]  ;;  %v4012_v8 = vld [vmem:[#allocation6 + $0xf8] sm:$0xff]  ;;  %v4043_v21 = vld [vmem:[#allocation6 + $0x1f0] sm:$0xff] }
 0x33d   : > { %v6955_v16 = vadd.f32 %v3903_v48, %v6782_v36  ;;  %v6958_v59 = vadd.f32 %v3904_v38, %v6774_v5  ;;  %v5866_v56 = vpack.c.bf16 %v4008_v54, %v4007_v32  ;;  %v5868_v34 = vpack.c.bf16 %v3992_v11, %v3991_v29  ;;  %v4025_v36 = vld [vmem:[#allocation6 + $0x160] sm:$0xff]  ;;  %v4044_v46 = vld [vmem:[#allocation6 + $0x1f8] sm:$0xff]  ;;  %v3995_v54 = vld [vmem:[#allocation6 + $0x70] sm:$0xff] }
 0x33e   : > { %v1412_v39 = vpop.permute.xlu0 %1411  ;;  %v5900_v13 = vpack.c.bf16 %v4024_v6, %v4023_v24  ;;  %v5902_v61 = vpack.c.bf16 %v4042_v23, %v4041_v31  ;;  %v5872_v5 = vpack.c.bf16 %v3994_v25, %v3993_v45  ;;  %v5904_v48 = vpack.c.bf16 %v4026_v51, %v4025_v36  ;;  %v3996_v1 = vld [vmem:[#allocation6 + $0x78] sm:$0xff]  ;;  %v4027_v29 = vld [vmem:[#allocation6 + $0x170] sm:$0xff] }
 0x33f   : > { %5867 = vmatprep.subr.bf16.mxu0 %v5866_v56  ;;  %v5874_v32 = vpack.c.bf16 %v4012_v8, %v4011_v4  ;;  %v5906_v2 = vpack.c.bf16 %v4044_v46, %v4043_v21  ;;  %v4028_v11 = vld [vmem:[#allocation6 + $0x178] sm:$0xff]  ;;  %v5876_v35 = vpack.c.bf16 %v3996_v1, %v3995_v54  ;;  %v3963_v36 = vmul.f32 %v6941_v47, %v6941_v47 }
 0x340   : > { %v1410_v14 = vpop.permute.xlu1 %1409  ;;  %5869 = vmatpush3.bf16.msra.mxu0 %v5868_v34  ;;  %5901 = vmatpush3.bf16.msra.mxu1 %v5900_v13  ;;  %v5908_v37 = vpack.c.bf16 %v4028_v11, %v4027_v29  ;;  %v3962_v51 = vmul.f32 %v6951_v58, %v6951_v58  ;;  %v3964_v4 = vmul.f32 %v6955_v16, %v6955_v16 }
 0x341   : > { %5871 = vmatprep.subr.bf16.mxu0 %v5870_v9  ;;  %5903 = vmatprep.subr.bf16.mxu1 %v5902_v61  ;;  %v3961_v9 = vmul.f32 %v6934_v15, %v6934_v15  ;;  %v3959_v61 = vmul.f32 %v6945_v3, %v6945_v3  ;;  %v3958_v15 = vmul.f32 %v6948_v63, %v6948_v63 }
 0x342   : > { %v1416_v49 = vpop.permute.xlu0 %1415  ;;  %v3960_v3 = vmul.f32 %v6958_v59, %v6958_v59 }
 0x343   : > { %v6962_v0 = vsel %vm1419_vm4, %v1410_v14, %v1416_v49  ;;  %v1424_v43 = vsel %vm1419_vm4, %v1416_v49, %v1410_v14  ;;  %v3957_v14 = vmul.f32 %v6937_v22, %v6937_v22 }
 0x344   : > { %v1418_v24 = vpop.permute.xlu1 %1417  ;;  %v1430_v6 = vsel %vm1426_vm5, %v1424_v43, 0.0  ;;  %5873 = vmatpush3.bf16.msra.mxu0 %v5872_v5  ;;  %5905 = vmatpush3.bf16.msra.mxu1 %v5904_v48 }
 0x345   : > { %v6970_v38 = vsel %vm1419_vm4, %v1412_v39, %v1418_v24  ;;  %v1425_v56 = vsel %vm1419_vm4, %v1418_v24, %v1412_v39  ;;  %v6975_v33 = vadd.f32 %v1430_v6, %v6893_v7  ;;  %5875 = vmatprep.subr.bf16.mxu0 %v5874_v32  ;;  %5907 = vmatprep.subr.bf16.mxu1 %v5906_v2 }
 0x346   : > { %v1432_v31 = vsel %vm1426_vm5, %v1425_v56, 0.0 }
 0x347   : > { %v6980_v34 = vadd.f32 %v1432_v31, %v6886_v27  ;;  %1442 = vrot.lane.b32.xlu1 %v6975_v33, %s6247_s23 }
 0x348   : > { %5877 = vmatpush3.bf16.msra.mxu0 %v5876_v35  ;;  %5909 = vmatpush3.bf16.msra.mxu1 %v5908_v37 }
 0x349   : > { %1444 = vrot.lane.b32.xlu0 %v6980_v34, %s6247_s23 }
 0x3aa   : > { %v6987_v7 = vpop.permute.xlu1 %1446 }
 0x3ab   : > { %v6989_v39 = vpop.permute.xlu0 %1440 }
 0x3ac   : > { %v6995_v27 = vsel %vm1452_vm6, %v6989_v39, %v6987_v7 }
 0x3b3   : > { %v3720_v13 = vpop.f32.mrb[28].mxu0 }
 0x3b4   : > { %v3874_v23 = vpop.f32.mrb[28].mxu1  ;;  %v3722_v45 = vpop.f32.mrb[29].mxu0  ;;  %v3929_v8 = vrot.slane %v3720_v13, 1 }
 0x3b5   : > { %v3876_v25 = vpop.f32.mrb[29].mxu1  ;;  %v3935_v49 = vrot.slane %v3874_v23, 1  ;;  %v3932_v48 = vrot.slane %v3722_v45, 1 }
 0x3b6   : > { %v3938_v58 = vrot.slane %v3876_v25, 1 }
 0x3b7   : > { %v3726_v5 = vpop.f32.mrb[30].mxu0 }
 0x3b8   : > { %v3880_v21 = vpop.f32.mrb[30].mxu1  ;;  %v3930_v46 = vrot.slane %v3726_v5, 1  ;;  %v3728_v22 = vpop.f32.mrb[31].mxu0 }
 0x3b9   : > { %v3936_v47 = vrot.slane %v3880_v21, 1  ;;  %v3933_v32 = vrot.slane %v3728_v22, 1  ;;  %v3882_v54 = vpop.f32.mrb[31].mxu1 }
 0x3ba   : > { %v3931_v1 = vsel %vm1188_vm2, %v3929_v8, %v3930_v46  ;;  %v3953_v16 = vadd.f32 %v3930_v46, %v6853_v50  ;;  %v3939_v43 = vrot.slane %v3882_v54, 1 }
 0x3bb   : > { %v3937_v2 = vsel %vm1188_vm2, %v3935_v49, %v3936_v47  ;;  %v3955_v29 = vadd.f32 %v3936_v47, %v6855_v55  ;;  %v3949_v63 = vadd.f32 %v3931_v1, %v6845_v19  ;;  %v3934_v11 = vsel %vm1188_vm2, %v3932_v48, %v3933_v32 }
 0x3bc   : > { %v3951_v59 = vadd.f32 %v3937_v2, %v6847_v62  ;;  %v3969_v24 = vmul.f32 %v3953_v16, %v3953_v16  ;;  %v3950_v6 = vadd.f32 %v3934_v11, %v6849_v40  ;;  %v3954_v56 = vadd.f32 %v3933_v32, %v6857_v57 }
 0x3bd   : > { %v3971_v35 = vmul.f32 %v3955_v29, %v3955_v29  ;;  %v3965_v31 = vmul.f32 %v3949_v63, %v3949_v63  ;;  %v3940_v50 = vsel %vm1188_vm2, %v3938_v58, %v3939_v43  ;;  %v3956_v37 = vadd.f32 %v3939_v43, %v6859_v41  ;;  %v4234_v41 = vld [vmem:[#allocation7 + $0x8] sm:$0xff] }
 0x3be   : > { %v3967_v13 = vmul.f32 %v3951_v59, %v3951_v59  ;;  %v3970_v23 = vmul.f32 %v3954_v56, %v3954_v56  ;;  %v3952_v55 = vadd.f32 %v3940_v50, %v6851_v44  ;;  %v3966_v19 = vmul.f32 %v3950_v6, %v3950_v6  ;;  %v4233_v44 = vld [vmem:[#allocation7] sm:$0xff] }
 0x3bf   : > { %v3973_v45 = vadd.f32 %v3965_v31, %v3957_v14  ;;  %v3972_v25 = vmul.f32 %v3956_v37, %v3956_v37  ;;  %v3977_v5 = vadd.f32 %v3969_v24, %v3961_v9  ;;  %v3979_v62 = vadd.f32 %v3971_v35, %v3963_v36  ;;  %v4235_v14 = vld [vmem:[#allocation7 + $0x10] sm:$0xff]  ;;  %v4236_v9 = vld [vmem:[#allocation7 + $0x18] sm:$0xff] }
 0x3c0   : > { %v3975_v8 = vadd.f32 %v3967_v13, %v3959_v61  ;;  %v3974_v21 = vadd.f32 %v3966_v19, %v3958_v15  ;;  %v3968_v40 = vmul.f32 %v3952_v55, %v3952_v55  ;;  %v3978_v46 = vadd.f32 %v3970_v23, %v3962_v51  ;;  %v4237_v13 = vld [vmem:[#allocation7 + $0x20] sm:$0xff]  ;;  %v4238_v23 = vld [vmem:[#allocation7 + $0x28] sm:$0xff] }
 0x3c1   : > { %v3980_v57 = vadd.f32 %v3972_v25, %v3964_v4  ;;  %v5910_v49 = vpack.c.bf16 %v4234_v41, %v4233_v44  ;;  %v5914_v36 = vpack.c.bf16 %v4236_v9, %v4235_v14  ;;  %vm4210_vm2 = vcmask 1040384   ;;  %v4240_v25 = vld [vmem:[#allocation7 + $0x38] sm:$0xff]  ;;  %v4246_v44 = vld [vmem:[#allocation7 + $0x68] sm:$0xff]  ;;  %v1445_v9 = vpop.permute.xlu0 %1444 }
 0x3c2   : > { %4109 = vmatprep.mubr.f32.mxu0 %v3974_v21  ;;  %v3976_v22 = vadd.f32 %v3968_v40, %v3960_v3  ;;  %v5918_v55 = vpack.c.bf16 %v4238_v23, %v4237_v13  ;;  %v7034_v19 = vadd.f32 %v6970_v38, %v6905_v18  ;;  %v4242_v18 = vld [vmem:[#allocation7 + $0x48] sm:$0xff]  ;;  %v1437_v38 = vadd.f32 %v6962_v0, %v6900_v12  ;;  %v4247_v0 = vld [vmem:[#allocation7 + $0x70] sm:$0xff]  ;;  %v4248_v41 = vld [vmem:[#allocation7 + $0x78] sm:$0xff] }
 0x3c3   : > { %4110 = vmatmul.mubr.f32.vlgmr.msra.gmra.mrb[32].mxu0 %v3973_v45  ;;  %5911 = vmatprep.subr.bf16.mxu0 %v5910_v49  ;;  %v4239_v45 = vld [vmem:[#allocation7 + $0x30] sm:$0xff]  ;;  %v5938_v14 = vpack.c.bf16 %v4248_v41, %v4247_v0  ;;  %v1309_v0 = vsel %vm1308_vm11, %v6736_v52, 0.0  ;;  %v1310_v41 = vsel %vm1308_vm11, %v6756_v30, 0.0 }
 0x3c4   : > { %4184 = vmatprep.mubr.f32.mxu1 %v3976_v22  ;;  %4114 = vmatprep.mubr.f32.mxu0 %v3978_v46  ;;  %v4243_v46 = vld [vmem:[#allocation7 + $0x50] sm:$0xff] }
 0x3c5   : > { %4185 = vmatmul.mubr.f32.vlgmr.msra.gmra.mrb[32].mxu1 %v3975_v8  ;;  %5913 = vmatpush3.bf16.msra.mxu0 %v5910_v49  ;;  %v4241_v8 = vld [vmem:[#allocation7 + $0x40] sm:$0xff]  ;;  %v1443_v49 = vpop.permute.xlu1 %1442 }
 0x3c6   : > { %4189 = vmatprep.mubr.f32.mxu1 %v3980_v57  ;;  %5915 = vmatprep.subr.bf16.mxu0 %v5914_v36  ;;  %v5926_v21 = vpack.c.bf16 %v4242_v18, %v4241_v8  ;;  %v4244_v57 = vld [vmem:[#allocation7 + $0x58] sm:$0xff] }
 0x3c7   : > { %4115 = vmatmul.mubr.f32.gmra.mrb[34].mxu0 %v3977_v5  ;;  %v5922_v5 = vpack.c.bf16 %v4240_v25, %v4239_v45 }
 0x3c9   : > { %4190 = vmatmul.mubr.f32.gmra.mrb[34].mxu1 %v3979_v62  ;;  %5917 = vmatpush3.bf16.msra.mxu0 %v5914_v36  ;;  %v1456_v62 = vsel %vm1452_vm6, %v6987_v7, %v6989_v39  ;;  %v5930_v7 = vpack.c.bf16 %v4244_v57, %v4243_v46  ;;  %v4245_v39 = vld [vmem:[#allocation7 + $0x60] sm:$0xff] }
 0x3ca   : > { %5919 = vmatprep.subr.bf16.mxu0 %v5918_v55  ;;  %v1461_v40 = vsel %vm1459_vm7, %v1456_v62, 0.0  ;;  %v5934_v12 = vpack.c.bf16 %v4246_v44, %v4245_v39  ;;  %v1302_v44 = vadd.f32 %v6723_v26, %v6710_v42 }
 0x3cb   : > { %v7049_v22 = vadd.f32 %v1461_v40, %v6926_v10 }
 0x3cd   : > { %5921 = vmatpush3.bf16.msra.mxu0 %v5918_v55 }
 0x3ce   : > { %5923 = vmatprep.subr.bf16.mxu0 %v5922_v5 }
 0x3d1   : > { %5925 = vmatpush3.bf16.msra.mxu0 %v5922_v5 }
 0x3d2   : > { %5927 = vmatprep.subr.bf16.mxu0 %v5926_v21 }
 0x3d5   : > { %5929 = vmatpush3.bf16.msra.mxu0 %v5926_v21 }
 0x3d6   : > { %5931 = vmatprep.subr.bf16.mxu0 %v5930_v7 }
 0x3d9   : > { %5933 = vmatpush3.bf16.msra.mxu0 %v5930_v7 }
 0x3da   : > { %5935 = vmatprep.subr.bf16.mxu0 %v5934_v12 }
 0x3dd   : > { %5937 = vmatpush3.bf16.msra.mxu0 %v5934_v12  ;;  %v1305_v12 = vadd.f32 %v6751_v17, %v6738_v53 }
 0x3de   : > { %5939 = vmatprep.subr.bf16.mxu0 %v5938_v14 }
 0x3e1   : > { %5941 = vmatpush3.bf16.msra.mxu0 %v5938_v14  ;;  %v1311_v14 = vadd.f32 %v1310_v41, %v1309_v0 }
 0x496   : > { %v4725_v61 = vpop.f32.mrb[32].mxu0 }
 0x497   : > { %v4726_v51 = vpop.f32.mrb[33].mxu0 }
 0x498   : > { %v4763_v4 = vpop.f32.mrb[32].mxu1  ;;  %v4727_v15 = vadd.f32 %v4726_v51, %v4725_v61 }
 0x499   : > { %v4764_v3 = vpop.f32.mrb[33].mxu1 }
 0x49a   : > { %v4765_v48 = vadd.f32 %v4764_v3, %v4763_v4  ;;  %v4728_v47 = vpop.f32.mrb[34].mxu0 }
 0x49b   : > { %v4729_v32 = vpop.f32.mrb[35].mxu0 }
 0x49c   : > { %v4187_v54 = vadd.f32 %v4765_v48, %v4727_v15  ;;  %v4766_v58 = vpop.f32.mrb[34].mxu1  ;;  %v4730_v1 = vadd.f32 %v4729_v32, %v4728_v47 }
 0x49d   : > { %v4767_v16 = vpop.f32.mrb[35].mxu1 }
 0x49e   : > { %v4195_v43 = vmax.f32 %v4187_v54, 1e-10  ;;  %v4768_v2 = vadd.f32 %v4767_v16, %v4766_v58 }
 0x4a0   : > { %6063 = vlog2.f32 %v4195_v43  ;;  %v4192_v29 = vadd.f32 %v4768_v2, %v4730_v1 }
 0x4a2   : > { %v4196_v63 = vmax.f32 %v4192_v29, 1e-10 }
 0x4a4   : > { %6065 = vlog2.f32 %v4196_v63 }
 0x4aa   : > { %v6064_v11 = vpop.eup %6063 }
 0x4ab   : > { %v4198_v59 = vmul.f32 0.6931472, %v6064_v11  ;;  %v1468_v11 = vadd.f32 %v6995_v27, %v6923_v20 }
 0x4ad   : > { %v4201_v24 = vmul.f32 0.4342945, %v4198_v59 }
 0x4ae   : > { %v6066_v6 = vpop.eup %6065 }
 0x4af   : > { %v7025_v56 = vmul.f32 10.0, %v4201_v24  ;;  %v4200_v35 = vmul.f32 0.6931472, %v6066_v6 }
 0x4b1   : > { %4208 = vmax.xlane.f32.xlu1 %v7025_v56  ;;  %v4202_v31 = vmul.f32 0.4342945, %v4200_v35 }
 0x4b3   : > { %v7028_v50 = vmul.f32 10.0, %v4202_v31 }
 0x4b5   : > { %v4211_v37 = vsel %vm4210_vm2, %v7028_v50, -inf }
 0x4b6   : > { %4212 = vmax.xlane.f32.xlu0 %v4211_v37 }
 0x4c2   : > { %1450 = vrot.lane.b32.xlu1 %v7034_v19, %s6247_s23 }
 0x4cc   : > { %1448 = vrot.lane.b32.xlu0 %v1437_v38, %s6247_s23 }
 0x4d0   : > { %1473 = vrot.lane.b32.xlu0 %v7049_v22, %s6248_s10 }
 0x53e   : > { %v4209_v10 = vpop.xlane.xlu1 %4208 }
 0x542   : > { %v1451_v36 = vpop.permute.xlu1 %1450 }
 0x543   : > { %v1458_v61 = vsel %vm1452_vm6, %v1451_v36, %v1445_v9  ;;  %v4213_v51 = vpop.xlane.xlu0 %4212  ;;  %v1455_v24 = vsel %vm1452_vm6, %v1445_v9, %v1451_v36 }
 0x544   : > { %v1465_v4 = vsel %vm1459_vm7, %v1458_v61, 0.0  ;;  %v4214_v15 = vsel %vm4210_vm2, %v4213_v51, -inf }
 0x545   : > { %v1471_v3 = vadd.f32 %v1465_v4, %v6980_v34  ;;  %v4215_v48 = vmax.f32 %v4209_v10, %v4214_v15  ;;  %v4206_v34 = vshrl.u32 %v1299_v60, 7 }
 0x547   : > { %v4216_v47 = vrot.slane %v4215_v48, 4  ;;  %v1449_v32 = vpop.permute.xlu0 %1448  ;;  %1477 = vrot.lane.b32.xlu0 %v1471_v3, %s6248_s10  ;;  %v4207_v59 = vadd.s32 8, %v4206_v34 }
 0x548   : > { %v1454_v54 = vsel %vm1452_vm6, %v1443_v49, %v1449_v32  ;;  %v1457_v58 = vsel %vm1452_vm6, %v1449_v32, %v1443_v49 }
 0x549   : > { %v4217_v1 = vmax.f32 %v4215_v48, %v4216_v47  ;;  %v1463_v16 = vsel %vm1459_vm7, %v1457_v58, 0.0  ;;  %v1470_v43 = vadd.f32 %v1454_v54, %v1437_v38  ;;  %vm4225_vm8 = vcmp.lt.s32.totalorder %v4207_v59, 9 }
 0x54a   : > { %v1469_v2 = vadd.f32 %v1463_v16, %v6975_v33  ;;  %v1472_v33 = vadd.f32 %v1455_v24, %v7034_v19 }
 0x54b   : > { %v4218_v29 = vrot.slane %v4217_v1, 2  ;;  %1481 = vrot.lane.b32.xlu0 %v1470_v43, %s6248_s10  ;;  %v1474_v20 = vpop.permute.xlu0 %1473 }
 0x54c   : > { %1475 = vrot.lane.b32.xlu1 %v1469_v2, %s6248_s10 }
 0x54d   : > { %v4219_v63 = vmax.f32 %v4217_v1, %v4218_v29 }
 0x54f   : > { %v4220_v6 = vrot.slane %v4219_v63, 1 }
 0x550   : > { %1479 = vrot.lane.b32.xlu1 %v1468_v11, %s6248_s10 }
 0x551   : > { %v4221_v35 = vmax.f32 %v4219_v63, %v4220_v6 }
 0x553   : > { %v4689_v60 = vadd.f32 -80.0, %v4221_v35 }
 0x554   : > { %1483 = vrot.lane.b32.xlu1 %v1472_v33, %s6248_s10 }
 0x555   : > { %v4230_v31 = vsel %vm4225_vm8, %v4689_v60, -1e+30  ;;  %v4231_v37 = vmax.f32 %v7025_v56, %v4689_v60 }
 0x556   : > { %v4232_v13 = vmax.f32 %v7028_v50, %v4230_v31 }
 0x557   : > { %4819 = vmatprep.mubr.f32.mxu0 %v4231_v37 }
 0x558   : > { %4820 = vmatmul.mubr.f32.vlgmr.msra.gmra.mrb[36].mxu0 %v4232_v13 }
 0x5b9   : > { %v1478_v27 = vpop.permute.xlu0 %1477 }
 0x5bd   : > { %v1482_v23 = vpop.permute.xlu0 %1481 }
 0x5be   : > { %v1476_v55 = vpop.permute.xlu1 %1475 }
 0x5bf   : > { %v1490_v19 = vsel %vm1485_vm9, %v1482_v23, %v1476_v55  ;;  %v1487_v39 = vsel %vm1485_vm9, %v1476_v55, %v1482_v23 }
 0x5c0   : > { %v1496_v45 = vsel %vm1492_vm10, %v1490_v19, 0.0 }
 0x5c1   : > { %v7085_v25 = vadd.f32 %v1496_v45, %v1469_v2 }
 0x5c2   : > { %v1480_v56 = vpop.permute.xlu1 %1479 }
 0x5c3   : > { %v1486_v50 = vsel %vm1485_vm9, %v1474_v20, %v1480_v56  ;;  %v1489_v5 = vsel %vm1485_vm9, %v1480_v56, %v1474_v20  ;;  %1508 = vrot.lane.b32.xlu1 %v7085_v25, %s6249_s11 }
 0x5c4   : > { %v1494_v62 = vsel %vm1492_vm10, %v1489_v5, 0.0  ;;  %v1501_v8 = vadd.f32 %v1486_v50, %v1468_v11 }
 0x5c5   : > { %v1500_v18 = vadd.f32 %v1494_v62, %v7049_v22  ;;  %v1503_v22 = vadd.f32 %v1487_v39, %v1470_v43  ;;  %v1301_v62 = vadd.s32 128, %v6785_v28 }
 0x5c6   : > { %v1484_v38 = vpop.permute.xlu1 %1483 }
 0x5c7   : > { %v1488_v21 = vsel %vm1485_vm9, %v1478_v27, %v1484_v38  ;;  %v1491_v40 = vsel %vm1485_vm9, %v1484_v38, %v1478_v27  ;;  %1506 = vrot.lane.b32.xlu0 %v1500_v18, %s6249_s11  ;;  %1512 = vrot.lane.b32.xlu1 %v1501_v8, %s6249_s11 }
 0x5c8   : > { %v1498_v46 = vsel %vm1492_vm10, %v1491_v40, 0.0  ;;  %v1505_v57 = vadd.f32 %v1488_v21, %v1472_v33  ;;  %vm4427_vm10 = vcmask 0  }
 0x5c9   : > { %v1504_v7 = vadd.f32 %v1498_v46, %v1471_v3 }
 0x5cb   : > { %1510 = vrot.lane.b32.xlu0 %v1504_v7, %s6249_s11  ;;  %1516 = vrot.lane.b32.xlu1 %v1505_v57, %s6249_s11 }
 0x5cf   : > { %1514 = vrot.lane.b32.xlu0 %v1503_v22, %s6249_s11 }
 0x5ee   : > { %1303 = vadd.xlane.f32.xlu0 %v1302_v44 }
 0x5ef   : > { %1306 = vadd.xlane.f32.xlu1 %v1305_v12 }
 0x5f2   : > { %1312 = vadd.xlane.f32.xlu0 %v1311_v14 }
 0x62b   : > { %v4821_v49 = vpop.f32.mrb[36].mxu0 }
 0x62c   : > { %v4395_v10 = vsel %vm4394_vm12, %v4821_v49, 0.0  ;;  %v4315_v9 = vpop.f32.mrb[37].mxu0 }
 0x62d   : > { %v4393_v36 = vsel %vm4392_vm13, %v4315_v9, 0.0 }
 0x62e   : > { %v4396_v61 = vadd.f32 %v4395_v10, %v4393_v36 }
 0x630   : > { %v4397_v51 = vrot.slane %v4396_v61, 4 }
 0x632   : > { %v4398_v4 = vadd.f32 %v4397_v51, %v4396_v61 }
 0x634   : > { %v4399_v15 = vrot.slane %v4398_v4, 2 }
 0x635   : > { %v1509_v3 = vpop.permute.xlu1 %1508 }
 0x636   : > { %v4400_v48 = vadd.f32 %v4399_v15, %v4398_v4 }
 0x638   : > { %v4401_v47 = vrot.slane %v4400_v48, 1 }
 0x639   : > { %v1507_v32 = vpop.permute.xlu0 %1506  ;;  %v1513_v54 = vpop.permute.xlu1 %1512 }
 0x63a   : > { %v4402_v58 = vadd.f32 %v4401_v47, %v4400_v48  ;;  %v1522_v1 = vsel %vm1518_vm14, %v1513_v54, %v1507_v32  ;;  %v1519_v34 = vsel %vm1518_vm14, %v1507_v32, %v1513_v54 }
 0x63b   : > { %v1527_v16 = vsel %vm1525_vm15, %v1522_v1, 0.0  ;;  %v1534_v35 = vadd.f32 %v1519_v34, %v1501_v8  ;;  %v1315_v8 = vcvt.s32.f32 %v1301_v62  ;;  %v6251_v1 = vmov 0.0  }
 0x63c   : > { %v7119_v43 = vmul.f32 0.11111111, %v4402_v58  ;;  %v7121_v2 = vadd.f32 %v1527_v16, %v1500_v18 }
 0x63d   : > { %v1511_v29 = vpop.permute.xlu0 %1510  ;;  %v1517_v59 = vpop.permute.xlu1 %1516  ;;  %v1317_v38 = vmul.f32 55.125, %v1315_v8 }
 0x63e   : > { %v4405_v63 = vsub.f32 %v4315_v9, %v7119_v43  ;;  %v4406_v11 = vsub.f32 %v4821_v49, %v7119_v43  ;;  %1539 = vrot.lane.b32.xlu0 %v7121_v2, %s6250_s13  ;;  %v1521_v33 = vsel %vm1518_vm14, %v1511_v29, %v1517_v59  ;;  %v1524_v13 = vsel %vm1518_vm14, %v1517_v59, %v1511_v29 }
 0x63f   : > { %v1538_v55 = vadd.f32 %v1521_v33, %v1505_v57  ;;  %v1531_v45 = vsel %vm1525_vm15, %v1524_v13, 0.0  ;;  %v1321_v40 = vmul.f32 %v1317_v38, %v6751_v17  ;;  %v1323_v57 = vmul.f32 %v1317_v38, %v6756_v30 }
 0x640   : > { %v4407_v24 = vmul.f32 %v4405_v63, %v4405_v63  ;;  %v4408_v6 = vmul.f32 %v4406_v11, %v4406_v11  ;;  %v1537_v56 = vadd.f32 %v1531_v45, %v1504_v7  ;;  %v1319_v0 = vmul.f32 %v1317_v38, %v6723_v26 }
 0x641   : > { %v1515_v60 = vpop.permute.xlu0 %1514 }
 0x642   : > { %v4409_v31 = vsel %vm4392_vm13, %v4407_v24, 0.0  ;;  %v4410_v37 = vsel %vm4394_vm12, %v4408_v6, 0.0  ;;  %v1523_v20 = vsel %vm1518_vm14, %v1515_v60, %v1509_v3  ;;  %1545 = vrot.lane.b32.xlu0 %v1534_v35, %s6250_s13  ;;  %v1520_v50 = vsel %vm1518_vm14, %v1509_v3, %v1515_v60 }
 0x643   : > { %v4411_v27 = vadd.f32 %v4410_v37, %v4409_v31  ;;  %v1529_v23 = vsel %vm1525_vm15, %v1523_v20, 0.0  ;;  %v7146_v5 = vadd.f32 %v1520_v50, %v1503_v22  ;;  %v1331_v22 = vsel %vm1308_vm11, %v1323_v57, 0.0 }
 0x644   : > { %v7139_v19 = vadd.f32 %v1529_v23, %v7085_v25  ;;  %v1314_v25 = vcvt.s32.f32 %v6785_v28  ;;  %vm4429_vm13 = vcmask 8200   ;;  %vm4431_vm15 = vcmask 16400  }
 0x645   : > { %v4412_v17 = vrot.slane %v4411_v27, 4 }
 0x646   : > { %1541 = vrot.lane.b32.xlu1 %v7139_v19, %s6250_s13  ;;  %1549 = vrot.lane.b32.xlu0 %v1538_v55, %s6250_s13  ;;  %v1316_v18 = vmul.f32 55.125, %v1314_v25 }
 0x648   : > { %v1320_v21 = vmul.f32 %v1316_v18, %v6738_v53  ;;  %v1322_v46 = vmul.f32 %v1316_v18, %v6736_v52  ;;  %v1318_v12 = vmul.f32 %v1316_v18, %v6710_v42  ;;  %v4413_v52 = vadd.f32 %v4412_v17, %v4411_v27 }
 0x64a   : > { %1543 = vrot.lane.b32.xlu1 %v1537_v56, %s6250_s13  ;;  %v1327_v7 = vadd.f32 %v1321_v40, %v1320_v21  ;;  %v1330_v39 = vsel %vm1308_vm11, %v1322_v46, 0.0  ;;  %v1324_v41 = vadd.f32 %v1319_v0, %v1318_v12  ;;  %v4414_v30 = vrot.slane %v4413_v52, 2 }
 0x64b   : > { %v1332_v44 = vadd.f32 %v1331_v22, %v1330_v39 }
 0x64c   : > { %v4415_v10 = vadd.f32 %v4414_v30, %v4413_v52 }
 0x64e   : > { %1547 = vrot.lane.b32.xlu1 %v7146_v5, %s6250_s13  ;;  %v4416_v3 = vrot.slane %v4415_v10, 1 }
 0x650   : > { %v4417_v32 = vadd.f32 %v4416_v3, %v4415_v10 }
 0x665   : > { %1328 = vadd.xlane.f32.xlu0 %v1327_v7 }
 0x669   : > { %1333 = vadd.xlane.f32.xlu0 %v1332_v44 }
 0x672   : > { %1325 = vadd.xlane.f32.xlu1 %v1324_v41 }
 0x67b   : > { %v7159_v53 = vpop.xlane.xlu0 %1303 }
 0x67c   : > { %v7165_v9 = vpop.xlane.xlu1 %1306  ;;  %v1586_v4 = vmul.f32 0.85, %v7159_v53 }
 0x67d   : > { %v1587_v23 = vmul.f32 0.85, %v7165_v9 }
 0x67f   : > { %v7161_v14 = vpop.xlane.xlu0 %1312 }
 0x680   : > { %v1588_v24 = vmul.f32 0.85, %v7161_v14 }
 0x6b0   : > { %v1540_v49 = vpop.permute.xlu0 %1539 }
 0x6b4   : > { %v1546_v42 = vpop.permute.xlu0 %1545 }
 0x6b5   : > { %v1552_v26 = vsel %vm1551_vm0, %v1540_v49, %v1546_v42  ;;  %v1555_v36 = vsel %vm1551_vm0, %v1546_v42, %v1540_v49 }
 0x6b6   : > { %v1560_v61 = vsel %vm1558_vm1, %v1555_v36, 0.0  ;;  %v1567_v51 = vadd.f32 %v1552_v26, %v1534_v35  ;;  %v4419_v35 = vmul.f32 0.125, %v4417_v32 }
 0x6b7   : > { %v1566_v15 = vadd.f32 %v1560_v61, %v7121_v2 }
 0x6b8   : > { %v1542_v48 = vpop.permute.xlu1 %1541  ;;  %v1550_v54 = vpop.permute.xlu0 %1549  ;;  %6067 = vrsqrt.f32 %v4419_v35  ;;  %vm4422_vm8 = vcmp.eq.f32.partialorder %v4419_v35, inf  ;;  %v4425_v21 = vand.u32 2147483648, %v4419_v35  ;;  %vm4424_vm9 = vcmp.eq.f32.partialorder %v4419_v35, 0.0 }
 0x6b9   : > { %v1581_v47 = vadd.f32 %v1567_v51, %v1566_v15  ;;  %vm1589_vm3 = vcmp.lt.f32.partialorder %v1566_v15, %v1586_v4  ;;  %6069 = vrcp.f32 %v7159_v53 }
 0x6ba   : > { %v4683_v16 = vsel %vm1589_vm3, 1.0, %v6251_v1  ;;  %6071 = vrcp.f32 %v7161_v14  ;;  %vm4439_vm3 = vcmask 131104  }
 0x6bb   : > { %vm1590_vm4 = vcmp.lt.f32.partialorder %v1581_v47, %v1586_v4  ;;  %6073 = vrcp.f32 %v7165_v9 }
 0x6bc   : > { %v1544_v58 = vpop.permute.xlu1 %1543  ;;  %v4684_v34 = vsel %vm1590_vm4, 1.0, %v6251_v1  ;;  %vm4445_vm4 = vcmask 237704  }
 0x6bd   : > { %v1554_v29 = vsel %vm1551_vm0, %v1544_v58, %v1550_v54  ;;  %v1557_v63 = vsel %vm1551_vm0, %v1550_v54, %v1544_v58  ;;  %v1607_v11 = vadd.f32 %v4684_v34, %v4683_v16 }
 0x6be   : > { %v1564_v2 = vsel %vm1558_vm1, %v1557_v63, 0.0  ;;  %v1571_v59 = vadd.f32 %v1554_v29, %v1538_v55 }
 0x6bf   : > { %v1570_v6 = vadd.f32 %v1564_v2, %v1537_v56  ;;  %1608 = vadd.xlane.f32.xlu1 %v1607_v11 }
 0x6c0   : > { %v1548_v33 = vpop.permute.xlu1 %1547 }
 0x6c1   : > { %v1585_v60 = vadd.f32 %v1571_v59, %v1570_v6  ;;  %v1553_v31 = vsel %vm1551_vm0, %v1542_v48, %v1548_v33  ;;  %v1556_v37 = vsel %vm1551_vm0, %v1548_v33, %v1542_v48  ;;  %vm1593_vm5 = vcmp.lt.f32.partialorder %v1570_v6, %v1588_v24 }
 0x6c2   : > { %v1562_v13 = vsel %vm1558_vm1, %v1556_v37, 0.0  ;;  %v1569_v20 = vadd.f32 %v1553_v31, %v7146_v5  ;;  %v4687_v27 = vsel %vm1593_vm5, 1.0, %v6251_v1  ;;  %v6068_v18 = vpop.eup %6067  ;;  %vm4433_vm0 = vcmask 24600  }
 0x6c3   : > { %v1568_v55 = vadd.f32 %v1562_v13, %v7139_v19  ;;  %vm1594_vm6 = vcmp.lt.f32.partialorder %v1585_v60, %v1588_v24  ;;  %v1613_v50 = vsel %vm1308_vm11, %v4687_v27, 0.0  ;;  %v4421_v38 = vmul.f32 %v6068_v18, %v4419_v35  ;;  %v6070_v7 = vpop.eup %6069 }
 0x6c4   : > { %v4688_v45 = vsel %vm1594_vm6, 1.0, %v6251_v1  ;;  %v6072_v39 = vpop.eup %6071 }
 0x6c5   : > { %v1583_v56 = vadd.f32 %v1569_v20, %v1568_v55  ;;  %v1614_v62 = vsel %vm1308_vm11, %v4688_v45, 0.0  ;;  %vm1591_vm2 = vcmp.lt.f32.partialorder %v1568_v55, %v1587_v23  ;;  %v4423_v19 = vsel %vm4422_vm8, %v4419_v35, %v4421_v38  ;;  %v6074_v22 = vpop.eup %6073 }
 0x6c6   : > { %v1615_v25 = vadd.f32 %v1614_v62, %v1613_v50  ;;  %v4685_v28 = vsel %vm1591_vm2, 1.0, %v6251_v1  ;;  %v4426_v40 = vsel %vm4424_vm9, %v4425_v21, %v4423_v19 }
 0x6c7   : > { %vm1592_vm7 = vcmp.lt.f32.partialorder %v1583_v56, %v1587_v23 }
 0x6c8   : > { %1616 = vadd.xlane.f32.xlu1 %v1615_v25  ;;  %v4686_v8 = vsel %vm1592_vm7, 1.0, %v6251_v1 }
 0x6c9   : > { %v1610_v5 = vadd.f32 %v4686_v8, %v4685_v28 }
 0x6cb   : > { %1611 = vadd.xlane.f32.xlu0 %v1610_v5 }
 0x6d9   : > { %4442 = vrot.lane.b32.xlu1 %v4426_v40, %s6252_s14 }
 0x6e1   : > { %4436 = vrot.lane.b32.xlu0 %v7119_v43, %s6246_s9 }
 0x6f2   : > { %v1329_v46 = vpop.xlane.xlu0 %1328 }
 0x6f3   : > { %v1338_v0 = vmul.f32 %v6074_v22, %v1329_v46 }
 0x6f6   : > { %v1334_v57 = vpop.xlane.xlu0 %1333 }
 0x6f7   : > { %v1340_v44 = vmul.f32 %v6072_v39, %v1334_v57 }
 0x6f9   : > { %v4325_v52 = vsel %vm1308_vm11, %v1340_v44, 0.0 }
 0x6ff   : > { %v1326_v12 = vpop.xlane.xlu1 %1325 }
 0x700   : > { %v1336_v41 = vmul.f32 %v6070_v7, %v1326_v12 }
 0x702   : > { %v4324_v17 = vadd.f32 %v1338_v0, %v1336_v41 }
 0x704   : > { %v4326_v43 = vadd.f32 %v4325_v52, %v4324_v17 }
 0x706   : > { %v4327_v30 = vrot.slane %v4326_v43, 4 }
 0x708   : > { %v4328_v53 = vadd.f32 %v4327_v30, %v4326_v43 }
 0x70a   : > { %v4329_v49 = vrot.slane %v4328_v53, 2 }
 0x70c   : > { %v4330_v14 = vadd.f32 %v4329_v49, %v4328_v53 }
 0x70e   : > { %v4331_v10 = vrot.slane %v4330_v14, 1 }
 0x710   : > { %v4332_v9 = vadd.f32 %v4331_v10, %v4330_v14 }
 0x712   : > { %v4334_v42 = vmul.f32 0.04761905, %v4332_v9 }
 0x714   : > { %v4335_v26 = vsub.f32 %v1336_v41, %v4334_v42  ;;  %v4336_v36 = vsub.f32 %v1338_v0, %v4334_v42  ;;  %v4337_v61 = vsub.f32 %v1340_v44, %v4334_v42  ;;  %4428 = vst.msk [vmem:[%s7203_s18] sm:$0x1] %vm4427_vm10, %v4334_v42 }
 0x716   : > { %v4338_v51 = vmul.f32 %v4335_v26, %v4335_v26  ;;  %v4339_v4 = vmul.f32 %v4336_v36, %v4336_v36  ;;  %v4340_v15 = vmul.f32 %v4337_v61, %v4337_v61 }
 0x718   : > { %v4341_v3 = vadd.f32 %v4339_v4, %v4338_v51  ;;  %v4342_v48 = vsel %vm1308_vm11, %v4340_v15, 0.0 }
 0x71a   : > { %v4343_v47 = vadd.f32 %v4342_v48, %v4341_v3 }
 0x71c   : > { %v4344_v32 = vrot.slane %v4343_v47, 4 }
 0x71e   : > { %v4345_v54 = vadd.f32 %v4344_v32, %v4343_v47 }
 0x720   : > { %v4346_v58 = vrot.slane %v4345_v54, 2 }
 0x722   : > { %v4347_v1 = vadd.f32 %v4346_v58, %v4345_v54 }
 0x724   : > { %v4348_v16 = vrot.slane %v4347_v1, 1 }
 0x726   : > { %v4349_v34 = vadd.f32 %v4348_v16, %v4347_v1 }
 0x728   : > { %v4351_v29 = vmul.f32 0.05, %v4349_v34 }
 0x72a   : > { %6075 = vrsqrt.f32 %v4351_v29  ;;  %vm4354_vm12 = vcmp.eq.f32.partialorder %v4351_v29, inf  ;;  %v4357_v2 = vand.u32 2147483648, %v4351_v29  ;;  %vm4356_vm14 = vcmp.eq.f32.partialorder %v4351_v29, 0.0 }
 0x734   : > { %v6076_v63 = vpop.eup %6075 }
 0x735   : > { %v4353_v11 = vmul.f32 %v6076_v63, %v4351_v29 }
 0x737   : > { %v4355_v59 = vsel %vm4354_vm12, %v4351_v29, %v4353_v11 }
 0x738   : > { %v4358_v24 = vsel %vm4356_vm14, %v4357_v2, %v4355_v59 }
 0x739   : > { %4430 = vst.msk [vmem:[%s7203_s18] sm:$0x1] %vm4429_vm13, %v4358_v24 }
 0x74c   : > { %v1609_v6 = vpop.xlane.xlu1 %1608 }
 0x74d   : > { %v1618_v31 = vmul.f32 55.125, %v1609_v6 }
 0x755   : > { %v1617_v35 = vpop.xlane.xlu1 %1616 }
 0x756   : > { %v1620_v33 = vmul.f32 55.125, %v1617_v35 }
 0x758   : > { %v1612_v60 = vpop.xlane.xlu0 %1611  ;;  %v4360_v20 = vsel %vm1308_vm11, %v1620_v33, 0.0 }
 0x759   : > { %v1619_v37 = vmul.f32 55.125, %v1612_v60  ;;  %v4443_v49 = vpop.permute.xlu1 %4442 }
 0x75b   : > { %v4359_v13 = vadd.f32 %v1619_v37, %v1618_v31 }
 0x75c   : > { %v4437_v53 = vpop.permute.xlu0 %4436 }
 0x75d   : > { %v4361_v27 = vadd.f32 %v4360_v20, %v4359_v13 }
 0x75f   : > { %v4362_v23 = vrot.slane %v4361_v27, 4 }
 0x761   : > { %v4363_v55 = vadd.f32 %v4362_v23, %v4361_v27 }
 0x763   : > { %v4364_v45 = vrot.slane %v4363_v55, 2 }
 0x765   : > { %v4365_v56 = vadd.f32 %v4364_v45, %v4363_v55 }
 0x767   : > { %v4366_v50 = vrot.slane %v4365_v56, 1 }
 0x769   : > { %v4367_v62 = vadd.f32 %v4366_v50, %v4365_v56 }
 0x76b   : > { %v4368_v25 = vmul.f32 0.04761905, %v4367_v62 }
 0x76d   : > { %v4369_v28 = vsub.f32 %v1618_v31, %v4368_v25  ;;  %v4370_v8 = vsub.f32 %v1619_v37, %v4368_v25  ;;  %v4371_v5 = vsub.f32 %v1620_v33, %v4368_v25  ;;  %4432 = vst.msk [vmem:[%s7203_s18] sm:$0x1] %vm4431_vm15, %v4368_v25 }
 0x76f   : > { %v4372_v18 = vmul.f32 %v4369_v28, %v4369_v28  ;;  %v4373_v38 = vmul.f32 %v4370_v8, %v4370_v8  ;;  %v4374_v19 = vmul.f32 %v4371_v5, %v4371_v5 }
 0x771   : > { %v4375_v21 = vadd.f32 %v4373_v38, %v4372_v18  ;;  %v4376_v40 = vsel %vm1308_vm11, %v4374_v19, 0.0 }
 0x773   : > { %v4377_v46 = vadd.f32 %v4376_v40, %v4375_v21 }
 0x775   : > { %v4378_v57 = vrot.slane %v4377_v46, 4 }
 0x777   : > { %v4379_v7 = vadd.f32 %v4378_v57, %v4377_v46 }
 0x779   : > { %v4380_v39 = vrot.slane %v4379_v7, 2 }
 0x77b   : > { %v4381_v22 = vadd.f32 %v4380_v39, %v4379_v7 }
 0x77d   : > { %v4382_v44 = vrot.slane %v4381_v22, 1 }
 0x77f   : > { %v4383_v12 = vadd.f32 %v4382_v44, %v4381_v22 }
 0x781   : > { %v4384_v0 = vmul.f32 0.05, %v4383_v12 }
 0x783   : > { %6077 = vrsqrt.f32 %v4384_v0  ;;  %vm4387_vm1 = vcmp.eq.f32.partialorder %v4384_v0, inf  ;;  %v4390_v52 = vand.u32 2147483648, %v4384_v0  ;;  %vm4389_vm11 = vcmp.eq.f32.partialorder %v4384_v0, 0.0 }
 0x78d   : > { %v6078_v41 = vpop.eup %6077 }
 0x78e   : > { %v4386_v17 = vmul.f32 %v6078_v41, %v4384_v0 }
 0x790   : > { %v4388_v43 = vsel %vm4387_vm1, %v4384_v0, %v4386_v17 }
 0x791   : > { %v4391_v30 = vsel %vm4389_vm11, %v4390_v52, %v4388_v43 }
 0x792   : > { %4434 = vst.msk [vmem:[%s7203_s18] sm:$0x1] %vm4433_vm0, %v4391_v30 }
 0x793   : > { %4440 = vst.msk [vmem:[%s7203_s18] sm:$0x1] %vm4439_vm3, %v4437_v53 }
 0x794   : > { %4446 = vst.msk [vmem:[%s7203_s18] sm:$0x1] %vm4445_vm4, %v4443_v49 }
 0x795 PF: > { %s19_s21 = sadd.s32 1, %s6233_s21  }
 0x796   : > { %p16_p1 = scmp.ge.s32.totalorder %s19_s21, 4  }
 0x798   :  { %18 = sbr.rel (!%p16_p1) target bundleno = 3 (0x3), region = 94 }
 0x79f   :  { %4464 = vsyncpa [#allocation3], 1 }
 0x7a0   :  { %4466 = vsyncpa [#allocation3 + $0x1], 1 }
 0x7a1   :  { %4467 = vsyncpa [#allocation5], 1 }
 0x7a2   :  { %4468 = vsyncpa [#allocation8], 1 }

</bundles_post_ra>
